<compile_context>
chip_gen: v7x
topology: tpu7x:2x2x1
jax: 0.10.0
libtpu: 0.0.40
codegen_flags: <defaults>
</compile_context>

<pallas_src>
import jax
import jax.numpy as jnp
from jax import lax
from jax.experimental import pallas as pl
from jax.experimental.pallas import tpu as pltpu

_LANE = 128   # lane tile (last dim)
_SUB = 16     # sublane alignment for batch rows (bf16 packing = 16 rows/tile)


def _round_up(x, m):
    return (x + m - 1) // m * m


def _sigmoid_via_tanh(x):
    # sigmoid(x) = 0.5 * (1 + tanh(0.5 x)) -- one EUP op instead of exp + div.
    return 0.5 * jnp.tanh(0.5 * x) + 0.5


def _vmem_capacity_bytes():
    """Per-core VMEM capacity; falls back to 128 MiB (v5e/v6e) if query fails."""
    try:
        info = pltpu.get_tpu_info()
        cap = int(getattr(info, "vmem_capacity_bytes", 0) or 0)
        if cap > 0:
            return cap
    except Exception:
        pass
    return 128 << 20


def _is_two_tensorcore_chip(vmem_cap):
    """v7x (2 TC/chip) detection; falls back to the 64-MiB-VMEM heuristic."""
    try:
        kind = jax.devices()[0].device_kind.lower()
        if "7" in kind:
            return True
        if any(v in kind for v in ("v5 lite", "v5e", "v6")):
            return False
    except Exception:
        pass
    return vmem_cap <= (64 << 20)


def _single_buffer_supported():
    """Whether this JAX supports pipeline_mode=pl.Buffered(1) on BlockSpec."""
    if not hasattr(pl, "Buffered"):
        return False
    try:
        pl.BlockSpec((8, 128), lambda i: (0, 0), pipeline_mode=pl.Buffered(1))
        return True
    except TypeError:
        return False


def _pad_gate_blocks(w, H, Hp):
    """Pad a gate-stacked (4H, ...) array to (4Hp, ...), zero-padding each gate."""
    pads = [(0, Hp - H)] + [(0, 0)] * (w.ndim - 1)
    return jnp.concatenate(
        [jnp.pad(w[g * H:(g + 1) * H], pads) for g in range(4)], axis=0)


def _make_lstm_kernel(T, T_BLK, B_BLK, Hp, mask_tail, unroll):
    def kernel(x_ref, wih_ref, whh_ref, b_ref, wfc_ref, bfc_ref,
               out_ref, h_sc, c_sc, xg_sc):
        tb = pl.program_id(1)   # time-block index (sequential axis)

        @pl.when(tb == 0)
        def _init():
            h_sc[...] = jnp.zeros_like(h_sc)
            c_sc[...] = jnp.zeros_like(c_sc)

        # Bulk input-contribution matmul for the whole time block:
        # (T_BLK*B_BLK, I) @ (I, 4Hp), bf16 operands, f32 accumulation, bf16
        # store (halves the largest VMEM buffer and per-step vld traffic).
        xg_sc[...] = (
            jnp.dot(x_ref[...], wih_ref[...], preferred_element_type=jnp.float32)
            + b_ref[...]
        ).astype(xg_sc.dtype)

        whh = whh_ref[...]      # resident bf16 (Hp, 4Hp)

        def step(t, carry):
            h, c = carry
            row = pl.multiple_of(t * B_BLK, B_BLK)   # tile-aligned (B_BLK % 16 == 0)
            gates = (xg_sc[pl.ds(row, B_BLK), :]
                     + jnp.dot(h.astype(jnp.bfloat16), whh,
                               preferred_element_type=jnp.float32))
            i_g = _sigmoid_via_tanh(gates[:, 0 * Hp:1 * Hp])
            f_g = _sigmoid_via_tanh(gates[:, 1 * Hp:2 * Hp])
            g_g = jnp.tanh(gates[:, 2 * Hp:3 * Hp])
            o_g = _sigmoid_via_tanh(gates[:, 3 * Hp:4 * Hp])
            c_new = f_g * c + i_g * g_g
            h_new = o_g * jnp.tanh(c_new)
            if mask_tail:
                valid = (tb * T_BLK + t) < T         # mask padded tail timesteps
                h_new = jnp.where(valid, h_new, h)
                c_new = jnp.where(valid, c_new, c)
            return h_new, c_new

        h, c = lax.fori_loop(0, T_BLK, step, (h_sc[...], c_sc[...]),
                             unroll=unroll)
        h_sc[...] = h
        c_sc[...] = c

        @pl.when(tb == pl.num_programs(1) - 1)
        def _finalize():
            out_ref[...] = (
                jnp.dot(h.astype(jnp.bfloat16), wfc_ref[...],
                        preferred_element_type=jnp.float32)
                + bfc_ref[...]
            ).astype(out_ref.dtype)

    return kernel


def _build_call(kernel, *, NB, NT, T_BLK, B_BLK, I, Hp, Op, Bp,
                single_buffer_weights, vmem_cap, cost_estimate):
    def resident(shape):
        idx = lambda b, t: (0,) * len(shape)
        if single_buffer_weights:
            # Constant index_map => a second pipeline buffer is pure VMEM waste.
            return pl.BlockSpec(shape, idx, pipeline_mode=pl.Buffered(1))
        return pl.BlockSpec(shape, idx)

    grid_spec = pltpu.PrefetchScalarGridSpec(
        num_scalar_prefetch=0,
        grid=(NB, NT),
        in_specs=[
            # x: (NB, NT, T_BLK*B_BLK, I) bf16; leading dims squeezed so the
            # kernel sees a clean 2-D MXU operand (no in-kernel reshape).
            pl.BlockSpec((None, None, T_BLK * B_BLK, I),
                         lambda b, t: (b, t, 0, 0)),
            resident((I, 4 * Hp)),       # W_ih^T       (bf16, resident)
            resident((Hp, 4 * Hp)),      # W_hh^T       (bf16, resident)
            resident((1, 4 * Hp)),       # fused bias   (f32)
            resident((Hp, Op)),          # W_fc^T       (bf16)
            resident((1, Op)),           # b_fc         (f32)
        ],
        out_specs=pl.BlockSpec((B_BLK, Op), lambda b, t: (b, 0)),
        scratch_shapes=[
            pltpu.VMEM((B_BLK, Hp), jnp.float32),                # h state
            pltpu.VMEM((B_BLK, Hp), jnp.float32),                # c state
            pltpu.VMEM((T_BLK * B_BLK, 4 * Hp), jnp.bfloat16),   # x-gate preacts
        ],
    )

    # Exact scoped-VMEM budget: weights x1 (single-buffered) or x2, x block x2
    # (pipelined), output block x2, scratch x1; headroom for internal scratch;
    # capped at 7/8 of this generation's physical VMEM.
    bf16, f32 = 2, 4
    wmul = 1 if single_buffer_weights else 2
    needed = ((I * 4 * Hp + Hp * 4 * Hp + Hp * Op) * bf16
              + (4 * Hp + Op) * f32) * wmul
    needed += 2 * T_BLK * B_BLK * I * bf16        # x block (double-buffered)
    needed += T_BLK * B_BLK * 4 * Hp * bf16       # xg scratch
    needed += 2 * B_BLK * Hp * f32                # h, c
    needed += 2 * B_BLK * Op * f32                # out block (double-buffered)
    vmem_limit = int(min(max(needed + (8 << 20), 32 << 20), (vmem_cap * 7) // 8))

    return pl.pallas_call(
        kernel,
        out_shape=jax.ShapeDtypeStruct((Bp, Op), jnp.float32),
        grid_spec=grid_spec,
        compiler_params=pltpu.CompilerParams(
            dimension_semantics=("parallel", "arbitrary"),   # batch ||, time seq
            vmem_limit_bytes=vmem_limit),
        cost_estimate=cost_estimate,
    )


def lstm_model_forward(x, params, *, max_t_block=None):
    """x: (B, T, input_size) float32. Returns (B, output_size) float32."""
    w_ih, w_hh, b_ih, b_hh, w_fc, b_fc = (
        params["w_ih"], params["w_hh"], params["b_ih"],
        params["b_hh"], params["w_fc"], params["b_fc"])

    B, T, I = x.shape
    H = w_hh.shape[1]
    O = w_fc.shape[0]

    Hp = _round_up(H, _LANE)   # lane-aligned gate blocks
    Op = _round_up(O, _LANE)   # lane-dense output store
    Bp = _round_up(B, _SUB)    # bf16-tile-aligned batch rows

    vmem_cap = _vmem_capacity_bytes()
    two_tc = _is_two_tensorcore_chip(vmem_cap)

    # Batch split only pays on 2-TC parts (v7x megacore); on single-TC chips it
    # just halves MXU LHS rows and doubles grid-step overhead.
    B_BLK = Bp // 2 if (two_tc and Bp % (2 * _SUB) == 0) else Bp
    NB = Bp // B_BLK

    # Time blocking derived from the per-generation VMEM budget:
    #   fixed = resident weights + h/c + out block;  per-T = bf16 x (x2) + bf16 xg.
    bf16, f32 = 2, 4
    budget = int(vmem_cap * 0.8)
    fixed = (I * 4 * Hp + Hp * 4 * Hp + Hp * Op) * bf16 + (4 * Hp + Op) * f32
    fixed += 2 * B_BLK * Hp * f32 + 2 * B_BLK * Op * f32
    per_t = B_BLK * (2 * I * bf16 + 4 * Hp * bf16)
    t_cap = max(1, (budget - fixed) // max(per_t, 1))
    if max_t_block is None:
        max_t_block = 32 if vmem_cap <= (64 << 20) else 64
    T_BLK = int(max(1, min(T, t_cap, max_t_block)))
    NT = -(-T // T_BLK)
    T_pad = NT * T_BLK
    mask_tail = T_pad != T     # pad T + mask tail steps instead of T_BLK=1

    # Full unroll only while per-step gate tensors stay vreg-friendly.
    unroll = True if (B_BLK * 4 * Hp * f32) <= (256 << 10) else 4

    # x: cast to bf16 in the wrapper (halves streamed HBM bytes) and lay out as
    # (NB, NT, T_BLK*B_BLK, I) so each grid block is one contiguous 2-D slab.
    x_tbi = jnp.transpose(x.astype(jnp.bfloat16), (1, 0, 2))        # (T, B, I)
    x_tbi = jnp.pad(x_tbi, ((0, T_pad - T), (0, Bp - B), (0, 0)))
    x_blk = x_tbi.reshape(NT, T_BLK, NB, B_BLK, I)
    x_blk = jnp.transpose(x_blk, (2, 0, 1, 3, 4)).reshape(NB, NT, T_BLK * B_BLK, I)

    # Gate-padded, pre-transposed weights: bf16 MXU operands, f32 biases.
    wih_t = jnp.transpose(_pad_gate_blocks(w_ih, H, Hp), (1, 0)).astype(jnp.bfloat16)
    whh_p = jnp.pad(_pad_gate_blocks(w_hh, H, Hp), ((0, 0), (0, Hp - H)))
    whh_t = jnp.transpose(whh_p, (1, 0)).astype(jnp.bfloat16)
    bias = _pad_gate_blocks(b_ih + b_hh, H, Hp).reshape(1, 4 * Hp)
    wfc_p = jnp.pad(w_fc, ((0, Op - O), (0, Hp - H)))
    wfc_t = jnp.transpose(wfc_p, (1, 0)).astype(jnp.bfloat16)
    bfc = jnp.pad(b_fc, (0, Op - O)).reshape(1, Op)

    cost = pl.CostEstimate(
        flops=int(2 * B * T * (I * 4 * H + H * 4 * H) + 2 * B * H * O),
        transcendentals=int(B * T * 5 * H),
        bytes_accessed=int(x.size * 2 + (w_ih.size + w_hh.size + w_fc.size) * 2
                           + (b_ih.size + b_hh.size + b_fc.size) * 4 + B * O * 4),
    )

    kernel = _make_lstm_kernel(T, T_BLK, B_BLK, Hp, mask_tail, unroll)
    args = (x_blk, wih_t, whh_t, bias, wfc_t, bfc)
    common = dict(NB=NB, NT=NT, T_BLK=T_BLK, B_BLK=B_BLK, I=I, Hp=Hp, Op=Op,
                  Bp=Bp, vmem_cap=vmem_cap, cost_estimate=cost)

    try:
        call = _build_call(kernel,
                           single_buffer_weights=_single_buffer_supported(),
                           **common)
        out_pad = jax.block_until_ready(call(*args))
    except Exception:
        # Fallback: default double-buffering if pl.Buffered(1) is unsupported.
        call = _build_call(kernel, single_buffer_weights=False, **common)
        out_pad = jax.block_until_ready(call(*args))

    return out_pad[:B, :O]


def init_params(key, input_size, hidden_size, output_size):
    """Deterministic init, PyTorch-style U(-1/sqrt(H), 1/sqrt(H))."""
    k = jax.random.split(key, 6)
    s = 1.0 / jnp.sqrt(hidden_size)
    u = lambda kk, shape: jax.random.uniform(kk, shape, jnp.float32, -s, s)
    return {
        "w_ih": u(k[0], (4 * hidden_size, input_size)),
        "w_hh": u(k[1], (4 * hidden_size, hidden_size)),
        "b_ih": u(k[2], (4 * hidden_size,)),
        "b_hh": u(k[3], (4 * hidden_size,)),
        "w_fc": u(k[4], (output_size, hidden_size)),
        "b_fc": u(k[5], (output_size,)),
    }


def reference_forward(x, params):
    """Pure-JAX f32 reference matching PyTorch nn.LSTM(batch_first) + Linear."""
    w_ih, w_hh = params["w_ih"], params["w_hh"]
    b = params["b_ih"] + params["b_hh"]
    B, T, _ = x.shape
    H = w_hh.shape[1]
    h = jnp.zeros((B, H), jnp.float32)
    c = jnp.zeros((B, H), jnp.float32)
    for t in range(T):
        gates = x[:, t, :] @ w_ih.T + h @ w_hh.T + b
        i = jax.nn.sigmoid(gates[:, 0 * H:1 * H])
        f = jax.nn.sigmoid(gates[:, 1 * H:2 * H])
        g = jnp.tanh(gates[:, 2 * H:3 * H])
        o = jax.nn.sigmoid(gates[:, 3 * H:4 * H])
        c = f * c + i * g
        h = o * jnp.tanh(c)
    return h @ params["w_fc"].T + params["b_fc"]


if __name__ == "__main__":
    B, T, I, H, O = 2, 8, 16, 32, 3
    key = jax.random.PRNGKey(0)
    kx, kp = jax.random.split(key)
    x = jax.random.normal(kx, (B, T, I), jnp.float32)
    params = init_params(kp, I, H, O)

    out = lstm_model_forward(x, params)
    out = jax.block_until_ready(out)

    ref = reference_forward(x, params)
    assert out.shape == (B, O)
    # bf16 x / weights / pre-activations with f32 accumulation -> looser tol.
    assert jnp.allclose(out, ref, atol=5e-2, rtol=5e-2), (out, ref)
    print("KERNEL_OK")
</pallas_src>

<mosaic_0001>
module attributes {stable_mosaic.version = 11 : i64} {
  func.func @kernel(%arg0: i32, %arg1: i32, %arg2: memref<1x1x128x16xbf16, #tpu.memory_space<vmem>>, %arg3: memref<16x512xbf16, #tpu.memory_space<vmem>>, %arg4: memref<128x512xbf16, #tpu.memory_space<vmem>>, %arg5: memref<1x512xf32, #tpu.memory_space<vmem>>, %arg6: memref<128x128xbf16, #tpu.memory_space<vmem>>, %arg7: memref<1x128xf32, #tpu.memory_space<vmem>>, %arg8: memref<16x128xf32, #tpu.memory_space<vmem>>, %arg9: memref<16x128xf32, #tpu.memory_space<vmem>>, %arg10: memref<16x128xf32, #tpu.memory_space<vmem>>, %arg11: memref<128x512xbf16, #tpu.memory_space<vmem>>) attributes {dimension_semantics = [#tpu.dimension_semantics<parallel>, #tpu.dimension_semantics<arbitrary>], iteration_bounds = array<i64: 1, 1>, scalar_prefetch = 0 : i64, scratch_operands = 3 : i64, tpu.core_type = #tpu.core_type<tc>, window_params = [{transform_indices = @transform_0, window_bounds = array<i64: 1, 1, 128, 16>}, {pipeline_mode = #tpu.pipeline_mode<synchronous>, transform_indices = @transform_1, window_bounds = array<i64: 16, 512>}, {pipeline_mode = #tpu.pipeline_mode<synchronous>, transform_indices = @transform_2, window_bounds = array<i64: 128, 512>}, {pipeline_mode = #tpu.pipeline_mode<synchronous>, transform_indices = @transform_3, window_bounds = array<i64: 1, 512>}, {pipeline_mode = #tpu.pipeline_mode<synchronous>, transform_indices = @transform_4, window_bounds = array<i64: 128, 128>}, {pipeline_mode = #tpu.pipeline_mode<synchronous>, transform_indices = @transform_5, window_bounds = array<i64: 1, 128>}, {transform_indices = @transform_6, window_bounds = array<i64: 16, 128>}]} {
    %c0_i32 = arith.constant 0 : i32
    %0 = arith.cmpi eq, %arg1, %c0_i32 : i32
    %1 = arith.extui %0 : i1 to i32
    %c0_i32_0 = arith.constant 0 : i32
    %2 = arith.cmpi ne, %1, %c0_i32_0 : i32
    scf.if %2 {
      %cst_118 = arith.constant 0.000000e+00 : f32
      %332 = vector.broadcast %cst_118 : f32 to vector<16x128xf32>
      %c0_119 = arith.constant 0 : index
      %c0_120 = arith.constant 0 : index
      %333 = vector.load %arg9[%c0_119, %c0_120] : memref<16x128xf32, #tpu.memory_space<vmem>>, vector<16x128xf32>
      tpu.vector_store %arg9[%c0_119, %c0_120], %332 {strides = array<i32>} : memref<16x128xf32, #tpu.memory_space<vmem>>, vector<16x128xf32>,
      %cst_121 = arith.constant 0.000000e+00 : f32
      %334 = vector.broadcast %cst_121 : f32 to vector<16x128xf32>
      %c0_122 = arith.constant 0 : index
      %c0_123 = arith.constant 0 : index
      %335 = vector.load %arg10[%c0_122, %c0_123] : memref<16x128xf32, #tpu.memory_space<vmem>>, vector<16x128xf32>
      tpu.vector_store %arg10[%c0_122, %c0_123], %334 {strides = array<i32>} : memref<16x128xf32, #tpu.memory_space<vmem>>, vector<16x128xf32>,
    } else {
    }
    %c0 = arith.constant 0 : index
    %c0_1 = arith.constant 0 : index
    %c0_2 = arith.constant 0 : index
    %c0_3 = arith.constant 0 : index
    %3 = vector.load %arg2[%c0, %c0_1, %c0_2, %c0_3] : memref<1x1x128x16xbf16, #tpu.memory_space<vmem>>, vector<1x1x128x16xbf16>
    %4 = vector.shape_cast %3 : vector<1x1x128x16xbf16> to vector<128x16xbf16>
    %c0_4 = arith.constant 0 : index
    %c0_5 = arith.constant 0 : index
    %5 = vector.load %arg3[%c0_4, %c0_5] : memref<16x512xbf16, #tpu.memory_space<vmem>>, vector<16x512xbf16>
    %cst = arith.constant dense<0.000000e+00> : vector<128x512xf32>
    %6 = tpu.matmul %4, %5, %cst {dimension_numbers = #tpu.dot_dimension_numbers<[1], [0], [0], [1], [0, 0, 1, 1], [], []>} : vector<128x16xbf16>, vector<16x512xbf16>, vector<128x512xf32> -> vector<128x512xf32>
    %c0_6 = arith.constant 0 : index
    %c0_7 = arith.constant 0 : index
    %7 = vector.load %arg5[%c0_6, %c0_7] : memref<1x512xf32, #tpu.memory_space<vmem>>, vector<1x512xf32>
    %8 = vector.broadcast %7 : vector<1x512xf32> to vector<128x512xf32>
    %9 = arith.addf %6, %8 : vector<128x512xf32>
    %10 = arith.truncf %9 : vector<128x512xf32> to vector<128x512xbf16>
    %c0_8 = arith.constant 0 : index
    %c0_9 = arith.constant 0 : index
    %11 = vector.load %arg11[%c0_8, %c0_9] : memref<128x512xbf16, #tpu.memory_space<vmem>>, vector<128x512xbf16>
    tpu.vector_store %arg11[%c0_8, %c0_9], %10 {strides = array<i32>} : memref<128x512xbf16, #tpu.memory_space<vmem>>, vector<128x512xbf16>,
    %c0_10 = arith.constant 0 : index
    %c0_11 = arith.constant 0 : index
    %12 = vector.load %arg4[%c0_10, %c0_11] : memref<128x512xbf16, #tpu.memory_space<vmem>>, vector<128x512xbf16>
    %c0_12 = arith.constant 0 : index
    %c0_13 = arith.constant 0 : index
    %13 = vector.load %arg9[%c0_12, %c0_13] : memref<16x128xf32, #tpu.memory_space<vmem>>, vector<16x128xf32>
    %c0_14 = arith.constant 0 : index
    %c0_15 = arith.constant 0 : index
    %14 = vector.load %arg10[%c0_14, %c0_15] : memref<16x128xf32, #tpu.memory_space<vmem>>, vector<16x128xf32>
    %c0_i32_16 = arith.constant 0 : i32
    %c16_i32 = arith.constant 16 : i32
    %15 = arith.muli %c0_i32_16, %c16_i32 : i32
    %16 = tpu.assume_multiple %15, 16 : i32
    %17 = arith.index_cast %16 : i32 to index
    %c0_17 = arith.constant 0 : index
    %18 = vector.load %arg11[%17, %c0_17] : memref<128x512xbf16, #tpu.memory_space<vmem>>, vector<16x512xbf16>
    %19 = arith.truncf %13 : vector<16x128xf32> to vector<16x128xbf16>
    %cst_18 = arith.constant dense<0.000000e+00> : vector<16x512xf32>
    %20 = tpu.matmul %19, %12, %cst_18 {dimension_numbers = #tpu.dot_dimension_numbers<[1], [0], [0], [1], [0, 0, 1, 1], [], []>} : vector<16x128xbf16>, vector<128x512xbf16>, vector<16x512xf32> -> vector<16x512xf32>
    %21 = arith.extf %18 : vector<16x512xbf16> to vector<16x512xf32>
    %22 = arith.addf %21, %20 : vector<16x512xf32>
    %23 = vector.extract_strided_slice %22 {offsets = [0, 0], sizes = [16, 128], strides = [1, 1]} : vector<16x512xf32> to vector<16x128xf32>
    %cst_19 = arith.constant 5.000000e-01 : f32
    %24 = vector.broadcast %cst_19 : f32 to vector<16x128xf32>
    %25 = arith.mulf %24, %23 : vector<16x128xf32>
    %26 = math.tanh %25 : vector<16x128xf32>
    %cst_20 = arith.constant 5.000000e-01 : f32
    %27 = vector.broadcast %cst_20 : f32 to vector<16x128xf32>
    %28 = arith.mulf %27, %26 : vector<16x128xf32>
    %cst_21 = arith.constant 5.000000e-01 : f32
    %29 = vector.broadcast %cst_21 : f32 to vector<16x128xf32>
    %30 = arith.addf %28, %29 : vector<16x128xf32>
    %31 = vector.extract_strided_slice %22 {offsets = [0, 128], sizes = [16, 128], strides = [1, 1]} : vector<16x512xf32> to vector<16x128xf32>
    %cst_22 = arith.constant 5.000000e-01 : f32
    %32 = vector.broadcast %cst_22 : f32 to vector<16x128xf32>
    %33 = arith.mulf %32, %31 : vector<16x128xf32>
    %34 = math.tanh %33 : vector<16x128xf32>
    %cst_23 = arith.constant 5.000000e-01 : f32
    %35 = vector.broadcast %cst_23 : f32 to vector<16x128xf32>
    %36 = arith.mulf %35, %34 : vector<16x128xf32>
    %cst_24 = arith.constant 5.000000e-01 : f32
    %37 = vector.broadcast %cst_24 : f32 to vector<16x128xf32>
    %38 = arith.addf %36, %37 : vector<16x128xf32>
    %39 = vector.extract_strided_slice %22 {offsets = [0, 256], sizes = [16, 128], strides = [1, 1]} : vector<16x512xf32> to vector<16x128xf32>
    %40 = math.tanh %39 : vector<16x128xf32>
    %41 = vector.extract_strided_slice %22 {offsets = [0, 384], sizes = [16, 128], strides = [1, 1]} : vector<16x512xf32> to vector<16x128xf32>
    %cst_25 = arith.constant 5.000000e-01 : f32
    %42 = vector.broadcast %cst_25 : f32 to vector<16x128xf32>
    %43 = arith.mulf %42, %41 : vector<16x128xf32>
    %44 = math.tanh %43 : vector<16x128xf32>
    %cst_26 = arith.constant 5.000000e-01 : f32
    %45 = vector.broadcast %cst_26 : f32 to vector<16x128xf32>
    %46 = arith.mulf %45, %44 : vector<16x128xf32>
    %cst_27 = arith.constant 5.000000e-01 : f32
    %47 = vector.broadcast %cst_27 : f32 to vector<16x128xf32>
    %48 = arith.addf %46, %47 : vector<16x128xf32>
    %49 = arith.mulf %38, %14 : vector<16x128xf32>
    %50 = arith.mulf %30, %40 : vector<16x128xf32>
    %51 = arith.addf %49, %50 : vector<16x128xf32>
    %52 = math.tanh %51 : vector<16x128xf32>
    %53 = arith.mulf %48, %52 : vector<16x128xf32>
    %c1_i32 = arith.constant 1 : i32
    %c16_i32_28 = arith.constant 16 : i32
    %54 = arith.muli %c1_i32, %c16_i32_28 : i32
    %55 = tpu.assume_multiple %54, 16 : i32
    %56 = arith.index_cast %55 : i32 to index
    %c0_29 = arith.constant 0 : index
    %57 = vector.load %arg11[%56, %c0_29] : memref<128x512xbf16, #tpu.memory_space<vmem>>, vector<16x512xbf16>
    %58 = arith.truncf %53 : vector<16x128xf32> to vector<16x128xbf16>
    %cst_30 = arith.constant dense<0.000000e+00> : vector<16x512xf32>
    %59 = tpu.matmul %58, %12, %cst_30 {dimension_numbers = #tpu.dot_dimension_numbers<[1], [0], [0], [1], [0, 0, 1, 1], [], []>} : vector<16x128xbf16>, vector<128x512xbf16>, vector<16x512xf32> -> vector<16x512xf32>
    %60 = arith.extf %57 : vector<16x512xbf16> to vector<16x512xf32>
    %61 = arith.addf %60, %59 : vector<16x512xf32>
    %62 = vector.extract_strided_slice %61 {offsets = [0, 0], sizes = [16, 128], strides = [1, 1]} : vector<16x512xf32> to vector<16x128xf32>
    %cst_31 = arith.constant 5.000000e-01 : f32
    %63 = vector.broadcast %cst_31 : f32 to vector<16x128xf32>
    %64 = arith.mulf %63, %62 : vector<16x128xf32>
    %65 = math.tanh %64 : vector<16x128xf32>
    %cst_32 = arith.constant 5.000000e-01 : f32
    %66 = vector.broadcast %cst_32 : f32 to vector<16x128xf32>
    %67 = arith.mulf %66, %65 : vector<16x128xf32>
    %cst_33 = arith.constant 5.000000e-01 : f32
    %68 = vector.broadcast %cst_33 : f32 to vector<16x128xf32>
    %69 = arith.addf %67, %68 : vector<16x128xf32>
    %70 = vector.extract_strided_slice %61 {offsets = [0, 128], sizes = [16, 128], strides = [1, 1]} : vector<16x512xf32> to vector<16x128xf32>
    %cst_34 = arith.constant 5.000000e-01 : f32
    %71 = vector.broadcast %cst_34 : f32 to vector<16x128xf32>
    %72 = arith.mulf %71, %70 : vector<16x128xf32>
    %73 = math.tanh %72 : vector<16x128xf32>
    %cst_35 = arith.constant 5.000000e-01 : f32
    %74 = vector.broadcast %cst_35 : f32 to vector<16x128xf32>
    %75 = arith.mulf %74, %73 : vector<16x128xf32>
    %cst_36 = arith.constant 5.000000e-01 : f32
    %76 = vector.broadcast %cst_36 : f32 to vector<16x128xf32>
    %77 = arith.addf %75, %76 : vector<16x128xf32>
    %78 = vector.extract_strided_slice %61 {offsets = [0, 256], sizes = [16, 128], strides = [1, 1]} : vector<16x512xf32> to vector<16x128xf32>
    %79 = math.tanh %78 : vector<16x128xf32>
    %80 = vector.extract_strided_slice %61 {offsets = [0, 384], sizes = [16, 128], strides = [1, 1]} : vector<16x512xf32> to vector<16x128xf32>
    %cst_37 = arith.constant 5.000000e-01 : f32
    %81 = vector.broadcast %cst_37 : f32 to vector<16x128xf32>
    %82 = arith.mulf %81, %80 : vector<16x128xf32>
    %83 = math.tanh %82 : vector<16x128xf32>
    %cst_38 = arith.constant 5.000000e-01 : f32
    %84 = vector.broadcast %cst_38 : f32 to vector<16x128xf32>
    %85 = arith.mulf %84, %83 : vector<16x128xf32>
    %cst_39 = arith.constant 5.000000e-01 : f32
    %86 = vector.broadcast %cst_39 : f32 to vector<16x128xf32>
    %87 = arith.addf %85, %86 : vector<16x128xf32>
    %88 = arith.mulf %77, %51 : vector<16x128xf32>
    %89 = arith.mulf %69, %79 : vector<16x128xf32>
    %90 = arith.addf %88, %89 : vector<16x128xf32>
    %91 = math.tanh %90 : vector<16x128xf32>
    %92 = arith.mulf %87, %91 : vector<16x128xf32>
    %c2_i32 = arith.constant 2 : i32
    %c16_i32_40 = arith.constant 16 : i32
    %93 = arith.muli %c2_i32, %c16_i32_40 : i32
    %94 = tpu.assume_multiple %93, 16 : i32
    %95 = arith.index_cast %94 : i32 to index
    %c0_41 = arith.constant 0 : index
    %96 = vector.load %arg11[%95, %c0_41] : memref<128x512xbf16, #tpu.memory_space<vmem>>, vector<16x512xbf16>
    %97 = arith.truncf %92 : vector<16x128xf32> to vector<16x128xbf16>
    %cst_42 = arith.constant dense<0.000000e+00> : vector<16x512xf32>
    %98 = tpu.matmul %97, %12, %cst_42 {dimension_numbers = #tpu.dot_dimension_numbers<[1], [0], [0], [1], [0, 0, 1, 1], [], []>} : vector<16x128xbf16>, vector<128x512xbf16>, vector<16x512xf32> -> vector<16x512xf32>
    %99 = arith.extf %96 : vector<16x512xbf16> to vector<16x512xf32>
    %100 = arith.addf %99, %98 : vector<16x512xf32>
    %101 = vector.extract_strided_slice %100 {offsets = [0, 0], sizes = [16, 128], strides = [1, 1]} : vector<16x512xf32> to vector<16x128xf32>
    %cst_43 = arith.constant 5.000000e-01 : f32
    %102 = vector.broadcast %cst_43 : f32 to vector<16x128xf32>
    %103 = arith.mulf %102, %101 : vector<16x128xf32>
    %104 = math.tanh %103 : vector<16x128xf32>
    %cst_44 = arith.constant 5.000000e-01 : f32
    %105 = vector.broadcast %cst_44 : f32 to vector<16x128xf32>
    %106 = arith.mulf %105, %104 : vector<16x128xf32>
    %cst_45 = arith.constant 5.000000e-01 : f32
    %107 = vector.broadcast %cst_45 : f32 to vector<16x128xf32>
    %108 = arith.addf %106, %107 : vector<16x128xf32>
    %109 = vector.extract_strided_slice %100 {offsets = [0, 128], sizes = [16, 128], strides = [1, 1]} : vector<16x512xf32> to vector<16x128xf32>
    %cst_46 = arith.constant 5.000000e-01 : f32
    %110 = vector.broadcast %cst_46 : f32 to vector<16x128xf32>
    %111 = arith.mulf %110, %109 : vector<16x128xf32>
    %112 = math.tanh %111 : vector<16x128xf32>
    %cst_47 = arith.constant 5.000000e-01 : f32
    %113 = vector.broadcast %cst_47 : f32 to vector<16x128xf32>
    %114 = arith.mulf %113, %112 : vector<16x128xf32>
    %cst_48 = arith.constant 5.000000e-01 : f32
    %115 = vector.broadcast %cst_48 : f32 to vector<16x128xf32>
    %116 = arith.addf %114, %115 : vector<16x128xf32>
    %117 = vector.extract_strided_slice %100 {offsets = [0, 256], sizes = [16, 128], strides = [1, 1]} : vector<16x512xf32> to vector<16x128xf32>
    %118 = math.tanh %117 : vector<16x128xf32>
    %119 = vector.extract_strided_slice %100 {offsets = [0, 384], sizes = [16, 128], strides = [1, 1]} : vector<16x512xf32> to vector<16x128xf32>
    %cst_49 = arith.constant 5.000000e-01 : f32
    %120 = vector.broadcast %cst_49 : f32 to vector<16x128xf32>
    %121 = arith.mulf %120, %119 : vector<16x128xf32>
    %122 = math.tanh %121 : vector<16x128xf32>
    %cst_50 = arith.constant 5.000000e-01 : f32
    %123 = vector.broadcast %cst_50 : f32 to vector<16x128xf32>
    %124 = arith.mulf %123, %122 : vector<16x128xf32>
    %cst_51 = arith.constant 5.000000e-01 : f32
    %125 = vector.broadcast %cst_51 : f32 to vector<16x128xf32>
    %126 = arith.addf %124, %125 : vector<16x128xf32>
    %127 = arith.mulf %116, %90 : vector<16x128xf32>
    %128 = arith.mulf %108, %118 : vector<16x128xf32>
    %129 = arith.addf %127, %128 : vector<16x128xf32>
    %130 = math.tanh %129 : vector<16x128xf32>
    %131 = arith.mulf %126, %130 : vector<16x128xf32>
    %c3_i32 = arith.constant 3 : i32
    %c16_i32_52 = arith.constant 16 : i32
    %132 = arith.muli %c3_i32, %c16_i32_52 : i32
    %133 = tpu.assume_multiple %132, 16 : i32
    %134 = arith.index_cast %133 : i32 to index
    %c0_53 = arith.constant 0 : index
    %135 = vector.load %arg11[%134, %c0_53] : memref<128x512xbf16, #tpu.memory_space<vmem>>, vector<16x512xbf16>
    %136 = arith.truncf %131 : vector<16x128xf32> to vector<16x128xbf16>
    %cst_54 = arith.constant dense<0.000000e+00> : vector<16x512xf32>
    %137 = tpu.matmul %136, %12, %cst_54 {dimension_numbers = #tpu.dot_dimension_numbers<[1], [0], [0], [1], [0, 0, 1, 1], [], []>} : vector<16x128xbf16>, vector<128x512xbf16>, vector<16x512xf32> -> vector<16x512xf32>
    %138 = arith.extf %135 : vector<16x512xbf16> to vector<16x512xf32>
    %139 = arith.addf %138, %137 : vector<16x512xf32>
    %140 = vector.extract_strided_slice %139 {offsets = [0, 0], sizes = [16, 128], strides = [1, 1]} : vector<16x512xf32> to vector<16x128xf32>
    %cst_55 = arith.constant 5.000000e-01 : f32
    %141 = vector.broadcast %cst_55 : f32 to vector<16x128xf32>
    %142 = arith.mulf %141, %140 : vector<16x128xf32>
    %143 = math.tanh %142 : vector<16x128xf32>
    %cst_56 = arith.constant 5.000000e-01 : f32
    %144 = vector.broadcast %cst_56 : f32 to vector<16x128xf32>
    %145 = arith.mulf %144, %143 : vector<16x128xf32>
    %cst_57 = arith.constant 5.000000e-01 : f32
    %146 = vector.broadcast %cst_57 : f32 to vector<16x128xf32>
    %147 = arith.addf %145, %146 : vector<16x128xf32>
    %148 = vector.extract_strided_slice %139 {offsets = [0, 128], sizes = [16, 128], strides = [1, 1]} : vector<16x512xf32> to vector<16x128xf32>
    %cst_58 = arith.constant 5.000000e-01 : f32
    %149 = vector.broadcast %cst_58 : f32 to vector<16x128xf32>
    %150 = arith.mulf %149, %148 : vector<16x128xf32>
    %151 = math.tanh %150 : vector<16x128xf32>
    %cst_59 = arith.constant 5.000000e-01 : f32
    %152 = vector.broadcast %cst_59 : f32 to vector<16x128xf32>
    %153 = arith.mulf %152, %151 : vector<16x128xf32>
    %cst_60 = arith.constant 5.000000e-01 : f32
    %154 = vector.broadcast %cst_60 : f32 to vector<16x128xf32>
    %155 = arith.addf %153, %154 : vector<16x128xf32>
    %156 = vector.extract_strided_slice %139 {offsets = [0, 256], sizes = [16, 128], strides = [1, 1]} : vector<16x512xf32> to vector<16x128xf32>
    %157 = math.tanh %156 : vector<16x128xf32>
    %158 = vector.extract_strided_slice %139 {offsets = [0, 384], sizes = [16, 128], strides = [1, 1]} : vector<16x512xf32> to vector<16x128xf32>
    %cst_61 = arith.constant 5.000000e-01 : f32
    %159 = vector.broadcast %cst_61 : f32 to vector<16x128xf32>
    %160 = arith.mulf %159, %158 : vector<16x128xf32>
    %161 = math.tanh %160 : vector<16x128xf32>
    %cst_62 = arith.constant 5.000000e-01 : f32
    %162 = vector.broadcast %cst_62 : f32 to vector<16x128xf32>
    %163 = arith.mulf %162, %161 : vector<16x128xf32>
    %cst_63 = arith.constant 5.000000e-01 : f32
    %164 = vector.broadcast %cst_63 : f32 to vector<16x128xf32>
    %165 = arith.addf %163, %164 : vector<16x128xf32>
    %166 = arith.mulf %155, %129 : vector<16x128xf32>
    %167 = arith.mulf %147, %157 : vector<16x128xf32>
    %168 = arith.addf %166, %167 : vector<16x128xf32>
    %169 = math.tanh %168 : vector<16x128xf32>
    %170 = arith.mulf %165, %169 : vector<16x128xf32>
    %c4_i32 = arith.constant 4 : i32
    %c16_i32_64 = arith.constant 16 : i32
    %171 = arith.muli %c4_i32, %c16_i32_64 : i32
    %172 = tpu.assume_multiple %171, 16 : i32
    %173 = arith.index_cast %172 : i32 to index
    %c0_65 = arith.constant 0 : index
    %174 = vector.load %arg11[%173, %c0_65] : memref<128x512xbf16, #tpu.memory_space<vmem>>, vector<16x512xbf16>
    %175 = arith.truncf %170 : vector<16x128xf32> to vector<16x128xbf16>
    %cst_66 = arith.constant dense<0.000000e+00> : vector<16x512xf32>
    %176 = tpu.matmul %175, %12, %cst_66 {dimension_numbers = #tpu.dot_dimension_numbers<[1], [0], [0], [1], [0, 0, 1, 1], [], []>} : vector<16x128xbf16>, vector<128x512xbf16>, vector<16x512xf32> -> vector<16x512xf32>
    %177 = arith.extf %174 : vector<16x512xbf16> to vector<16x512xf32>
    %178 = arith.addf %177, %176 : vector<16x512xf32>
    %179 = vector.extract_strided_slice %178 {offsets = [0, 0], sizes = [16, 128], strides = [1, 1]} : vector<16x512xf32> to vector<16x128xf32>
    %cst_67 = arith.constant 5.000000e-01 : f32
    %180 = vector.broadcast %cst_67 : f32 to vector<16x128xf32>
    %181 = arith.mulf %180, %179 : vector<16x128xf32>
    %182 = math.tanh %181 : vector<16x128xf32>
    %cst_68 = arith.constant 5.000000e-01 : f32
    %183 = vector.broadcast %cst_68 : f32 to vector<16x128xf32>
    %184 = arith.mulf %183, %182 : vector<16x128xf32>
    %cst_69 = arith.constant 5.000000e-01 : f32
    %185 = vector.broadcast %cst_69 : f32 to vector<16x128xf32>
    %186 = arith.addf %184, %185 : vector<16x128xf32>
    %187 = vector.extract_strided_slice %178 {offsets = [0, 128], sizes = [16, 128], strides = [1, 1]} : vector<16x512xf32> to vector<16x128xf32>
    %cst_70 = arith.constant 5.000000e-01 : f32
    %188 = vector.broadcast %cst_70 : f32 to vector<16x128xf32>
    %189 = arith.mulf %188, %187 : vector<16x128xf32>
    %190 = math.tanh %189 : vector<16x128xf32>
    %cst_71 = arith.constant 5.000000e-01 : f32
    %191 = vector.broadcast %cst_71 : f32 to vector<16x128xf32>
    %192 = arith.mulf %191, %190 : vector<16x128xf32>
    %cst_72 = arith.constant 5.000000e-01 : f32
    %193 = vector.broadcast %cst_72 : f32 to vector<16x128xf32>
    %194 = arith.addf %192, %193 : vector<16x128xf32>
    %195 = vector.extract_strided_slice %178 {offsets = [0, 256], sizes = [16, 128], strides = [1, 1]} : vector<16x512xf32> to vector<16x128xf32>
    %196 = math.tanh %195 : vector<16x128xf32>
    %197 = vector.extract_strided_slice %178 {offsets = [0, 384], sizes = [16, 128], strides = [1, 1]} : vector<16x512xf32> to vector<16x128xf32>
    %cst_73 = arith.constant 5.000000e-01 : f32
    %198 = vector.broadcast %cst_73 : f32 to vector<16x128xf32>
    %199 = arith.mulf %198, %197 : vector<16x128xf32>
    %200 = math.tanh %199 : vector<16x128xf32>
    %cst_74 = arith.constant 5.000000e-01 : f32
    %201 = vector.broadcast %cst_74 : f32 to vector<16x128xf32>
    %202 = arith.mulf %201, %200 : vector<16x128xf32>
    %cst_75 = arith.constant 5.000000e-01 : f32
    %203 = vector.broadcast %cst_75 : f32 to vector<16x128xf32>
    %204 = arith.addf %202, %203 : vector<16x128xf32>
    %205 = arith.mulf %194, %168 : vector<16x128xf32>
    %206 = arith.mulf %186, %196 : vector<16x128xf32>
    %207 = arith.addf %205, %206 : vector<16x128xf32>
    %208 = math.tanh %207 : vector<16x128xf32>
    %209 = arith.mulf %204, %208 : vector<16x128xf32>
    %c5_i32 = arith.constant 5 : i32
    %c16_i32_76 = arith.constant 16 : i32
    %210 = arith.muli %c5_i32, %c16_i32_76 : i32
    %211 = tpu.assume_multiple %210, 16 : i32
    %212 = arith.index_cast %211 : i32 to index
    %c0_77 = arith.constant 0 : index
    %213 = vector.load %arg11[%212, %c0_77] : memref<128x512xbf16, #tpu.memory_space<vmem>>, vector<16x512xbf16>
    %214 = arith.truncf %209 : vector<16x128xf32> to vector<16x128xbf16>
    %cst_78 = arith.constant dense<0.000000e+00> : vector<16x512xf32>
    %215 = tpu.matmul %214, %12, %cst_78 {dimension_numbers = #tpu.dot_dimension_numbers<[1], [0], [0], [1], [0, 0, 1, 1], [], []>} : vector<16x128xbf16>, vector<128x512xbf16>, vector<16x512xf32> -> vector<16x512xf32>
    %216 = arith.extf %213 : vector<16x512xbf16> to vector<16x512xf32>
    %217 = arith.addf %216, %215 : vector<16x512xf32>
    %218 = vector.extract_strided_slice %217 {offsets = [0, 0], sizes = [16, 128], strides = [1, 1]} : vector<16x512xf32> to vector<16x128xf32>
    %cst_79 = arith.constant 5.000000e-01 : f32
    %219 = vector.broadcast %cst_79 : f32 to vector<16x128xf32>
    %220 = arith.mulf %219, %218 : vector<16x128xf32>
    %221 = math.tanh %220 : vector<16x128xf32>
    %cst_80 = arith.constant 5.000000e-01 : f32
    %222 = vector.broadcast %cst_80 : f32 to vector<16x128xf32>
    %223 = arith.mulf %222, %221 : vector<16x128xf32>
    %cst_81 = arith.constant 5.000000e-01 : f32
    %224 = vector.broadcast %cst_81 : f32 to vector<16x128xf32>
    %225 = arith.addf %223, %224 : vector<16x128xf32>
    %226 = vector.extract_strided_slice %217 {offsets = [0, 128], sizes = [16, 128], strides = [1, 1]} : vector<16x512xf32> to vector<16x128xf32>
    %cst_82 = arith.constant 5.000000e-01 : f32
    %227 = vector.broadcast %cst_82 : f32 to vector<16x128xf32>
    %228 = arith.mulf %227, %226 : vector<16x128xf32>
    %229 = math.tanh %228 : vector<16x128xf32>
    %cst_83 = arith.constant 5.000000e-01 : f32
    %230 = vector.broadcast %cst_83 : f32 to vector<16x128xf32>
    %231 = arith.mulf %230, %229 : vector<16x128xf32>
    %cst_84 = arith.constant 5.000000e-01 : f32
    %232 = vector.broadcast %cst_84 : f32 to vector<16x128xf32>
    %233 = arith.addf %231, %232 : vector<16x128xf32>
    %234 = vector.extract_strided_slice %217 {offsets = [0, 256], sizes = [16, 128], strides = [1, 1]} : vector<16x512xf32> to vector<16x128xf32>
    %235 = math.tanh %234 : vector<16x128xf32>
    %236 = vector.extract_strided_slice %217 {offsets = [0, 384], sizes = [16, 128], strides = [1, 1]} : vector<16x512xf32> to vector<16x128xf32>
    %cst_85 = arith.constant 5.000000e-01 : f32
    %237 = vector.broadcast %cst_85 : f32 to vector<16x128xf32>
    %238 = arith.mulf %237, %236 : vector<16x128xf32>
    %239 = math.tanh %238 : vector<16x128xf32>
    %cst_86 = arith.constant 5.000000e-01 : f32
    %240 = vector.broadcast %cst_86 : f32 to vector<16x128xf32>
    %241 = arith.mulf %240, %239 : vector<16x128xf32>
    %cst_87 = arith.constant 5.000000e-01 : f32
    %242 = vector.broadcast %cst_87 : f32 to vector<16x128xf32>
    %243 = arith.addf %241, %242 : vector<16x128xf32>
    %244 = arith.mulf %233, %207 : vector<16x128xf32>
    %245 = arith.mulf %225, %235 : vector<16x128xf32>
    %246 = arith.addf %244, %245 : vector<16x128xf32>
    %247 = math.tanh %246 : vector<16x128xf32>
    %248 = arith.mulf %243, %247 : vector<16x128xf32>
    %c6_i32 = arith.constant 6 : i32
    %c16_i32_88 = arith.constant 16 : i32
    %249 = arith.muli %c6_i32, %c16_i32_88 : i32
    %250 = tpu.assume_multiple %249, 16 : i32
    %251 = arith.index_cast %250 : i32 to index
    %c0_89 = arith.constant 0 : index
    %252 = vector.load %arg11[%251, %c0_89] : memref<128x512xbf16, #tpu.memory_space<vmem>>, vector<16x512xbf16>
    %253 = arith.truncf %248 : vector<16x128xf32> to vector<16x128xbf16>
    %cst_90 = arith.constant dense<0.000000e+00> : vector<16x512xf32>
    %254 = tpu.matmul %253, %12, %cst_90 {dimension_numbers = #tpu.dot_dimension_numbers<[1], [0], [0], [1], [0, 0, 1, 1], [], []>} : vector<16x128xbf16>, vector<128x512xbf16>, vector<16x512xf32> -> vector<16x512xf32>
    %255 = arith.extf %252 : vector<16x512xbf16> to vector<16x512xf32>
    %256 = arith.addf %255, %254 : vector<16x512xf32>
    %257 = vector.extract_strided_slice %256 {offsets = [0, 0], sizes = [16, 128], strides = [1, 1]} : vector<16x512xf32> to vector<16x128xf32>
    %cst_91 = arith.constant 5.000000e-01 : f32
    %258 = vector.broadcast %cst_91 : f32 to vector<16x128xf32>
    %259 = arith.mulf %258, %257 : vector<16x128xf32>
    %260 = math.tanh %259 : vector<16x128xf32>
    %cst_92 = arith.constant 5.000000e-01 : f32
    %261 = vector.broadcast %cst_92 : f32 to vector<16x128xf32>
    %262 = arith.mulf %261, %260 : vector<16x128xf32>
    %cst_93 = arith.constant 5.000000e-01 : f32
    %263 = vector.broadcast %cst_93 : f32 to vector<16x128xf32>
    %264 = arith.addf %262, %263 : vector<16x128xf32>
    %265 = vector.extract_strided_slice %256 {offsets = [0, 128], sizes = [16, 128], strides = [1, 1]} : vector<16x512xf32> to vector<16x128xf32>
    %cst_94 = arith.constant 5.000000e-01 : f32
    %266 = vector.broadcast %cst_94 : f32 to vector<16x128xf32>
    %267 = arith.mulf %266, %265 : vector<16x128xf32>
    %268 = math.tanh %267 : vector<16x128xf32>
    %cst_95 = arith.constant 5.000000e-01 : f32
    %269 = vector.broadcast %cst_95 : f32 to vector<16x128xf32>
    %270 = arith.mulf %269, %268 : vector<16x128xf32>
    %cst_96 = arith.constant 5.000000e-01 : f32
    %271 = vector.broadcast %cst_96 : f32 to vector<16x128xf32>
    %272 = arith.addf %270, %271 : vector<16x128xf32>
    %273 = vector.extract_strided_slice %256 {offsets = [0, 256], sizes = [16, 128], strides = [1, 1]} : vector<16x512xf32> to vector<16x128xf32>
    %274 = math.tanh %273 : vector<16x128xf32>
    %275 = vector.extract_strided_slice %256 {offsets = [0, 384], sizes = [16, 128], strides = [1, 1]} : vector<16x512xf32> to vector<16x128xf32>
    %cst_97 = arith.constant 5.000000e-01 : f32
    %276 = vector.broadcast %cst_97 : f32 to vector<16x128xf32>
    %277 = arith.mulf %276, %275 : vector<16x128xf32>
    %278 = math.tanh %277 : vector<16x128xf32>
    %cst_98 = arith.constant 5.000000e-01 : f32
    %279 = vector.broadcast %cst_98 : f32 to vector<16x128xf32>
    %280 = arith.mulf %279, %278 : vector<16x128xf32>
    %cst_99 = arith.constant 5.000000e-01 : f32
    %281 = vector.broadcast %cst_99 : f32 to vector<16x128xf32>
    %282 = arith.addf %280, %281 : vector<16x128xf32>
    %283 = arith.mulf %272, %246 : vector<16x128xf32>
    %284 = arith.mulf %264, %274 : vector<16x128xf32>
    %285 = arith.addf %283, %284 : vector<16x128xf32>
    %286 = math.tanh %285 : vector<16x128xf32>
    %287 = arith.mulf %282, %286 : vector<16x128xf32>
    %c7_i32 = arith.constant 7 : i32
    %c16_i32_100 = arith.constant 16 : i32
    %288 = arith.muli %c7_i32, %c16_i32_100 : i32
    %289 = tpu.assume_multiple %288, 16 : i32
    %290 = arith.index_cast %289 : i32 to index
    %c0_101 = arith.constant 0 : index
    %291 = vector.load %arg11[%290, %c0_101] : memref<128x512xbf16, #tpu.memory_space<vmem>>, vector<16x512xbf16>
    %292 = arith.truncf %287 : vector<16x128xf32> to vector<16x128xbf16>
    %cst_102 = arith.constant dense<0.000000e+00> : vector<16x512xf32>
    %293 = tpu.matmul %292, %12, %cst_102 {dimension_numbers = #tpu.dot_dimension_numbers<[1], [0], [0], [1], [0, 0, 1, 1], [], []>} : vector<16x128xbf16>, vector<128x512xbf16>, vector<16x512xf32> -> vector<16x512xf32>
    %294 = arith.extf %291 : vector<16x512xbf16> to vector<16x512xf32>
    %295 = arith.addf %294, %293 : vector<16x512xf32>
    %296 = vector.extract_strided_slice %295 {offsets = [0, 0], sizes = [16, 128], strides = [1, 1]} : vector<16x512xf32> to vector<16x128xf32>
    %cst_103 = arith.constant 5.000000e-01 : f32
    %297 = vector.broadcast %cst_103 : f32 to vector<16x128xf32>
    %298 = arith.mulf %297, %296 : vector<16x128xf32>
    %299 = math.tanh %298 : vector<16x128xf32>
    %cst_104 = arith.constant 5.000000e-01 : f32
    %300 = vector.broadcast %cst_104 : f32 to vector<16x128xf32>
    %301 = arith.mulf %300, %299 : vector<16x128xf32>
    %cst_105 = arith.constant 5.000000e-01 : f32
    %302 = vector.broadcast %cst_105 : f32 to vector<16x128xf32>
    %303 = arith.addf %301, %302 : vector<16x128xf32>
    %304 = vector.extract_strided_slice %295 {offsets = [0, 128], sizes = [16, 128], strides = [1, 1]} : vector<16x512xf32> to vector<16x128xf32>
    %cst_106 = arith.constant 5.000000e-01 : f32
    %305 = vector.broadcast %cst_106 : f32 to vector<16x128xf32>
    %306 = arith.mulf %305, %304 : vector<16x128xf32>
    %307 = math.tanh %306 : vector<16x128xf32>
    %cst_107 = arith.constant 5.000000e-01 : f32
    %308 = vector.broadcast %cst_107 : f32 to vector<16x128xf32>
    %309 = arith.mulf %308, %307 : vector<16x128xf32>
    %cst_108 = arith.constant 5.000000e-01 : f32
    %310 = vector.broadcast %cst_108 : f32 to vector<16x128xf32>
    %311 = arith.addf %309, %310 : vector<16x128xf32>
    %312 = vector.extract_strided_slice %295 {offsets = [0, 256], sizes = [16, 128], strides = [1, 1]} : vector<16x512xf32> to vector<16x128xf32>
    %313 = math.tanh %312 : vector<16x128xf32>
    %314 = vector.extract_strided_slice %295 {offsets = [0, 384], sizes = [16, 128], strides = [1, 1]} : vector<16x512xf32> to vector<16x128xf32>
    %cst_109 = arith.constant 5.000000e-01 : f32
    %315 = vector.broadcast %cst_109 : f32 to vector<16x128xf32>
    %316 = arith.mulf %315, %314 : vector<16x128xf32>
    %317 = math.tanh %316 : vector<16x128xf32>
    %cst_110 = arith.constant 5.000000e-01 : f32
    %318 = vector.broadcast %cst_110 : f32 to vector<16x128xf32>
    %319 = arith.mulf %318, %317 : vector<16x128xf32>
    %cst_111 = arith.constant 5.000000e-01 : f32
    %320 = vector.broadcast %cst_111 : f32 to vector<16x128xf32>
    %321 = arith.addf %319, %320 : vector<16x128xf32>
    %322 = arith.mulf %311, %285 : vector<16x128xf32>
    %323 = arith.mulf %303, %313 : vector<16x128xf32>
    %324 = arith.addf %322, %323 : vector<16x128xf32>
    %325 = math.tanh %324 : vector<16x128xf32>
    %326 = arith.mulf %321, %325 : vector<16x128xf32>
    %c8_i32 = arith.constant 8 : i32
    %c0_112 = arith.constant 0 : index
    %c0_113 = arith.constant 0 : index
    %327 = vector.load %arg9[%c0_112, %c0_113] : memref<16x128xf32, #tpu.memory_space<vmem>>, vector<16x128xf32>
    tpu.vector_store %arg9[%c0_112, %c0_113], %326 {strides = array<i32>} : memref<16x128xf32, #tpu.memory_space<vmem>>, vector<16x128xf32>,
    %c0_114 = arith.constant 0 : index
    %c0_115 = arith.constant 0 : index
    %328 = vector.load %arg10[%c0_114, %c0_115] : memref<16x128xf32, #tpu.memory_space<vmem>>, vector<16x128xf32>
    tpu.vector_store %arg10[%c0_114, %c0_115], %324 {strides = array<i32>} : memref<16x128xf32, #tpu.memory_space<vmem>>, vector<16x128xf32>,
    %c0_i32_116 = arith.constant 0 : i32
    %329 = arith.cmpi eq, %arg1, %c0_i32_116 : i32
    %330 = arith.extui %329 : i1 to i32
    %c0_i32_117 = arith.constant 0 : i32
    %331 = arith.cmpi ne, %330, %c0_i32_117 : i32
    scf.if %331 {
      %332 = arith.truncf %326 : vector<16x128xf32> to vector<16x128xbf16>
      %c0_118 = arith.constant 0 : index
      %c0_119 = arith.constant 0 : index
      %333 = vector.load %arg6[%c0_118, %c0_119] : memref<128x128xbf16, #tpu.memory_space<vmem>>, vector<128x128xbf16>
      %cst_120 = arith.constant dense<0.000000e+00> : vector<16x128xf32>
      %334 = tpu.matmul %332, %333, %cst_120 {dimension_numbers = #tpu.dot_dimension_numbers<[1], [0], [0], [1], [0, 0, 1, 1], [], []>} : vector<16x128xbf16>, vector<128x128xbf16>, vector<16x128xf32> -> vector<16x128xf32>
      %c0_121 = arith.constant 0 : index
      %c0_122 = arith.constant 0 : index
      %335 = vector.load %arg7[%c0_121, %c0_122] : memref<1x128xf32, #tpu.memory_space<vmem>>, vector<1x128xf32>
      %336 = vector.broadcast %335 : vector<1x128xf32> to vector<16x128xf32>
      %337 = arith.addf %334, %336 : vector<16x128xf32>
      %c0_123 = arith.constant 0 : index
      %c0_124 = arith.constant 0 : index
      %338 = vector.load %arg8[%c0_123, %c0_124] : memref<16x128xf32, #tpu.memory_space<vmem>>, vector<16x128xf32>
      tpu.vector_store %arg8[%c0_123, %c0_124], %337 {strides = array<i32>} : memref<16x128xf32, #tpu.memory_space<vmem>>, vector<16x128xf32>,
    } else {
    }
    return
  }
  func.func @transform_0(%arg0: i32, %arg1: i32) -> (i32, i32, i32, i32) {
    %c0_i32 = arith.constant 0 : i32
    %c0_i32_0 = arith.constant 0 : i32
    %c0_i32_1 = arith.constant 0 : i32
    return %arg0, %arg1, %c0_i32, %c0_i32_0 : i32, i32, i32, i32
  }
  func.func @transform_1(%arg0: i32, %arg1: i32) -> (i32, i32) {
    %c0_i32 = arith.constant 0 : i32
    %c0_i32_0 = arith.constant 0 : i32
    %c0_i32_1 = arith.constant 0 : i32
    return %c0_i32, %c0_i32_0 : i32, i32
  }
  func.func @transform_2(%arg0: i32, %arg1: i32) -> (i32, i32) {
    %c0_i32 = arith.constant 0 : i32
    %c0_i32_0 = arith.constant 0 : i32
    %c0_i32_1 = arith.constant 0 : i32
    return %c0_i32, %c0_i32_0 : i32, i32
  }
  func.func @transform_3(%arg0: i32, %arg1: i32) -> (i32, i32) {
    %c0_i32 = arith.constant 0 : i32
    %c0_i32_0 = arith.constant 0 : i32
    %c0_i32_1 = arith.constant 0 : i32
    return %c0_i32, %c0_i32_0 : i32, i32
  }
  func.func @transform_4(%arg0: i32, %arg1: i32) -> (i32, i32) {
    %c0_i32 = arith.constant 0 : i32
    %c0_i32_0 = arith.constant 0 : i32
    %c0_i32_1 = arith.constant 0 : i32
    return %c0_i32, %c0_i32_0 : i32, i32
  }
  func.func @transform_5(%arg0: i32, %arg1: i32) -> (i32, i32) {
    %c0_i32 = arith.constant 0 : i32
    %c0_i32_0 = arith.constant 0 : i32
    %c0_i32_1 = arith.constant 0 : i32
    return %c0_i32, %c0_i32_0 : i32, i32
  }
  func.func @transform_6(%arg0: i32, %arg1: i32) -> (i32, i32) {
    %c0_i32 = arith.constant 0 : i32
    %c0_i32_0 = arith.constant 0 : i32
    return %arg0, %c0_i32 : i32, i32
  }
}

module attributes {stable_mosaic.version = 11 : i64} {
  func.func @kernel(%arg0: i32, %arg1: i32, %arg2: memref<1x1x128x16xbf16, #tpu.memory_space<vmem>>, %arg3: memref<16x512xbf16, #tpu.memory_space<vmem>>, %arg4: memref<128x512xbf16, #tpu.memory_space<vmem>>, %arg5: memref<1x512xf32, #tpu.memory_space<vmem>>, %arg6: memref<128x128xbf16, #tpu.memory_space<vmem>>, %arg7: memref<1x128xf32, #tpu.memory_space<vmem>>, %arg8: memref<16x128xf32, #tpu.memory_space<vmem>>, %arg9: memref<16x128xf32, #tpu.memory_space<vmem>>, %arg10: memref<16x128xf32, #tpu.memory_space<vmem>>, %arg11: memref<128x512xbf16, #tpu.memory_space<vmem>>) attributes {dimension_semantics = [#tpu.dimension_semantics<parallel>, #tpu.dimension_semantics<arbitrary>], iteration_bounds = array<i64: 1, 1>, scalar_prefetch = 0 : i64, scratch_operands = 3 : i64, tpu.core_type = #tpu.core_type<tc>, window_params = [{transform_indices = @transform_0, window_bounds = array<i64: 1, 1, 128, 16>}, {pipeline_mode = #tpu.pipeline_mode<synchronous>, transform_indices = @transform_1, window_bounds = array<i64: 16, 512>}, {pipeline_mode = #tpu.pipeline_mode<synchronous>, transform_indices = @transform_2, window_bounds = array<i64: 128, 512>}, {pipeline_mode = #tpu.pipeline_mode<synchronous>, transform_indices = @transform_3, window_bounds = array<i64: 1, 512>}, {pipeline_mode = #tpu.pipeline_mode<synchronous>, transform_indices = @transform_4, window_bounds = array<i64: 128, 128>}, {pipeline_mode = #tpu.pipeline_mode<synchronous>, transform_indices = @transform_5, window_bounds = array<i64: 1, 128>}, {transform_indices = @transform_6, window_bounds = array<i64: 16, 128>}]} {
    %c0_i32 = arith.constant 0 : i32
    %0 = arith.cmpi eq, %arg1, %c0_i32 : i32
    %1 = arith.extui %0 : i1 to i32
    %c0_i32_0 = arith.constant 0 : i32
    %2 = arith.cmpi ne, %1, %c0_i32_0 : i32
    scf.if %2 {
      %cst_118 = arith.constant 0.000000e+00 : f32
      %332 = vector.broadcast %cst_118 : f32 to vector<16x128xf32>
      %c0_119 = arith.constant 0 : index
      %c0_120 = arith.constant 0 : index
      %333 = vector.load %arg9[%c0_119, %c0_120] : memref<16x128xf32, #tpu.memory_space<vmem>>, vector<16x128xf32>
      tpu.vector_store %arg9[%c0_119, %c0_120], %332 {strides = array<i32>} : memref<16x128xf32, #tpu.memory_space<vmem>>, vector<16x128xf32>,
      %cst_121 = arith.constant 0.000000e+00 : f32
      %334 = vector.broadcast %cst_121 : f32 to vector<16x128xf32>
      %c0_122 = arith.constant 0 : index
      %c0_123 = arith.constant 0 : index
      %335 = vector.load %arg10[%c0_122, %c0_123] : memref<16x128xf32, #tpu.memory_space<vmem>>, vector<16x128xf32>
      tpu.vector_store %arg10[%c0_122, %c0_123], %334 {strides = array<i32>} : memref<16x128xf32, #tpu.memory_space<vmem>>, vector<16x128xf32>,
    } else {
    }
    %c0 = arith.constant 0 : index
    %c0_1 = arith.constant 0 : index
    %c0_2 = arith.constant 0 : index
    %c0_3 = arith.constant 0 : index
    %3 = vector.load %arg2[%c0, %c0_1, %c0_2, %c0_3] : memref<1x1x128x16xbf16, #tpu.memory_space<vmem>>, vector<1x1x128x16xbf16>
    %4 = vector.shape_cast %3 : vector<1x1x128x16xbf16> to vector<128x16xbf16>
    %c0_4 = arith.constant 0 : index
    %c0_5 = arith.constant 0 : index
    %5 = vector.load %arg3[%c0_4, %c0_5] : memref<16x512xbf16, #tpu.memory_space<vmem>>, vector<16x512xbf16>
    %cst = arith.constant dense<0.000000e+00> : vector<128x512xf32>
    %6 = tpu.matmul %4, %5, %cst {dimension_numbers = #tpu.dot_dimension_numbers<[1], [0], [0], [1], [0, 0, 1, 1], [], []>} : vector<128x16xbf16>, vector<16x512xbf16>, vector<128x512xf32> -> vector<128x512xf32>
    %c0_6 = arith.constant 0 : index
    %c0_7 = arith.constant 0 : index
    %7 = vector.load %arg5[%c0_6, %c0_7] : memref<1x512xf32, #tpu.memory_space<vmem>>, vector<1x512xf32>
    %8 = vector.broadcast %7 : vector<1x512xf32> to vector<128x512xf32>
    %9 = arith.addf %6, %8 : vector<128x512xf32>
    %10 = arith.truncf %9 : vector<128x512xf32> to vector<128x512xbf16>
    %c0_8 = arith.constant 0 : index
    %c0_9 = arith.constant 0 : index
    %11 = vector.load %arg11[%c0_8, %c0_9] : memref<128x512xbf16, #tpu.memory_space<vmem>>, vector<128x512xbf16>
    tpu.vector_store %arg11[%c0_8, %c0_9], %10 {strides = array<i32>} : memref<128x512xbf16, #tpu.memory_space<vmem>>, vector<128x512xbf16>,
    %c0_10 = arith.constant 0 : index
    %c0_11 = arith.constant 0 : index
    %12 = vector.load %arg4[%c0_10, %c0_11] : memref<128x512xbf16, #tpu.memory_space<vmem>>, vector<128x512xbf16>
    %c0_12 = arith.constant 0 : index
    %c0_13 = arith.constant 0 : index
    %13 = vector.load %arg9[%c0_12, %c0_13] : memref<16x128xf32, #tpu.memory_space<vmem>>, vector<16x128xf32>
    %c0_14 = arith.constant 0 : index
    %c0_15 = arith.constant 0 : index
    %14 = vector.load %arg10[%c0_14, %c0_15] : memref<16x128xf32, #tpu.memory_space<vmem>>, vector<16x128xf32>
    %c0_i32_16 = arith.constant 0 : i32
    %c16_i32 = arith.constant 16 : i32
    %15 = arith.muli %c0_i32_16, %c16_i32 : i32
    %16 = tpu.assume_multiple %15, 16 : i32
    %17 = arith.index_cast %16 : i32 to index
    %c0_17 = arith.constant 0 : index
    %18 = vector.load %arg11[%17, %c0_17] : memref<128x512xbf16, #tpu.memory_space<vmem>>, vector<16x512xbf16>
    %19 = arith.truncf %13 : vector<16x128xf32> to vector<16x128xbf16>
    %cst_18 = arith.constant dense<0.000000e+00> : vector<16x512xf32>
    %20 = tpu.matmul %19, %12, %cst_18 {dimension_numbers = #tpu.dot_dimension_numbers<[1], [0], [0], [1], [0, 0, 1, 1], [], []>} : vector<16x128xbf16>, vector<128x512xbf16>, vector<16x512xf32> -> vector<16x512xf32>
    %21 = arith.extf %18 : vector<16x512xbf16> to vector<16x512xf32>
    %22 = arith.addf %21, %20 : vector<16x512xf32>
    %23 = vector.extract_strided_slice %22 {offsets = [0, 0], sizes = [16, 128], strides = [1, 1]} : vector<16x512xf32> to vector<16x128xf32>
    %cst_19 = arith.constant 5.000000e-01 : f32
    %24 = vector.broadcast %cst_19 : f32 to vector<16x128xf32>
    %25 = arith.mulf %24, %23 : vector<16x128xf32>
    %26 = math.tanh %25 : vector<16x128xf32>
    %cst_20 = arith.constant 5.000000e-01 : f32
    %27 = vector.broadcast %cst_20 : f32 to vector<16x128xf32>
    %28 = arith.mulf %27, %26 : vector<16x128xf32>
    %cst_21 = arith.constant 5.000000e-01 : f32
    %29 = vector.broadcast %cst_21 : f32 to vector<16x128xf32>
    %30 = arith.addf %28, %29 : vector<16x128xf32>
    %31 = vector.extract_strided_slice %22 {offsets = [0, 128], sizes = [16, 128], strides = [1, 1]} : vector<16x512xf32> to vector<16x128xf32>
    %cst_22 = arith.constant 5.000000e-01 : f32
    %32 = vector.broadcast %cst_22 : f32 to vector<16x128xf32>
    %33 = arith.mulf %32, %31 : vector<16x128xf32>
    %34 = math.tanh %33 : vector<16x128xf32>
    %cst_23 = arith.constant 5.000000e-01 : f32
    %35 = vector.broadcast %cst_23 : f32 to vector<16x128xf32>
    %36 = arith.mulf %35, %34 : vector<16x128xf32>
    %cst_24 = arith.constant 5.000000e-01 : f32
    %37 = vector.broadcast %cst_24 : f32 to vector<16x128xf32>
    %38 = arith.addf %36, %37 : vector<16x128xf32>
    %39 = vector.extract_strided_slice %22 {offsets = [0, 256], sizes = [16, 128], strides = [1, 1]} : vector<16x512xf32> to vector<16x128xf32>
    %40 = math.tanh %39 : vector<16x128xf32>
    %41 = vector.extract_strided_slice %22 {offsets = [0, 384], sizes = [16, 128], strides = [1, 1]} : vector<16x512xf32> to vector<16x128xf32>
    %cst_25 = arith.constant 5.000000e-01 : f32
    %42 = vector.broadcast %cst_25 : f32 to vector<16x128xf32>
    %43 = arith.mulf %42, %41 : vector<16x128xf32>
    %44 = math.tanh %43 : vector<16x128xf32>
    %cst_26 = arith.constant 5.000000e-01 : f32
    %45 = vector.broadcast %cst_26 : f32 to vector<16x128xf32>
    %46 = arith.mulf %45, %44 : vector<16x128xf32>
    %cst_27 = arith.constant 5.000000e-01 : f32
    %47 = vector.broadcast %cst_27 : f32 to vector<16x128xf32>
    %48 = arith.addf %46, %47 : vector<16x128xf32>
    %49 = arith.mulf %38, %14 : vector<16x128xf32>
    %50 = arith.mulf %30, %40 : vector<16x128xf32>
    %51 = arith.addf %49, %50 : vector<16x128xf32>
    %52 = math.tanh %51 : vector<16x128xf32>
    %53 = arith.mulf %48, %52 : vector<16x128xf32>
    %c1_i32 = arith.constant 1 : i32
    %c16_i32_28 = arith.constant 16 : i32
    %54 = arith.muli %c1_i32, %c16_i32_28 : i32
    %55 = tpu.assume_multiple %54, 16 : i32
    %56 = arith.index_cast %55 : i32 to index
    %c0_29 = arith.constant 0 : index
    %57 = vector.load %arg11[%56, %c0_29] : memref<128x512xbf16, #tpu.memory_space<vmem>>, vector<16x512xbf16>
    %58 = arith.truncf %53 : vector<16x128xf32> to vector<16x128xbf16>
    %cst_30 = arith.constant dense<0.000000e+00> : vector<16x512xf32>
    %59 = tpu.matmul %58, %12, %cst_30 {dimension_numbers = #tpu.dot_dimension_numbers<[1], [0], [0], [1], [0, 0, 1, 1], [], []>} : vector<16x128xbf16>, vector<128x512xbf16>, vector<16x512xf32> -> vector<16x512xf32>
    %60 = arith.extf %57 : vector<16x512xbf16> to vector<16x512xf32>
    %61 = arith.addf %60, %59 : vector<16x512xf32>
    %62 = vector.extract_strided_slice %61 {offsets = [0, 0], sizes = [16, 128], strides = [1, 1]} : vector<16x512xf32> to vector<16x128xf32>
    %cst_31 = arith.constant 5.000000e-01 : f32
    %63 = vector.broadcast %cst_31 : f32 to vector<16x128xf32>
    %64 = arith.mulf %63, %62 : vector<16x128xf32>
    %65 = math.tanh %64 : vector<16x128xf32>
    %cst_32 = arith.constant 5.000000e-01 : f32
    %66 = vector.broadcast %cst_32 : f32 to vector<16x128xf32>
    %67 = arith.mulf %66, %65 : vector<16x128xf32>
    %cst_33 = arith.constant 5.000000e-01 : f32
    %68 = vector.broadcast %cst_33 : f32 to vector<16x128xf32>
    %69 = arith.addf %67, %68 : vector<16x128xf32>
    %70 = vector.extract_strided_slice %61 {offsets = [0, 128], sizes = [16, 128], strides = [1, 1]} : vector<16x512xf32> to vector<16x128xf32>
    %cst_34 = arith.constant 5.000000e-01 : f32
    %71 = vector.broadcast %cst_34 : f32 to vector<16x128xf32>
    %72 = arith.mulf %71, %70 : vector<16x128xf32>
    %73 = math.tanh %72 : vector<16x128xf32>
    %cst_35 = arith.constant 5.000000e-01 : f32
    %74 = vector.broadcast %cst_35 : f32 to vector<16x128xf32>
    %75 = arith.mulf %74, %73 : vector<16x128xf32>
    %cst_36 = arith.constant 5.000000e-01 : f32
    %76 = vector.broadcast %cst_36 : f32 to vector<16x128xf32>
    %77 = arith.addf %75, %76 : vector<16x128xf32>
    %78 = vector.extract_strided_slice %61 {offsets = [0, 256], sizes = [16, 128], strides = [1, 1]} : vector<16x512xf32> to vector<16x128xf32>
    %79 = math.tanh %78 : vector<16x128xf32>
    %80 = vector.extract_strided_slice %61 {offsets = [0, 384], sizes = [16, 128], strides = [1, 1]} : vector<16x512xf32> to vector<16x128xf32>
    %cst_37 = arith.constant 5.000000e-01 : f32
    %81 = vector.broadcast %cst_37 : f32 to vector<16x128xf32>
    %82 = arith.mulf %81, %80 : vector<16x128xf32>
    %83 = math.tanh %82 : vector<16x128xf32>
    %cst_38 = arith.constant 5.000000e-01 : f32
    %84 = vector.broadcast %cst_38 : f32 to vector<16x128xf32>
    %85 = arith.mulf %84, %83 : vector<16x128xf32>
    %cst_39 = arith.constant 5.000000e-01 : f32
    %86 = vector.broadcast %cst_39 : f32 to vector<16x128xf32>
    %87 = arith.addf %85, %86 : vector<16x128xf32>
    %88 = arith.mulf %77, %51 : vector<16x128xf32>
    %89 = arith.mulf %69, %79 : vector<16x128xf32>
    %90 = arith.addf %88, %89 : vector<16x128xf32>
    %91 = math.tanh %90 : vector<16x128xf32>
    %92 = arith.mulf %87, %91 : vector<16x128xf32>
    %c2_i32 = arith.constant 2 : i32
    %c16_i32_40 = arith.constant 16 : i32
    %93 = arith.muli %c2_i32, %c16_i32_40 : i32
    %94 = tpu.assume_multiple %93, 16 : i32
    %95 = arith.index_cast %94 : i32 to index
    %c0_41 = arith.constant 0 : index
    %96 = vector.load %arg11[%95, %c0_41] : memref<128x512xbf16, #tpu.memory_space<vmem>>, vector<16x512xbf16>
    %97 = arith.truncf %92 : vector<16x128xf32> to vector<16x128xbf16>
    %cst_42 = arith.constant dense<0.000000e+00> : vector<16x512xf32>
    %98 = tpu.matmul %97, %12, %cst_42 {dimension_numbers = #tpu.dot_dimension_numbers<[1], [0], [0], [1], [0, 0, 1, 1], [], []>} : vector<16x128xbf16>, vector<128x512xbf16>, vector<16x512xf32> -> vector<16x512xf32>
    %99 = arith.extf %96 : vector<16x512xbf16> to vector<16x512xf32>
    %100 = arith.addf %99, %98 : vector<16x512xf32>
    %101 = vector.extract_strided_slice %100 {offsets = [0, 0], sizes = [16, 128], strides = [1, 1]} : vector<16x512xf32> to vector<16x128xf32>
    %cst_43 = arith.constant 5.000000e-01 : f32
    %102 = vector.broadcast %cst_43 : f32 to vector<16x128xf32>
    %103 = arith.mulf %102, %101 : vector<16x128xf32>
    %104 = math.tanh %103 : vector<16x128xf32>
    %cst_44 = arith.constant 5.000000e-01 : f32
    %105 = vector.broadcast %cst_44 : f32 to vector<16x128xf32>
    %106 = arith.mulf %105, %104 : vector<16x128xf32>
    %cst_45 = arith.constant 5.000000e-01 : f32
    %107 = vector.broadcast %cst_45 : f32 to vector<16x128xf32>
    %108 = arith.addf %106, %107 : vector<16x128xf32>
    %109 = vector.extract_strided_slice %100 {offsets = [0, 128], sizes = [16, 128], strides = [1, 1]} : vector<16x512xf32> to vector<16x128xf32>
    %cst_46 = arith.constant 5.000000e-01 : f32
    %110 = vector.broadcast %cst_46 : f32 to vector<16x128xf32>
    %111 = arith.mulf %110, %109 : vector<16x128xf32>
    %112 = math.tanh %111 : vector<16x128xf32>
    %cst_47 = arith.constant 5.000000e-01 : f32
    %113 = vector.broadcast %cst_47 : f32 to vector<16x128xf32>
    %114 = arith.mulf %113, %112 : vector<16x128xf32>
    %cst_48 = arith.constant 5.000000e-01 : f32
    %115 = vector.broadcast %cst_48 : f32 to vector<16x128xf32>
    %116 = arith.addf %114, %115 : vector<16x128xf32>
    %117 = vector.extract_strided_slice %100 {offsets = [0, 256], sizes = [16, 128], strides = [1, 1]} : vector<16x512xf32> to vector<16x128xf32>
    %118 = math.tanh %117 : vector<16x128xf32>
    %119 = vector.extract_strided_slice %100 {offsets = [0, 384], sizes = [16, 128], strides = [1, 1]} : vector<16x512xf32> to vector<16x128xf32>
    %cst_49 = arith.constant 5.000000e-01 : f32
    %120 = vector.broadcast %cst_49 : f32 to vector<16x128xf32>
    %121 = arith.mulf %120, %119 : vector<16x128xf32>
    %122 = math.tanh %121 : vector<16x128xf32>
    %cst_50 = arith.constant 5.000000e-01 : f32
    %123 = vector.broadcast %cst_50 : f32 to vector<16x128xf32>
    %124 = arith.mulf %123, %122 : vector<16x128xf32>
    %cst_51 = arith.constant 5.000000e-01 : f32
    %125 = vector.broadcast %cst_51 : f32 to vector<16x128xf32>
    %126 = arith.addf %124, %125 : vector<16x128xf32>
    %127 = arith.mulf %116, %90 : vector<16x128xf32>
    %128 = arith.mulf %108, %118 : vector<16x128xf32>
    %129 = arith.addf %127, %128 : vector<16x128xf32>
    %130 = math.tanh %129 : vector<16x128xf32>
    %131 = arith.mulf %126, %130 : vector<16x128xf32>
    %c3_i32 = arith.constant 3 : i32
    %c16_i32_52 = arith.constant 16 : i32
    %132 = arith.muli %c3_i32, %c16_i32_52 : i32
    %133 = tpu.assume_multiple %132, 16 : i32
    %134 = arith.index_cast %133 : i32 to index
    %c0_53 = arith.constant 0 : index
    %135 = vector.load %arg11[%134, %c0_53] : memref<128x512xbf16, #tpu.memory_space<vmem>>, vector<16x512xbf16>
    %136 = arith.truncf %131 : vector<16x128xf32> to vector<16x128xbf16>
    %cst_54 = arith.constant dense<0.000000e+00> : vector<16x512xf32>
    %137 = tpu.matmul %136, %12, %cst_54 {dimension_numbers = #tpu.dot_dimension_numbers<[1], [0], [0], [1], [0, 0, 1, 1], [], []>} : vector<16x128xbf16>, vector<128x512xbf16>, vector<16x512xf32> -> vector<16x512xf32>
    %138 = arith.extf %135 : vector<16x512xbf16> to vector<16x512xf32>
    %139 = arith.addf %138, %137 : vector<16x512xf32>
    %140 = vector.extract_strided_slice %139 {offsets = [0, 0], sizes = [16, 128], strides = [1, 1]} : vector<16x512xf32> to vector<16x128xf32>
    %cst_55 = arith.constant 5.000000e-01 : f32
    %141 = vector.broadcast %cst_55 : f32 to vector<16x128xf32>
    %142 = arith.mulf %141, %140 : vector<16x128xf32>
    %143 = math.tanh %142 : vector<16x128xf32>
    %cst_56 = arith.constant 5.000000e-01 : f32
    %144 = vector.broadcast %cst_56 : f32 to vector<16x128xf32>
    %145 = arith.mulf %144, %143 : vector<16x128xf32>
    %cst_57 = arith.constant 5.000000e-01 : f32
    %146 = vector.broadcast %cst_57 : f32 to vector<16x128xf32>
    %147 = arith.addf %145, %146 : vector<16x128xf32>
    %148 = vector.extract_strided_slice %139 {offsets = [0, 128], sizes = [16, 128], strides = [1, 1]} : vector<16x512xf32> to vector<16x128xf32>
    %cst_58 = arith.constant 5.000000e-01 : f32
    %149 = vector.broadcast %cst_58 : f32 to vector<16x128xf32>
    %150 = arith.mulf %149, %148 : vector<16x128xf32>
    %151 = math.tanh %150 : vector<16x128xf32>
    %cst_59 = arith.constant 5.000000e-01 : f32
    %152 = vector.broadcast %cst_59 : f32 to vector<16x128xf32>
    %153 = arith.mulf %152, %151 : vector<16x128xf32>
    %cst_60 = arith.constant 5.000000e-01 : f32
    %154 = vector.broadcast %cst_60 : f32 to vector<16x128xf32>
    %155 = arith.addf %153, %154 : vector<16x128xf32>
    %156 = vector.extract_strided_slice %139 {offsets = [0, 256], sizes = [16, 128], strides = [1, 1]} : vector<16x512xf32> to vector<16x128xf32>
    %157 = math.tanh %156 : vector<16x128xf32>
    %158 = vector.extract_strided_slice %139 {offsets = [0, 384], sizes = [16, 128], strides = [1, 1]} : vector<16x512xf32> to vector<16x128xf32>
    %cst_61 = arith.constant 5.000000e-01 : f32
    %159 = vector.broadcast %cst_61 : f32 to vector<16x128xf32>
    %160 = arith.mulf %159, %158 : vector<16x128xf32>
    %161 = math.tanh %160 : vector<16x128xf32>
    %cst_62 = arith.constant 5.000000e-01 : f32
    %162 = vector.broadcast %cst_62 : f32 to vector<16x128xf32>
    %163 = arith.mulf %162, %161 : vector<16x128xf32>
    %cst_63 = arith.constant 5.000000e-01 : f32
    %164 = vector.broadcast %cst_63 : f32 to vector<16x128xf32>
    %165 = arith.addf %163, %164 : vector<16x128xf32>
    %166 = arith.mulf %155, %129 : vector<16x128xf32>
    %167 = arith.mulf %147, %157 : vector<16x128xf32>
    %168 = arith.addf %166, %167 : vector<16x128xf32>
    %169 = math.tanh %168 : vector<16x128xf32>
    %170 = arith.mulf %165, %169 : vector<16x128xf32>
    %c4_i32 = arith.constant 4 : i32
    %c16_i32_64 = arith.constant 16 : i32
    %171 = arith.muli %c4_i32, %c16_i32_64 : i32
    %172 = tpu.assume_multiple %171, 16 : i32
    %173 = arith.index_cast %172 : i32 to index
    %c0_65 = arith.constant 0 : index
    %174 = vector.load %arg11[%173, %c0_65] : memref<128x512xbf16, #tpu.memory_space<vmem>>, vector<16x512xbf16>
    %175 = arith.truncf %170 : vector<16x128xf32> to vector<16x128xbf16>
    %cst_66 = arith.constant dense<0.000000e+00> : vector<16x512xf32>
    %176 = tpu.matmul %175, %12, %cst_66 {dimension_numbers = #tpu.dot_dimension_numbers<[1], [0], [0], [1], [0, 0, 1, 1], [], []>} : vector<16x128xbf16>, vector<128x512xbf16>, vector<16x512xf32> -> vector<16x512xf32>
    %177 = arith.extf %174 : vector<16x512xbf16> to vector<16x512xf32>
    %178 = arith.addf %177, %176 : vector<16x512xf32>
    %179 = vector.extract_strided_slice %178 {offsets = [0, 0], sizes = [16, 128], strides = [1, 1]} : vector<16x512xf32> to vector<16x128xf32>
    %cst_67 = arith.constant 5.000000e-01 : f32
    %180 = vector.broadcast %cst_67 : f32 to vector<16x128xf32>
    %181 = arith.mulf %180, %179 : vector<16x128xf32>
    %182 = math.tanh %181 : vector<16x128xf32>
    %cst_68 = arith.constant 5.000000e-01 : f32
    %183 = vector.broadcast %cst_68 : f32 to vector<16x128xf32>
    %184 = arith.mulf %183, %182 : vector<16x128xf32>
    %cst_69 = arith.constant 5.000000e-01 : f32
    %185 = vector.broadcast %cst_69 : f32 to vector<16x128xf32>
    %186 = arith.addf %184, %185 : vector<16x128xf32>
    %187 = vector.extract_strided_slice %178 {offsets = [0, 128], sizes = [16, 128], strides = [1, 1]} : vector<16x512xf32> to vector<16x128xf32>
    %cst_70 = arith.constant 5.000000e-01 : f32
    %188 = vector.broadcast %cst_70 : f32 to vector<16x128xf32>
    %189 = arith.mulf %188, %187 : vector<16x128xf32>
    %190 = math.tanh %189 : vector<16x128xf32>
    %cst_71 = arith.constant 5.000000e-01 : f32
    %191 = vector.broadcast %cst_71 : f32 to vector<16x128xf32>
    %192 = arith.mulf %191, %190 : vector<16x128xf32>
    %cst_72 = arith.constant 5.000000e-01 : f32
    %193 = vector.broadcast %cst_72 : f32 to vector<16x128xf32>
    %194 = arith.addf %192, %193 : vector<16x128xf32>
    %195 = vector.extract_strided_slice %178 {offsets = [0, 256], sizes = [16, 128], strides = [1, 1]} : vector<16x512xf32> to vector<16x128xf32>
    %196 = math.tanh %195 : vector<16x128xf32>
    %197 = vector.extract_strided_slice %178 {offsets = [0, 384], sizes = [16, 128], strides = [1, 1]} : vector<16x512xf32> to vector<16x128xf32>
    %cst_73 = arith.constant 5.000000e-01 : f32
    %198 = vector.broadcast %cst_73 : f32 to vector<16x128xf32>
    %199 = arith.mulf %198, %197 : vector<16x128xf32>
    %200 = math.tanh %199 : vector<16x128xf32>
    %cst_74 = arith.constant 5.000000e-01 : f32
    %201 = vector.broadcast %cst_74 : f32 to vector<16x128xf32>
    %202 = arith.mulf %201, %200 : vector<16x128xf32>
    %cst_75 = arith.constant 5.000000e-01 : f32
    %203 = vector.broadcast %cst_75 : f32 to vector<16x128xf32>
    %204 = arith.addf %202, %203 : vector<16x128xf32>
    %205 = arith.mulf %194, %168 : vector<16x128xf32>
    %206 = arith.mulf %186, %196 : vector<16x128xf32>
    %207 = arith.addf %205, %206 : vector<16x128xf32>
    %208 = math.tanh %207 : vector<16x128xf32>
    %209 = arith.mulf %204, %208 : vector<16x128xf32>
    %c5_i32 = arith.constant 5 : i32
    %c16_i32_76 = arith.constant 16 : i32
    %210 = arith.muli %c5_i32, %c16_i32_76 : i32
    %211 = tpu.assume_multiple %210, 16 : i32
    %212 = arith.index_cast %211 : i32 to index
    %c0_77 = arith.constant 0 : index
    %213 = vector.load %arg11[%212, %c0_77] : memref<128x512xbf16, #tpu.memory_space<vmem>>, vector<16x512xbf16>
    %214 = arith.truncf %209 : vector<16x128xf32> to vector<16x128xbf16>
    %cst_78 = arith.constant dense<0.000000e+00> : vector<16x512xf32>
    %215 = tpu.matmul %214, %12, %cst_78 {dimension_numbers = #tpu.dot_dimension_numbers<[1], [0], [0], [1], [0, 0, 1, 1], [], []>} : vector<16x128xbf16>, vector<128x512xbf16>, vector<16x512xf32> -> vector<16x512xf32>
    %216 = arith.extf %213 : vector<16x512xbf16> to vector<16x512xf32>
    %217 = arith.addf %216, %215 : vector<16x512xf32>
    %218 = vector.extract_strided_slice %217 {offsets = [0, 0], sizes = [16, 128], strides = [1, 1]} : vector<16x512xf32> to vector<16x128xf32>
    %cst_79 = arith.constant 5.000000e-01 : f32
    %219 = vector.broadcast %cst_79 : f32 to vector<16x128xf32>
    %220 = arith.mulf %219, %218 : vector<16x128xf32>
    %221 = math.tanh %220 : vector<16x128xf32>
    %cst_80 = arith.constant 5.000000e-01 : f32
    %222 = vector.broadcast %cst_80 : f32 to vector<16x128xf32>
    %223 = arith.mulf %222, %221 : vector<16x128xf32>
    %cst_81 = arith.constant 5.000000e-01 : f32
    %224 = vector.broadcast %cst_81 : f32 to vector<16x128xf32>
    %225 = arith.addf %223, %224 : vector<16x128xf32>
    %226 = vector.extract_strided_slice %217 {offsets = [0, 128], sizes = [16, 128], strides = [1, 1]} : vector<16x512xf32> to vector<16x128xf32>
    %cst_82 = arith.constant 5.000000e-01 : f32
    %227 = vector.broadcast %cst_82 : f32 to vector<16x128xf32>
    %228 = arith.mulf %227, %226 : vector<16x128xf32>
    %229 = math.tanh %228 : vector<16x128xf32>
    %cst_83 = arith.constant 5.000000e-01 : f32
    %230 = vector.broadcast %cst_83 : f32 to vector<16x128xf32>
    %231 = arith.mulf %230, %229 : vector<16x128xf32>
    %cst_84 = arith.constant 5.000000e-01 : f32
    %232 = vector.broadcast %cst_84 : f32 to vector<16x128xf32>
    %233 = arith.addf %231, %232 : vector<16x128xf32>
    %234 = vector.extract_strided_slice %217 {offsets = [0, 256], sizes = [16, 128], strides = [1, 1]} : vector<16x512xf32> to vector<16x128xf32>
    %235 = math.tanh %234 : vector<16x128xf32>
    %236 = vector.extract_strided_slice %217 {offsets = [0, 384], sizes = [16, 128], strides = [1, 1]} : vector<16x512xf32> to vector<16x128xf32>
    %cst_85 = arith.constant 5.000000e-01 : f32
    %237 = vector.broadcast %cst_85 : f32 to vector<16x128xf32>
    %238 = arith.mulf %237, %236 : vector<16x128xf32>
    %239 = math.tanh %238 : vector<16x128xf32>
    %cst_86 = arith.constant 5.000000e-01 : f32
    %240 = vector.broadcast %cst_86 : f32 to vector<16x128xf32>
    %241 = arith.mulf %240, %239 : vector<16x128xf32>
    %cst_87 = arith.constant 5.000000e-01 : f32
    %242 = vector.broadcast %cst_87 : f32 to vector<16x128xf32>
    %243 = arith.addf %241, %242 : vector<16x128xf32>
    %244 = arith.mulf %233, %207 : vector<16x128xf32>
    %245 = arith.mulf %225, %235 : vector<16x128xf32>
    %246 = arith.addf %244, %245 : vector<16x128xf32>
    %247 = math.tanh %246 : vector<16x128xf32>
    %248 = arith.mulf %243, %247 : vector<16x128xf32>
    %c6_i32 = arith.constant 6 : i32
    %c16_i32_88 = arith.constant 16 : i32
    %249 = arith.muli %c6_i32, %c16_i32_88 : i32
    %250 = tpu.assume_multiple %249, 16 : i32
    %251 = arith.index_cast %250 : i32 to index
    %c0_89 = arith.constant 0 : index
    %252 = vector.load %arg11[%251, %c0_89] : memref<128x512xbf16, #tpu.memory_space<vmem>>, vector<16x512xbf16>
    %253 = arith.truncf %248 : vector<16x128xf32> to vector<16x128xbf16>
    %cst_90 = arith.constant dense<0.000000e+00> : vector<16x512xf32>
    %254 = tpu.matmul %253, %12, %cst_90 {dimension_numbers = #tpu.dot_dimension_numbers<[1], [0], [0], [1], [0, 0, 1, 1], [], []>} : vector<16x128xbf16>, vector<128x512xbf16>, vector<16x512xf32> -> vector<16x512xf32>
    %255 = arith.extf %252 : vector<16x512xbf16> to vector<16x512xf32>
    %256 = arith.addf %255, %254 : vector<16x512xf32>
    %257 = vector.extract_strided_slice %256 {offsets = [0, 0], sizes = [16, 128], strides = [1, 1]} : vector<16x512xf32> to vector<16x128xf32>
    %cst_91 = arith.constant 5.000000e-01 : f32
    %258 = vector.broadcast %cst_91 : f32 to vector<16x128xf32>
    %259 = arith.mulf %258, %257 : vector<16x128xf32>
    %260 = math.tanh %259 : vector<16x128xf32>
    %cst_92 = arith.constant 5.000000e-01 : f32
    %261 = vector.broadcast %cst_92 : f32 to vector<16x128xf32>
    %262 = arith.mulf %261, %260 : vector<16x128xf32>
    %cst_93 = arith.constant 5.000000e-01 : f32
    %263 = vector.broadcast %cst_93 : f32 to vector<16x128xf32>
    %264 = arith.addf %262, %263 : vector<16x128xf32>
    %265 = vector.extract_strided_slice %256 {offsets = [0, 128], sizes = [16, 128], strides = [1, 1]} : vector<16x512xf32> to vector<16x128xf32>
    %cst_94 = arith.constant 5.000000e-01 : f32
    %266 = vector.broadcast %cst_94 : f32 to vector<16x128xf32>
    %267 = arith.mulf %266, %265 : vector<16x128xf32>
    %268 = math.tanh %267 : vector<16x128xf32>
    %cst_95 = arith.constant 5.000000e-01 : f32
    %269 = vector.broadcast %cst_95 : f32 to vector<16x128xf32>
    %270 = arith.mulf %269, %268 : vector<16x128xf32>
    %cst_96 = arith.constant 5.000000e-01 : f32
    %271 = vector.broadcast %cst_96 : f32 to vector<16x128xf32>
    %272 = arith.addf %270, %271 : vector<16x128xf32>
    %273 = vector.extract_strided_slice %256 {offsets = [0, 256], sizes = [16, 128], strides = [1, 1]} : vector<16x512xf32> to vector<16x128xf32>
    %274 = math.tanh %273 : vector<16x128xf32>
    %275 = vector.extract_strided_slice %256 {offsets = [0, 384], sizes = [16, 128], strides = [1, 1]} : vector<16x512xf32> to vector<16x128xf32>
    %cst_97 = arith.constant 5.000000e-01 : f32
    %276 = vector.broadcast %cst_97 : f32 to vector<16x128xf32>
    %277 = arith.mulf %276, %275 : vector<16x128xf32>
    %278 = math.tanh %277 : vector<16x128xf32>
    %cst_98 = arith.constant 5.000000e-01 : f32
    %279 = vector.broadcast %cst_98 : f32 to vector<16x128xf32>
    %280 = arith.mulf %279, %278 : vector<16x128xf32>
    %cst_99 = arith.constant 5.000000e-01 : f32
    %281 = vector.broadcast %cst_99 : f32 to vector<16x128xf32>
    %282 = arith.addf %280, %281 : vector<16x128xf32>
    %283 = arith.mulf %272, %246 : vector<16x128xf32>
    %284 = arith.mulf %264, %274 : vector<16x128xf32>
    %285 = arith.addf %283, %284 : vector<16x128xf32>
    %286 = math.tanh %285 : vector<16x128xf32>
    %287 = arith.mulf %282, %286 : vector<16x128xf32>
    %c7_i32 = arith.constant 7 : i32
    %c16_i32_100 = arith.constant 16 : i32
    %288 = arith.muli %c7_i32, %c16_i32_100 : i32
    %289 = tpu.assume_multiple %288, 16 : i32
    %290 = arith.index_cast %289 : i32 to index
    %c0_101 = arith.constant 0 : index
    %291 = vector.load %arg11[%290, %c0_101] : memref<128x512xbf16, #tpu.memory_space<vmem>>, vector<16x512xbf16>
    %292 = arith.truncf %287 : vector<16x128xf32> to vector<16x128xbf16>
    %cst_102 = arith.constant dense<0.000000e+00> : vector<16x512xf32>
    %293 = tpu.matmul %292, %12, %cst_102 {dimension_numbers = #tpu.dot_dimension_numbers<[1], [0], [0], [1], [0, 0, 1, 1], [], []>} : vector<16x128xbf16>, vector<128x512xbf16>, vector<16x512xf32> -> vector<16x512xf32>
    %294 = arith.extf %291 : vector<16x512xbf16> to vector<16x512xf32>
    %295 = arith.addf %294, %293 : vector<16x512xf32>
    %296 = vector.extract_strided_slice %295 {offsets = [0, 0], sizes = [16, 128], strides = [1, 1]} : vector<16x512xf32> to vector<16x128xf32>
    %cst_103 = arith.constant 5.000000e-01 : f32
    %297 = vector.broadcast %cst_103 : f32 to vector<16x128xf32>
    %298 = arith.mulf %297, %296 : vector<16x128xf32>
    %299 = math.tanh %298 : vector<16x128xf32>
    %cst_104 = arith.constant 5.000000e-01 : f32
    %300 = vector.broadcast %cst_104 : f32 to vector<16x128xf32>
    %301 = arith.mulf %300, %299 : vector<16x128xf32>
    %cst_105 = arith.constant 5.000000e-01 : f32
    %302 = vector.broadcast %cst_105 : f32 to vector<16x128xf32>
    %303 = arith.addf %301, %302 : vector<16x128xf32>
    %304 = vector.extract_strided_slice %295 {offsets = [0, 128], sizes = [16, 128], strides = [1, 1]} : vector<16x512xf32> to vector<16x128xf32>
    %cst_106 = arith.constant 5.000000e-01 : f32
    %305 = vector.broadcast %cst_106 : f32 to vector<16x128xf32>
    %306 = arith.mulf %305, %304 : vector<16x128xf32>
    %307 = math.tanh %306 : vector<16x128xf32>
    %cst_107 = arith.constant 5.000000e-01 : f32
    %308 = vector.broadcast %cst_107 : f32 to vector<16x128xf32>
    %309 = arith.mulf %308, %307 : vector<16x128xf32>
    %cst_108 = arith.constant 5.000000e-01 : f32
    %310 = vector.broadcast %cst_108 : f32 to vector<16x128xf32>
    %311 = arith.addf %309, %310 : vector<16x128xf32>
    %312 = vector.extract_strided_slice %295 {offsets = [0, 256], sizes = [16, 128], strides = [1, 1]} : vector<16x512xf32> to vector<16x128xf32>
    %313 = math.tanh %312 : vector<16x128xf32>
    %314 = vector.extract_strided_slice %295 {offsets = [0, 384], sizes = [16, 128], strides = [1, 1]} : vector<16x512xf32> to vector<16x128xf32>
    %cst_109 = arith.constant 5.000000e-01 : f32
    %315 = vector.broadcast %cst_109 : f32 to vector<16x128xf32>
    %316 = arith.mulf %315, %314 : vector<16x128xf32>
    %317 = math.tanh %316 : vector<16x128xf32>
    %cst_110 = arith.constant 5.000000e-01 : f32
    %318 = vector.broadcast %cst_110 : f32 to vector<16x128xf32>
    %319 = arith.mulf %318, %317 : vector<16x128xf32>
    %cst_111 = arith.constant 5.000000e-01 : f32
    %320 = vector.broadcast %cst_111 : f32 to vector<16x128xf32>
    %321 = arith.addf %319, %320 : vector<16x128xf32>
    %322 = arith.mulf %311, %285 : vector<16x128xf32>
    %323 = arith.mulf %303, %313 : vector<16x128xf32>
    %324 = arith.addf %322, %323 : vector<16x128xf32>
    %325 = math.tanh %324 : vector<16x128xf32>
    %326 = arith.mulf %321, %325 : vector<16x128xf32>
    %c8_i32 = arith.constant 8 : i32
    %c0_112 = arith.constant 0 : index
    %c0_113 = arith.constant 0 : index
    %327 = vector.load %arg9[%c0_112, %c0_113] : memref<16x128xf32, #tpu.memory_space<vmem>>, vector<16x128xf32>
    tpu.vector_store %arg9[%c0_112, %c0_113], %326 {strides = array<i32>} : memref<16x128xf32, #tpu.memory_space<vmem>>, vector<16x128xf32>,
    %c0_114 = arith.constant 0 : index
    %c0_115 = arith.constant 0 : index
    %328 = vector.load %arg10[%c0_114, %c0_115] : memref<16x128xf32, #tpu.memory_space<vmem>>, vector<16x128xf32>
    tpu.vector_store %arg10[%c0_114, %c0_115], %324 {strides = array<i32>} : memref<16x128xf32, #tpu.memory_space<vmem>>, vector<16x128xf32>,
    %c0_i32_116 = arith.constant 0 : i32
    %329 = arith.cmpi eq, %arg1, %c0_i32_116 : i32
    %330 = arith.extui %329 : i1 to i32
    %c0_i32_117 = arith.constant 0 : i32
    %331 = arith.cmpi ne, %330, %c0_i32_117 : i32
    scf.if %331 {
      %332 = arith.truncf %326 : vector<16x128xf32> to vector<16x128xbf16>
      %c0_118 = arith.constant 0 : index
      %c0_119 = arith.constant 0 : index
      %333 = vector.load %arg6[%c0_118, %c0_119] : memref<128x128xbf16, #tpu.memory_space<vmem>>, vector<128x128xbf16>
      %cst_120 = arith.constant dense<0.000000e+00> : vector<16x128xf32>
      %334 = tpu.matmul %332, %333, %cst_120 {dimension_numbers = #tpu.dot_dimension_numbers<[1], [0], [0], [1], [0, 0, 1, 1], [], []>} : vector<16x128xbf16>, vector<128x128xbf16>, vector<16x128xf32> -> vector<16x128xf32>
      %c0_121 = arith.constant 0 : index
      %c0_122 = arith.constant 0 : index
      %335 = vector.load %arg7[%c0_121, %c0_122] : memref<1x128xf32, #tpu.memory_space<vmem>>, vector<1x128xf32>
      %336 = vector.broadcast %335 : vector<1x128xf32> to vector<16x128xf32>
      %337 = arith.addf %334, %336 : vector<16x128xf32>
      %c0_123 = arith.constant 0 : index
      %c0_124 = arith.constant 0 : index
      %338 = vector.load %arg8[%c0_123, %c0_124] : memref<16x128xf32, #tpu.memory_space<vmem>>, vector<16x128xf32>
      tpu.vector_store %arg8[%c0_123, %c0_124], %337 {strides = array<i32>} : memref<16x128xf32, #tpu.memory_space<vmem>>, vector<16x128xf32>,
    } else {
    }
    return
  }
  func.func @transform_0(%arg0: i32, %arg1: i32) -> (i32, i32, i32, i32) {
    %c0_i32 = arith.constant 0 : i32
    %c0_i32_0 = arith.constant 0 : i32
    %c0_i32_1 = arith.constant 0 : i32
    return %arg0, %arg1, %c0_i32, %c0_i32_0 : i32, i32, i32, i32
  }
  func.func @transform_1(%arg0: i32, %arg1: i32) -> (i32, i32) {
    %c0_i32 = arith.constant 0 : i32
    %c0_i32_0 = arith.constant 0 : i32
    %c0_i32_1 = arith.constant 0 : i32
    return %c0_i32, %c0_i32_0 : i32, i32
  }
  func.func @transform_2(%arg0: i32, %arg1: i32) -> (i32, i32) {
    %c0_i32 = arith.constant 0 : i32
    %c0_i32_0 = arith.constant 0 : i32
    %c0_i32_1 = arith.constant 0 : i32
    return %c0_i32, %c0_i32_0 : i32, i32
  }
  func.func @transform_3(%arg0: i32, %arg1: i32) -> (i32, i32) {
    %c0_i32 = arith.constant 0 : i32
    %c0_i32_0 = arith.constant 0 : i32
    %c0_i32_1 = arith.constant 0 : i32
    return %c0_i32, %c0_i32_0 : i32, i32
  }
  func.func @transform_4(%arg0: i32, %arg1: i32) -> (i32, i32) {
    %c0_i32 = arith.constant 0 : i32
    %c0_i32_0 = arith.constant 0 : i32
    %c0_i32_1 = arith.constant 0 : i32
    return %c0_i32, %c0_i32_0 : i32, i32
  }
  func.func @transform_5(%arg0: i32, %arg1: i32) -> (i32, i32) {
    %c0_i32 = arith.constant 0 : i32
    %c0_i32_0 = arith.constant 0 : i32
    %c0_i32_1 = arith.constant 0 : i32
    return %c0_i32, %c0_i32_0 : i32, i32
  }
  func.func @transform_6(%arg0: i32, %arg1: i32) -> (i32, i32) {
    %c0_i32 = arith.constant 0 : i32
    %c0_i32_0 = arith.constant 0 : i32
    return %arg0, %c0_i32 : i32, i32
  }
}

</mosaic_0001>

<bundles_post_ra>
// kernel: tpu_custom_call.1
= control target key start
LH: loop header
LB: loop body
LE: loop exit
PB: predicated region body
PF: predicated region fallthrough
CT: control target
= control target key end

     0   :  { %11 = vsyncpa [#allocation6], 0  ;;  %s3266_s0 = inlined_call_operand.vmem [shape: bf16[1,1,128,16], index: 0, kind: input, shape index: {}]   ;;  %s3267_s1 = inlined_call_operand.hbm [shape: bf16[16,512], index: 1, kind: input, shape index: {}]   ;;  %s3268_s2 = inlined_call_operand.hbm [shape: bf16[128,512], index: 2, kind: input, shape index: {}]   ;;  %s3269_s3 = inlined_call_operand.vmem [shape: f32[1,512], index: 3, kind: input, shape index: {}]   ;;  %s3270_s4 = inlined_call_operand.vmem [shape: bf16[128,128], index: 4, kind: input, shape index: {}]   ;;  %s3271_s5 = inlined_call_operand.vmem [shape: f32[1,128], index: 5, kind: input, shape index: {}]   ;;  %s3272_s6 = inlined_call_operand.hbm [shape: f32[16,128], index: 6, kind: output, shape index: {}]  }
   0x1   :  { %12 = vsyncpa [#allocation9], 0 }
   0x2   :  { %13 = vsyncpa [#allocation7], 0  ;;  %s2434_s21 = smov [#allocation5]   ;;  %s2362_s25 = scalar_lea.hbm %s3267_s1, 512 }
   0x3   :  { %s21_s22 = sshll.u32 %s2434_s21, 4  ;;  %p2363_p0 = scmp.ne.s32.totalorder %s3267_s1, %s2362_s25  ;;  %s22_s22 = int_to_ptr.vmem [resolvable:$true] %s21_s22 }
   0x4   :  { %p2366_p1 = scmp.lt.u32.totalorder %s2362_s25, %s3267_s1 }
   0x6   :  { %p2368_p2 = pnand %p2366_p1, %p2363_p0 }
   0x8   :  { %2371 = shalt.err (!%p2368_p2)
}
   0x9   :  { %s2372_s30 = scalar_lea.vmem %s22_s22, 512  ;;  %p2377_p4 = scmp.lt.s32.totalorder %s22_s22, %s22_s22 }
   0xa   :  { %p2373_p3 = scmp.ne.s32.totalorder %s22_s22, %s2372_s30  ;;  %p2378_p5 = scmp.lt.s32.totalorder %s2372_s30, %s2372_s30 }
   0xc   :  { %p2379_p6 = por %p2378_p5, %p2377_p4 }
   0xe   :  { %p2380_p7 = pnand %p2379_p6, %p2373_p3 }
  0x10   :  { %2383 = shalt.err (!%p2380_p7)
}
  0x11   :  { %s2435_s7 = smov 256   ;;  %s2436_s8 = smov 16  }
  0x12   :  { %27 = dma.hbm_to_vmem [thread:$0]  %s3267_s1, 512, %s22_s22, [#allocation6], %s2435_s7, %s2435_s7, %s2436_s8  }
  0x13   :  { %s2437_s11 = smov [#allocation8]   ;;  %s2384_s15 = scalar_lea.hbm %s3268_s2, 4096 }
  0x14   :  { %s33_s12 = sshll.u32 %s2437_s11, 4  ;;  %p2385_p8 = scmp.ne.s32.totalorder %s3268_s2, %s2384_s15  ;;  %s34_s12 = int_to_ptr.vmem [resolvable:$true] %s33_s12 }
  0x15   :  { %p2388_p9 = scmp.lt.u32.totalorder %s2384_s15, %s3268_s2 }
  0x17   :  { %p2390_p10 = pnand %p2388_p9, %p2385_p8 }
  0x19   :  { %2393 = shalt.err (!%p2390_p10)
}
  0x1a   :  { %s2394_s20 = scalar_lea.vmem %s34_s12, 4096  ;;  %p2399_p12 = scmp.lt.s32.totalorder %s34_s12, %s34_s12 }
  0x1b   :  { %p2395_p11 = scmp.ne.s32.totalorder %s34_s12, %s2394_s20  ;;  %p2400_p13 = scmp.lt.s32.totalorder %s2394_s20, %s2394_s20 }
  0x1d   :  { %p2401_p0 = por %p2400_p13, %p2399_p12 }
  0x1f   :  { %p2402_p1 = pnand %p2401_p0, %p2395_p11 }
  0x21   :  { %2405 = shalt.err (!%p2402_p1)
}
  0x22   :  { %39 = dma.hbm_to_vmem [thread:$0]  %s3268_s2, 4096, %s34_s12, [#allocation9], %s2435_s7, %s2435_s7, %s2436_s8  }
  0x23   :  { %2428 = dma.done.wait [#allocation6], 512  }
  0x24   :  { %2429 = vsyncadd [#allocation6], 4294966784 }
  0x25   :  { %2430 = dma.done.wait [#allocation9], 4096  }
  0x26   :  { %2431 = vsyncadd [#allocation9], 4294963200  ;;  %v3273_v0 = vmov 0   ;;  %v2100_v1 = vld [vmem:[#allocation5 + $0x4] ss:$16 sps:$4 sm:$0xff]   ;;  %vm163_vm0 = vcmask 130048   ;;  %v83_v46 = vlaneseq }
  0x27   :  { %220 = vmatprep.mubr.bf16.mxu0 %v3273_v0  ;;  %280 = vmatprep.mubr.bf16.mxu1 %v3273_v0  ;;  %v2102_v2 = vld [vmem:[#allocation5] ss:$16 sps:$4 sm:$0xff]   ;;  %v2105_v5 = vld [vmem:[#allocation5 + $0x8] ss:$16 sps:$4 sm:$0xff]   ;;  %v2107_v6 = vld [vmem:[#allocation5 + $0xc] ss:$16 sps:$4 sm:$0xff]  }
  0x28   :  { %188 = vmatprep.subr.bf16.mxu0 %v2100_v1  ;;  %2087 = vmatprep.subr.bf16.mxu1 %v2100_v1  ;;  %v2103_v3 = vld [vmem:[%s3266_s0] sm:$0xff]   ;;  %v2512_v4 = vld [vmem:[%s3266_s0 + $0x30] sm:$0xff]   ;;  %v2108_v7 = vld [vmem:[%s3266_s0 + $0x8] sm:$0xff]   ;;  %v2439_v45 = vmov 0.0|0.0   ;;  %v84_v47 = vshrl.u32 %v83_v46, 7  ;;  %vm2441_vm1 = vmmov 0  }
  0x29   :  { %189 = vmatpush1.bf16.msra.mxu0 %v2102_v2  ;;  %2088 = vmatpush1.bf16.msra.mxu1 %v2102_v2  ;;  %v2522_v8 = vld [vmem:[#allocation8 + $0x4] ss:$16 sps:$4 sm:$0xff]   ;;  %v2524_v9 = vld [vmem:[#allocation8 + $0xc] ss:$16 sps:$4 sm:$0xff]   ;;  %v2526_v10 = vld [vmem:[#allocation8] ss:$16 sps:$4 sm:$0xff]  }
  0x2a   :  { %301 = vmatprep.subr.bf16.mxu1 %v2107_v6  ;;  %v2531_v11 = vld [vmem:[%s3266_s0 + $0x38] sm:$0xff]   ;;  %682 = vmatprep.subr.bf16.mxu0 %v2522_v8  ;;  %v2536_v12 = vld [vmem:[#allocation8 + $0x24] ss:$16 sps:$4 sm:$0xff]   ;;  %v2538_v13 = vld [vmem:[#allocation8 + $0x20] ss:$16 sps:$4 sm:$0xff]   ;;  %v85_v48 = vsub.s32 0, %v84_v47 }
  0x2b   :  { %v2541_v14 = vld [vmem:[#allocation8 + $0x44] ss:$16 sps:$4 sm:$0xff]   ;;  %v2549_v15 = vld [vmem:[#allocation8 + $0x40] ss:$16 sps:$4 sm:$0xff]   ;;  %v2557_v18 = vld [vmem:[#allocation8 + $0x8] ss:$16 sps:$4 sm:$0xff]  }
  0x2c   :  { %2001 = vmatmul.mubr.msk.bf16.vlgmr.msra.gmra.mrb[0].mxu0 %vm163_vm0, %v2103_v3  ;;  %2007 = vmatmul.mubr.msk.bf16.vlgmr.msra.gmra.mrb[0].mxu1 %vm163_vm0, %v2512_v4  ;;  %v2552_v16 = vld [vmem:[#allocation8 + $0x64] ss:$16 sps:$4 sm:$0xff]   ;;  %v2559_v19 = vld [vmem:[#allocation8 + $0x2c] ss:$16 sps:$4 sm:$0xff]   ;;  %v2563_v20 = vld [vmem:[#allocation8 + $0x60] ss:$16 sps:$4 sm:$0xff]  }
  0x2d   :  { %230 = vmatprep.mubr.bf16.mxu0 %v3273_v0  ;;  %302 = vmatpush1.bf16.msra.mxu1 %v2105_v5  ;;  %v2110_v17 = vld [vmem:[%s3266_s0 + $0x10] sm:$0xff]   ;;  %v2571_v22 = vld [vmem:[#allocation8 + $0x28] ss:$16 sps:$4 sm:$0xff]   ;;  %v2575_v23 = vld [vmem:[#allocation8 + $0x4c] ss:$16 sps:$4 sm:$0xff]   ;;  %v89_v50 = vsub.s32 1, %v84_v47 }
  0x2e   :  { %290 = vmatprep.mubr.bf16.mxu1 %v3273_v0  ;;  %725 = vmatprep.subr.bf16.mxu1 %v2524_v9  ;;  %v2567_v21 = vld [vmem:[#allocation8 + $0x84] ss:$16 sps:$4 sm:$0xff]   ;;  %v2578_v24 = vld [vmem:[#allocation8 + $0x80] ss:$16 sps:$4 sm:$0xff]   ;;  %v2120_v25 = vld [vmem:[%s3266_s0 + $0x18] sm:$0xff]   ;;  %s2442_s28 = smov [#allocation10]  }
  0x2f   :  { %683 = vmatpush1.bf16.msra.mxu0 %v2526_v10  ;;  %v2585_v26 = vld [vmem:[#allocation8 + $0x48] ss:$16 sps:$4 sm:$0xff]   ;;  %v2587_v27 = vld [vmem:[#allocation8 + $0xa4] ss:$16 sps:$4 sm:$0xff]   ;;  %v2590_v28 = vld [vmem:[#allocation8 + $0xa0] ss:$16 sps:$4 sm:$0xff]  }
  0x30   :  { %684 = vmatprep.subr.bf16.mxu0 %v2536_v12  ;;  %v2593_v29 = vld [vmem:[#allocation8 + $0x6c] ss:$16 sps:$4 sm:$0xff]   ;;  %v2597_v30 = vld [vmem:[#allocation8 + $0xc4] ss:$16 sps:$4 sm:$0xff]   ;;  %v2601_v31 = vld [vmem:[#allocation8 + $0xc0] ss:$16 sps:$4 sm:$0xff]  }
  0x31   :  { %v2603_v32 = vld [vmem:[#allocation8 + $0x68] ss:$16 sps:$4 sm:$0xff]   ;;  %v2130_v33 = vld [vmem:[%s3266_s0 + $0x20] sm:$0xff]   ;;  %v2610_v34 = vld [vmem:[#allocation8 + $0x8c] ss:$16 sps:$4 sm:$0xff]   ;;  %s1969_s29 = sshll.u32 %s2442_s28, 4  ;;  %s1970_s29 = int_to_ptr.vmem [resolvable:$true] %s1969_s29 }
  0x32   :  { %v2615_v35 = vld [vmem:[#allocation8 + $0xe4] ss:$16 sps:$4 sm:$0xff]   ;;  %v2617_v36 = vld [vmem:[#allocation8 + $0x88] ss:$16 sps:$4 sm:$0xff]   ;;  %v2619_v37 = vld [vmem:[#allocation8 + $0xe0] ss:$16 sps:$4 sm:$0xff]   ;;  %p2411_p3 = scmp.lt.s32.totalorder %s1970_s29, %s1970_s29 }
  0x33   :  { %685 = vmatpush1.bf16.msra.mxu0 %v2538_v13  ;;  %v2624_v38 = vld [vmem:[#allocation8 + $0xac] ss:$16 sps:$4 sm:$0xff]   ;;  %v2632_v39 = vld [vmem:[#allocation8 + $0xa8] ss:$16 sps:$4 sm:$0xff]   ;;  %v81_v49 = vld [vmem:[%s3269_s3] sm:$0xf] }
  0x34   :  { %2002 = vmatmul.mubr.msk.bf16.gmra.mrb[4].mxu0 %vm163_vm0, %v2108_v7  ;;  %2008 = vmatmul.mubr.msk.bf16.gmra.mrb[4].mxu1 %vm163_vm0, %v2531_v11  ;;  %v2636_v40 = vld [vmem:[#allocation8 + $0xcc] ss:$16 sps:$4 sm:$0xff]   ;;  %v2643_v42 = vld [vmem:[#allocation8 + $0xc8] ss:$16 sps:$4 sm:$0xff]   ;;  %v2705_v51 = vrot.slane %v81_v49, %v85_v48  ;;  %v2707_v52 = vrot.slane %v81_v49, %v89_v50  ;;  %s2406_s30 = scalar_lea.vmem %s1970_s29, 256 }
  0x35   :  { %240 = vmatprep.mubr.bf16.mxu0 %v3273_v0  ;;  %333 = vmatprep.mubr.bf16.mxu1 %v3273_v0  ;;  %v2140_v41 = vld [vmem:[%s3266_s0 + $0x28] sm:$0xff]   ;;  %p2407_p2 = scmp.ne.s32.totalorder %s1970_s29, %s2406_s30  ;;  %p2412_p4 = scmp.lt.s32.totalorder %s2406_s30, %s2406_s30 }
  0x36   :  { %686 = vmatprep.subr.bf16.mxu0 %v2541_v14  ;;  %v2646_v43 = vld [vmem:[#allocation8 + $0xec] ss:$16 sps:$4 sm:$0xff]   ;;  %v2653_v44 = vld [vmem:[#allocation8 + $0xe8] ss:$16 sps:$4 sm:$0xff]  }
  0x37   :  { %687 = vmatpush1.bf16.msra.mxu0 %v2549_v15  ;;  %p2413_p5 = por %p2412_p4, %p2411_p3 }
  0x38   :  { %688 = vmatprep.subr.bf16.mxu0 %v2552_v16 }
  0x39   :  { %p2414_p6 = pnand %p2413_p5, %p2407_p2 }
  0x3b   :  { %689 = vmatpush1.bf16.msra.mxu0 %v2563_v20 }
  0x3c   :  { %2003 = vmatmul.mubr.msk.bf16.gmra.mrb[8].mxu0 %vm163_vm0, %v2110_v17  ;;  %2009 = vmatmul.mubr.msk.bf16.vlgmr.msra.gmra.mrb[8].mxu1 %vm163_vm0, %v2103_v3 }
  0x3d   :  { %726 = vmatpush1.bf16.msra.mxu1 %v2557_v18  ;;  %250 = vmatprep.mubr.bf16.mxu0 %v3273_v0 }
  0x3e   :  { %343 = vmatprep.mubr.bf16.mxu1 %v3273_v0  ;;  %727 = vmatprep.subr.bf16.mxu1 %v2559_v19 }
  0x3f   :  { %690 = vmatprep.subr.bf16.mxu0 %v2567_v21 }
  0x40   :  { %691 = vmatpush1.bf16.msra.mxu0 %v2578_v24 }
  0x41   :  { %728 = vmatpush1.bf16.msra.mxu1 %v2571_v22  ;;  %692 = vmatprep.subr.bf16.mxu0 %v2587_v27 }
  0x42   :  { %729 = vmatprep.subr.bf16.mxu1 %v2575_v23 }
  0x44   :  { %2004 = vmatmul.mubr.msk.bf16.gmra.mrb[12].mxu0 %vm163_vm0, %v2120_v25  ;;  %2010 = vmatmul.mubr.msk.bf16.gmra.mrb[12].mxu1 %vm163_vm0, %v2108_v7 }
  0x45   :  { %260 = vmatprep.mubr.bf16.mxu0 %v3273_v0  ;;  %353 = vmatprep.mubr.bf16.mxu1 %v3273_v0 }
  0x46   :  { %730 = vmatpush1.bf16.msra.mxu1 %v2585_v26  ;;  %693 = vmatpush1.bf16.msra.mxu0 %v2590_v28 }
  0x47   :  { %731 = vmatprep.subr.bf16.mxu1 %v2593_v29  ;;  %694 = vmatprep.subr.bf16.mxu0 %v2597_v30 }
  0x4a   :  { %732 = vmatpush1.bf16.msra.mxu1 %v2603_v32  ;;  %695 = vmatpush1.bf16.msra.mxu0 %v2601_v31 }
  0x4b   :  { %733 = vmatprep.subr.bf16.mxu1 %v2610_v34  ;;  %696 = vmatprep.subr.bf16.mxu0 %v2615_v35 }
  0x4c   :  { %2005 = vmatmul.mubr.msk.bf16.gmra.mrb[16].mxu0 %vm163_vm0, %v2130_v33  ;;  %2011 = vmatmul.mubr.msk.bf16.gmra.mrb[16].mxu1 %vm163_vm0, %v2110_v17 }
  0x4d   :  { %270 = vmatprep.mubr.bf16.mxu0 %v3273_v0  ;;  %363 = vmatprep.mubr.bf16.mxu1 %v3273_v0 }
  0x4e   :  { %734 = vmatpush1.bf16.msra.mxu1 %v2617_v36  ;;  %697 = vmatpush1.bf16.msra.mxu0 %v2619_v37 }
  0x4f   :  { %735 = vmatprep.subr.bf16.mxu1 %v2624_v38  ;;  %828 = vmatprep.subr.bf16.mxu0 %v2522_v8 }
  0x52   :  { %736 = vmatpush1.bf16.msra.mxu1 %v2632_v39 }
  0x53   :  { %737 = vmatprep.subr.bf16.mxu1 %v2636_v40 }
  0x54   :  { %2006 = vmatmul.mubr.msk.bf16.gmra.mrb[20].mxu0 %vm163_vm0, %v2140_v41  ;;  %2012 = vmatmul.mubr.msk.bf16.gmra.mrb[20].mxu1 %vm163_vm0, %v2120_v25 }
  0x55   :  { %373 = vmatprep.mubr.bf16.mxu1 %v3273_v0  ;;  %714 = vmatprep.mubr.bf16.mxu0 %v3273_v0 }
  0x56   :  { %738 = vmatpush1.bf16.msra.mxu1 %v2643_v42 }
  0x57   :  { %739 = vmatprep.subr.bf16.mxu1 %v2646_v43 }
  0x5a   :  { %740 = vmatpush1.bf16.msra.mxu1 %v2653_v44 }
  0x5b   :  { %871 = vmatprep.subr.bf16.mxu1 %v2524_v9 }
  0x5c   :  { %2013 = vmatmul.mubr.msk.bf16.gmra.mrb[24].mxu1 %vm163_vm0, %v2130_v33  ;;  %715 = vmatmul.mubr.bf16.vlgmr.msra.gmra.mrb[24].mxu0 %v2439_v45 }
  0x5d   :  { %383 = vmatprep.mubr.bf16.mxu1 %v3273_v0  ;;  %829 = vmatpush1.bf16.msra.mxu0 %v2526_v10 }
  0x5e   :  { %830 = vmatprep.subr.bf16.mxu0 %v2536_v12  ;;  %860 = vmatprep.mubr.bf16.mxu0 %v3273_v0 }
  0x61   :  { %831 = vmatpush1.bf16.msra.mxu0 %v2538_v13 }
  0x62   :  { %832 = vmatprep.subr.bf16.mxu0 %v2541_v14 }
  0x64   :  { %2014 = vmatmul.mubr.msk.bf16.gmra.mrb[28].mxu1 %vm163_vm0, %v2140_v41 }
  0x65   :  { %393 = vmatprep.mubr.bf16.mxu1 %v3273_v0  ;;  %833 = vmatpush1.bf16.msra.mxu0 %v2549_v15 }
  0x66   :  { %834 = vmatprep.subr.bf16.mxu0 %v2552_v16 }
  0x69   :  { %835 = vmatpush1.bf16.msra.mxu0 %v2563_v20 }
  0x6a   :  { %836 = vmatprep.subr.bf16.mxu0 %v2567_v21 }
  0x6c   :  { %2015 = vmatmul.mubr.msk.bf16.gmra.mrb[32].mxu1 %vm163_vm0, %v2512_v4 }
  0x6d   :  { %403 = vmatprep.mubr.bf16.mxu1 %v3273_v0  ;;  %837 = vmatpush1.bf16.msra.mxu0 %v2578_v24 }
  0x6e   :  { %838 = vmatprep.subr.bf16.mxu0 %v2587_v27 }
  0x71   :  { %839 = vmatpush1.bf16.msra.mxu0 %v2590_v28 }
  0x72   :  { %840 = vmatprep.subr.bf16.mxu0 %v2597_v30 }
  0x74   :  { %2016 = vmatmul.mubr.msk.bf16.gmra.mrb[36].mxu1 %vm163_vm0, %v2531_v11 }
  0x75   :  { %757 = vmatprep.mubr.bf16.mxu1 %v3273_v0  ;;  %841 = vmatpush1.bf16.msra.mxu0 %v2601_v31 }
  0x76   :  { %842 = vmatprep.subr.bf16.mxu0 %v2615_v35 }
  0x79   :  { %843 = vmatpush1.bf16.msra.mxu0 %v2619_v37 }
  0x7a   :  { %974 = vmatprep.subr.bf16.mxu0 %v2522_v8 }
  0x7c   :  { %758 = vmatmul.mubr.bf16.vlgmr.msra.gmra.mrb[40].mxu1 %v2439_v45 }
  0x7d   :  { %872 = vmatpush1.bf16.msra.mxu1 %v2557_v18  ;;  %903 = vmatprep.mubr.bf16.mxu1 %v3273_v0 }
  0x7e   :  { %873 = vmatprep.subr.bf16.mxu1 %v2559_v19 }
  0x81   :  { %874 = vmatpush1.bf16.msra.mxu1 %v2571_v22 }
  0x82   :  { %875 = vmatprep.subr.bf16.mxu1 %v2575_v23 }
  0x85   :  { %876 = vmatpush1.bf16.msra.mxu1 %v2585_v26 }
  0x86   :  { %877 = vmatprep.subr.bf16.mxu1 %v2593_v29 }
  0x89   :  { %878 = vmatpush1.bf16.msra.mxu1 %v2603_v32 }
  0x8a   :  { %879 = vmatprep.subr.bf16.mxu1 %v2610_v34 }
  0x8d   :  { %880 = vmatpush1.bf16.msra.mxu1 %v2617_v36 }
  0x8e   :  { %881 = vmatprep.subr.bf16.mxu1 %v2624_v38 }
  0x91   :  { %882 = vmatpush1.bf16.msra.mxu1 %v2632_v39 }
  0x92   :  { %883 = vmatprep.subr.bf16.mxu1 %v2636_v40 }
  0x95   :  { %884 = vmatpush1.bf16.msra.mxu1 %v2643_v42 }
  0x96   :  { %885 = vmatprep.subr.bf16.mxu1 %v2646_v43 }
  0x99   :  { %886 = vmatpush1.bf16.msra.mxu1 %v2653_v44 }
  0x9a   :  { %1017 = vmatprep.subr.bf16.mxu1 %v2524_v9 }
  0xff   :  { %v282_v53 = vpop.f32.mrb[0].mxu1  ;;  %v222_v54 = vpop.f32.mrb[0].mxu0 }
 0x100   :  { %v283_v55 = vadd.f32 %v282_v53, %v2705_v51  ;;  %v284_v56 = vpop.f32.mrb[1].mxu1  ;;  %v223_v57 = vadd.f32 %v222_v54, %v2705_v51  ;;  %v224_v58 = vpop.f32.mrb[1].mxu0 }
 0x101   :  { %v285_v59 = vadd.f32 %v284_v56, %v2707_v52  ;;  %v286_v60 = vpop.f32.mrb[2].mxu1  ;;  %v225_v61 = vadd.f32 %v224_v58, %v2707_v52  ;;  %v226_v62 = vpop.f32.mrb[2].mxu0  ;;  %v93_v58 = vsub.s32 2, %v84_v47 }
 0x102   :  { %v287_v63 = vadd.f32 %v286_v60, %v2705_v51  ;;  %v288_v1 = vpop.f32.mrb[3].mxu1  ;;  %v227_v2 = vadd.f32 %v226_v62, %v2705_v51  ;;  %v228_v3 = vpop.f32.mrb[3].mxu0  ;;  %v97_v62 = vsub.s32 3, %v84_v47 }
 0x103   :  { %v289_v4 = vadd.f32 %v288_v1, %v2707_v52  ;;  %v229_v5 = vadd.f32 %v228_v3, %v2707_v52 }
 0x104   :  { %v2717_v6 = vpack.c.bf16 %v287_v63, %v283_v55  ;;  %v2719_v7 = vpack.c.bf16 %v227_v2, %v223_v57 }
 0x105   :  { %v2721_v11 = vpack.c.bf16 %v289_v4, %v285_v59  ;;  %v2723_v17 = vpack.c.bf16 %v229_v5, %v225_v61  ;;  %v2741_v5 = vrot.slane %v81_v49, %v93_v58 }
 0x106   :  { %3294 = vst [vmem:[#allocation14_spill] sm:$0xff] %v2717_v6 }
 0x107   :  { %3295 = vst [vmem:[#allocation15_spill] sm:$0xff] %v2721_v11  ;;  %v292_v25 = vpop.f32.mrb[4].mxu1  ;;  %v232_v33 = vpop.f32.mrb[4].mxu0 }
 0x108   :  { %v293_v41 = vadd.f32 %v292_v25, %v2705_v51  ;;  %v294_v45 = vpop.f32.mrb[5].mxu1  ;;  %v233_v46 = vadd.f32 %v232_v33, %v2705_v51  ;;  %v234_v48 = vpop.f32.mrb[5].mxu0  ;;  %v2743_v33 = vrot.slane %v81_v49, %v97_v62 }
 0x109   :  { %v295_v50 = vadd.f32 %v294_v45, %v2707_v52  ;;  %v296_v53 = vpop.f32.mrb[6].mxu1  ;;  %v235_v54 = vadd.f32 %v234_v48, %v2707_v52  ;;  %v236_v55 = vpop.f32.mrb[6].mxu0 }
 0x10a   :  { %v297_v56 = vadd.f32 %v296_v53, %v2705_v51  ;;  %v298_v57 = vpop.f32.mrb[7].mxu1  ;;  %v237_v59 = vadd.f32 %v236_v55, %v2705_v51  ;;  %v238_v60 = vpop.f32.mrb[7].mxu0 }
 0x10b   :  { %v299_v61 = vadd.f32 %v298_v57, %v2707_v52  ;;  %v239_v63 = vadd.f32 %v238_v60, %v2707_v52 }
 0x10c   :  { %v2733_v1 = vpack.c.bf16 %v297_v56, %v293_v41  ;;  %v2735_v2 = vpack.c.bf16 %v237_v59, %v233_v46 }
 0x10d   :  { %v2737_v3 = vpack.c.bf16 %v299_v61, %v295_v50  ;;  %v2739_v4 = vpack.c.bf16 %v239_v63, %v235_v54 }
 0x10e   :  { %3296 = vst [vmem:[#allocation16_spill] sm:$0xff] %v2733_v1 }
 0x10f   :  { %3297 = vst [vmem:[#allocation17_spill] sm:$0xff] %v2737_v3  ;;  %v335_v25 = vpop.f32.mrb[8].mxu1  ;;  %v242_v45 = vpop.f32.mrb[8].mxu0 }
 0x110   :  { %v337_v48 = vpop.f32.mrb[9].mxu1  ;;  %v243_v53 = vadd.f32 %v242_v45, %v2705_v51  ;;  %v244_v47 = vpop.f32.mrb[9].mxu0  ;;  %v336_v46 = vadd.f32 %v335_v25, %v2741_v5 }
 0x111   :  { %v339_v55 = vpop.f32.mrb[10].mxu1  ;;  %v245_v41 = vadd.f32 %v244_v47, %v2707_v52  ;;  %v246_v56 = vpop.f32.mrb[10].mxu0  ;;  %v338_v49 = vadd.f32 %v337_v48, %v2743_v33 }
 0x112   :  { %v340_v50 = vadd.f32 %v339_v55, %v2741_v5  ;;  %v341_v54 = vpop.f32.mrb[11].mxu1  ;;  %v247_v57 = vadd.f32 %v246_v56, %v2705_v51  ;;  %v248_v58 = vpop.f32.mrb[11].mxu0 }
 0x113   :  { %v342_v59 = vadd.f32 %v341_v54, %v2743_v33  ;;  %v249_v60 = vadd.f32 %v248_v58, %v2707_v52 }
 0x114   :  { %v2753_v61 = vpack.c.bf16 %v340_v50, %v336_v46  ;;  %v2755_v62 = vpack.c.bf16 %v247_v57, %v243_v53 }
 0x115   :  { %v2757_v63 = vpack.c.bf16 %v342_v59, %v338_v49  ;;  %v2759_v45 = vpack.c.bf16 %v249_v60, %v245_v41 }
 0x116   :  { %3298 = vst [vmem:[#allocation18_spill] sm:$0xff] %v2755_v62 }
 0x117   :  { %3299 = vst [vmem:[#allocation19_spill] sm:$0xff] %v2759_v45  ;;  %v345_v25 = vpop.f32.mrb[12].mxu1  ;;  %v252_v47 = vpop.f32.mrb[12].mxu0 }
 0x118   :  { %v346_v55 = vadd.f32 %v345_v25, %v2741_v5  ;;  %v347_v56 = vpop.f32.mrb[13].mxu1  ;;  %v253_v0 = vadd.f32 %v252_v47, %v2705_v51  ;;  %v254_v48 = vpop.f32.mrb[13].mxu0 }
 0x119   :  { %v348_v54 = vadd.f32 %v347_v56, %v2743_v33  ;;  %v349_v3 = vpop.f32.mrb[14].mxu1  ;;  %v255_v46 = vadd.f32 %v254_v48, %v2707_v52  ;;  %v256_v50 = vpop.f32.mrb[14].mxu0 }
 0x11a   :  { %v350_v53 = vadd.f32 %v349_v3, %v2741_v5  ;;  %v351_v57 = vpop.f32.mrb[15].mxu1  ;;  %v257_v41 = vadd.f32 %v256_v50, %v2705_v51  ;;  %v258_v58 = vpop.f32.mrb[15].mxu0 }
 0x11b   :  { %v352_v49 = vadd.f32 %v351_v57, %v2743_v33  ;;  %v259_v59 = vadd.f32 %v258_v58, %v2707_v52 }
 0x11c   :  { %v2769_v60 = vpack.c.bf16 %v350_v53, %v346_v55  ;;  %v2771_v25 = vpack.c.bf16 %v257_v41, %v253_v0 }
 0x11d   :  { %v2773_v47 = vpack.c.bf16 %v352_v49, %v348_v54  ;;  %v2775_v56 = vpack.c.bf16 %v259_v59, %v255_v46 }
 0x11e   :  { %3300 = vst [vmem:[#allocation20_spill] sm:$0xff] %v2771_v25 }
 0x11f   :  { %3301 = vst [vmem:[#allocation21_spill] sm:$0xff] %v2773_v47  ;;  %3302 = vst [vmem:[#allocation22_spill] sm:$0xff] %v2775_v56  ;;  %v355_v48 = vpop.f32.mrb[16].mxu1  ;;  %v262_v1 = vpop.f32.mrb[16].mxu0 }
 0x120   :  { %v356_v3 = vadd.f32 %v355_v48, %v2741_v5  ;;  %v357_v11 = vpop.f32.mrb[17].mxu1  ;;  %v263_v50 = vadd.f32 %v262_v1, %v2705_v51  ;;  %v264_v6 = vpop.f32.mrb[17].mxu0 }
 0x121   :  { %v358_v57 = vadd.f32 %v357_v11, %v2743_v33  ;;  %v359_v45 = vpop.f32.mrb[18].mxu1  ;;  %v265_v55 = vadd.f32 %v264_v6, %v2707_v52  ;;  %v266_v53 = vpop.f32.mrb[18].mxu0 }
 0x122   :  { %v360_v0 = vadd.f32 %v359_v45, %v2741_v5  ;;  %v361_v54 = vpop.f32.mrb[19].mxu1  ;;  %v267_v46 = vadd.f32 %v266_v53, %v2705_v51  ;;  %v268_v41 = vpop.f32.mrb[19].mxu0 }
 0x123   :  { %v362_v58 = vadd.f32 %v361_v54, %v2743_v33  ;;  %v269_v49 = vadd.f32 %v268_v41, %v2707_v52 }
 0x124   :  { %v2785_v59 = vpack.c.bf16 %v360_v0, %v356_v3  ;;  %v2787_v1 = vpack.c.bf16 %v267_v46, %v263_v50 }
 0x125   :  { %v2789_v48 = vpack.c.bf16 %v362_v58, %v358_v57  ;;  %v2791_v11 = vpack.c.bf16 %v269_v49, %v265_v55 }
 0x126   :  { %3303 = vst [vmem:[#allocation23_spill] sm:$0xff] %v2787_v1  ;;  %v769_v1 = vunpack.c.l.bf16 %v2723_v17 }
 0x127   :  { %3304 = vst [vmem:[#allocation24_spill] sm:$0xff] %v2789_v48  ;;  %3305 = vst [vmem:[#allocation25_spill] sm:$0xff] %v2791_v11  ;;  %v365_v6 = vpop.f32.mrb[20].mxu1  ;;  %v272_v56 = vpop.f32.mrb[20].mxu0 }
 0x128   :  { %v366_v45 = vadd.f32 %v365_v6, %v2741_v5  ;;  %v367_v25 = vpop.f32.mrb[21].mxu1  ;;  %v273_v53 = vadd.f32 %v272_v56, %v2705_v51  ;;  %v274_v62 = vpop.f32.mrb[21].mxu0 }
 0x129   :  { %v368_v54 = vadd.f32 %v367_v25, %v2743_v33  ;;  %v369_v47 = vpop.f32.mrb[22].mxu1  ;;  %v275_v3 = vadd.f32 %v274_v62, %v2707_v52  ;;  %v276_v0 = vpop.f32.mrb[22].mxu0  ;;  %v768_v62 = vunpack.c.l.bf16 %v2719_v7 }
 0x12a   :  { %v370_v50 = vadd.f32 %v369_v47, %v2741_v5  ;;  %v371_v57 = vpop.f32.mrb[23].mxu1  ;;  %v277_v55 = vadd.f32 %v276_v0, %v2705_v51  ;;  %v278_v46 = vpop.f32.mrb[23].mxu0 }
 0x12b   :  { %v372_v41 = vadd.f32 %v371_v57, %v2743_v33  ;;  %v279_v58 = vadd.f32 %v278_v46, %v2707_v52  ;;  %v772_v52 = vunpack.c.h.bf16 %v2719_v7 }
 0x12c   :  { %v2801_v49 = vpack.c.bf16 %v370_v50, %v366_v45  ;;  %v2803_v56 = vpack.c.bf16 %v277_v55, %v273_v53 }
 0x12d   :  { %v2805_v6 = vpack.c.bf16 %v372_v41, %v368_v54  ;;  %v2807_v25 = vpack.c.bf16 %v279_v58, %v275_v3  ;;  %v773_v3 = vunpack.c.h.bf16 %v2723_v17 }
 0x12e   :  { %3306 = vst [vmem:[#allocation26_spill] sm:$0xff] %v2803_v56 }
 0x12f   :  { %3307 = vst [vmem:[#allocation27_spill] sm:$0xff] %v2807_v25  ;;  %v375_v11 = vpop.f32.mrb[24].mxu1  ;;  %v716_v47 = vpop.f32.mrb[24].mxu0 }
 0x130   :  { %v376_v51 = vadd.f32 %v375_v11, %v2741_v5  ;;  %v776_v0 = vadd.f32 %v768_v62, %v716_v47  ;;  %v377_v57 = vpop.f32.mrb[25].mxu1  ;;  %v718_v48 = vpop.f32.mrb[25].mxu0 }
 0x131   :  { %v378_v45 = vadd.f32 %v377_v57, %v2743_v33  ;;  %v777_v53 = vadd.f32 %v769_v1, %v718_v48  ;;  %v379_v54 = vpop.f32.mrb[26].mxu1  ;;  %v720_v50 = vpop.f32.mrb[26].mxu0 }
 0x132   :  { %v380_v55 = vadd.f32 %v379_v54, %v2741_v5  ;;  %v780_v46 = vadd.f32 %v772_v52, %v720_v50  ;;  %v381_v41 = vpop.f32.mrb[27].mxu1  ;;  %v722_v58 = vpop.f32.mrb[27].mxu0 }
 0x133   :  { %v382_v25 = vadd.f32 %v381_v41, %v2743_v33  ;;  %v781_v11 = vadd.f32 %v773_v3, %v722_v58 }
 0x134   :  { %v2817_v62 = vpack.c.bf16 %v380_v55, %v376_v51 }
 0x135   :  { %v2819_v47 = vpack.c.bf16 %v382_v25, %v378_v45 }
 0x137   :  { %3308 = vst [vmem:[#allocation28_spill] sm:$0xff] %v2819_v47  ;;  %v385_v7 = vpop.f32.mrb[28].mxu1 }
 0x138   :  { %v386_v57 = vadd.f32 %v385_v7, %v2741_v5  ;;  %v387_v1 = vpop.f32.mrb[29].mxu1 }
 0x139   :  { %v388_v48 = vadd.f32 %v387_v1, %v2743_v33  ;;  %v389_v56 = vpop.f32.mrb[30].mxu1 }
 0x13a   :  { %v390_v17 = vadd.f32 %v389_v56, %v2741_v5  ;;  %v391_v54 = vpop.f32.mrb[31].mxu1  ;;  %v792_v56 = vmul.f32 0.5, %v777_v53 }
 0x13b   :  { %v392_v52 = vadd.f32 %v391_v54, %v2743_v33  ;;  %v784_v54 = vmul.f32 0.5, %v776_v0 }
 0x13c   :  { %v2825_v50 = vpack.c.bf16 %v390_v17, %v386_v57  ;;  %2170 = vtanh.f32 %v792_v56 }
 0x13d   :  { %v2827_v41 = vpack.c.bf16 %v392_v52, %v388_v48  ;;  %v793_v48 = vmul.f32 0.5, %v781_v11  ;;  %v785_v52 = vmul.f32 0.5, %v780_v46  ;;  %2172 = vtanh.f32 %v784_v54 }
 0x13e   :  { %v770_v46 = vunpack.c.l.bf16 %v2753_v61 }
 0x13f   :  { %3309 = vst [vmem:[#allocation29_spill] sm:$0xff] %v2827_v41  ;;  %v395_v51 = vpop.f32.mrb[32].mxu1  ;;  %2174 = vtanh.f32 %v793_v48 }
 0x140   :  { %v396_v25 = vadd.f32 %v395_v51, %v2741_v5  ;;  %v397_v45 = vpop.f32.mrb[33].mxu1  ;;  %2176 = vtanh.f32 %v785_v52 }
 0x141   :  { %v398_v3 = vadd.f32 %v397_v45, %v2743_v33  ;;  %v399_v55 = vpop.f32.mrb[34].mxu1 }
 0x142   :  { %v400_v58 = vadd.f32 %v399_v55, %v2741_v5  ;;  %v401_v7 = vpop.f32.mrb[35].mxu1 }
 0x143   :  { %v402_v1 = vadd.f32 %v401_v7, %v2743_v33 }
 0x144   :  { %v2833_v47 = vpack.c.bf16 %v400_v58, %v396_v25  ;;  %v771_v58 = vunpack.c.l.bf16 %v2757_v63 }
 0x145   :  { %v2835_v57 = vpack.c.bf16 %v402_v1, %v398_v3 }
 0x147   :  { %3310 = vst [vmem:[#allocation30_spill] sm:$0xff] %v2835_v57  ;;  %v405_v17 = vpop.f32.mrb[36].mxu1 }
 0x148   :  { %v406_v51 = vadd.f32 %v405_v17, %v2741_v5  ;;  %v407_v41 = vpop.f32.mrb[37].mxu1  ;;  %v2171_v17 = vpop.eup %2170 }
 0x149   :  { %v408_v45 = vadd.f32 %v407_v41, %v2743_v33  ;;  %v409_v55 = vpop.f32.mrb[38].mxu1  ;;  %v774_v41 = vunpack.c.h.bf16 %v2753_v61 }
 0x14a   :  { %v410_v7 = vadd.f32 %v409_v55, %v2741_v5  ;;  %v411_v53 = vpop.f32.mrb[39].mxu1  ;;  %v775_v5 = vunpack.c.h.bf16 %v2757_v63 }
 0x14b   :  { %v412_v25 = vadd.f32 %v411_v53, %v2743_v33 }
 0x14c   :  { %v2841_v0 = vpack.c.bf16 %v410_v7, %v406_v51  ;;  %v2173_v51 = vpop.eup %2172  ;;  %v796_v7 = vmul.f32 0.5, %v2171_v17 }
 0x14d   :  { %v2843_v11 = vpack.c.bf16 %v412_v25, %v408_v45  ;;  %v2175_v55 = vpop.eup %2174 }
 0x14e   :  { %3311 = vst [vmem:[#allocation31_spill] sm:$0xff] %v2841_v0  ;;  %v2177_v53 = vpop.eup %2176  ;;  %v798_v0 = vadd.f32 0.5, %v796_v7 }
 0x14f   :  { %3312 = vst [vmem:[#allocation32_spill] sm:$0xff] %v2843_v11  ;;  %v759_v3 = vpop.f32.mrb[40].mxu1  ;;  %v788_v11 = vmul.f32 0.5, %v2173_v51  ;;  %v789_v61 = vmul.f32 0.5, %v2177_v53 }
 0x150   :  { %v778_v1 = vadd.f32 %v770_v46, %v759_v3  ;;  %v761_v56 = vpop.f32.mrb[41].mxu1  ;;  %v797_v46 = vmul.f32 0.5, %v2175_v55 }
 0x151   :  { %v779_v54 = vadd.f32 %v771_v58, %v761_v56  ;;  %v763_v48 = vpop.f32.mrb[42].mxu1  ;;  %v790_v58 = vadd.f32 0.5, %v788_v11 }
 0x152   :  { %2178 = vtanh.f32 %v778_v1  ;;  %v782_v33 = vadd.f32 %v774_v41, %v763_v48  ;;  %v765_v52 = vpop.f32.mrb[43].mxu1  ;;  %v799_v56 = vadd.f32 0.5, %v797_v46  ;;  %v810_v1 = vmul.f32 0.0, %v798_v0 }
 0x153   :  { %v783_v45 = vadd.f32 %v775_v5, %v765_v52  ;;  %v802_v25 = vmul.f32 0.5, %v779_v54  ;;  %v791_v41 = vadd.f32 0.5, %v789_v61 }
 0x154   :  { %2180 = vtanh.f32 %v782_v33  ;;  %v811_v5 = vmul.f32 0.0, %v799_v56 }
 0x155   :  { %v803_v3 = vmul.f32 0.5, %v783_v45  ;;  %2182 = vtanh.f32 %v802_v25 }
 0x157   :  { %2184 = vtanh.f32 %v803_v3 }
 0x15c   :  { %v2179_v63 = vpop.eup %2178 }
 0x15d   :  { %v812_v48 = vmul.f32 %v2179_v63, %v790_v58 }
 0x15e   :  { %v2181_v57 = vpop.eup %2180 }
 0x15f   :  { %v2849_v52 = vadd.f32 %v812_v48, %v810_v1  ;;  %v813_v17 = vmul.f32 %v2181_v57, %v791_v41  ;;  %v2183_v33 = vpop.eup %2182  ;;  %v3313_v57 = vmov 0   ;;  %v918_v41 = vunpack.c.h.bf16 %v2735_v2 }
 0x160   :  { %v806_v11 = vmul.f32 0.5, %v2183_v33  ;;  %v919_v33 = vunpack.c.h.bf16 %v2739_v4 }
 0x161   :  { %2186 = vtanh.f32 %v2849_v52  ;;  %v2852_v54 = vadd.f32 %v813_v17, %v811_v5  ;;  %v2185_v51 = vpop.eup %2184 }
 0x162   :  { %v807_v45 = vmul.f32 0.5, %v2185_v51  ;;  %v808_v7 = vadd.f32 0.5, %v806_v11 }
 0x163   :  { %2188 = vtanh.f32 %v2852_v54 }
 0x164   :  { %v809_v0 = vadd.f32 0.5, %v807_v45 }
 0x16b   :  { %v2187_v55 = vpop.eup %2186 }
 0x16c   :  { %v818_v25 = vmul.f32 %v2187_v55, %v808_v7 }
 0x16d   :  { %v2189_v53 = vpop.eup %2188 }
 0x16e   :  { %v819_v46 = vmul.f32 %v2189_v53, %v809_v0 }
 0x170   :  { %v827_v3 = vpack.c.bf16 %v819_v46, %v818_v25 }
 0x172   :  { %861 = vmatmul.mubr.bf16.vlgmr.msra.gmra.mrb[28].mxu0 %v827_v3  ;;  %904 = vmatmul.mubr.bf16.vlgmr.msra.gmra.mrb[44].mxu1 %v827_v3 }
 0x173   :  { %975 = vmatpush1.bf16.msra.mxu0 %v2526_v10  ;;  %1018 = vmatpush1.bf16.msra.mxu1 %v2557_v18  ;;  %v914_v10 = vunpack.c.l.bf16 %v2735_v2 }
 0x174   :  { %976 = vmatprep.subr.bf16.mxu0 %v2536_v12  ;;  %1019 = vmatprep.subr.bf16.mxu1 %v2559_v19  ;;  %v916_v12 = vunpack.c.l.bf16 %v2769_v60 }
 0x175   :  { %1006 = vmatprep.mubr.bf16.mxu0 %v3313_v57  ;;  %1049 = vmatprep.mubr.bf16.mxu1 %v3313_v57 }
 0x177   :  { %977 = vmatpush1.bf16.msra.mxu0 %v2538_v13  ;;  %1020 = vmatpush1.bf16.msra.mxu1 %v2571_v22 }
 0x178   :  { %978 = vmatprep.subr.bf16.mxu0 %v2541_v14  ;;  %1021 = vmatprep.subr.bf16.mxu1 %v2575_v23 }
 0x17b   :  { %979 = vmatpush1.bf16.msra.mxu0 %v2549_v15  ;;  %1022 = vmatpush1.bf16.msra.mxu1 %v2585_v26  ;;  %v915_v15 = vunpack.c.l.bf16 %v2739_v4 }
 0x17c   :  { %980 = vmatprep.subr.bf16.mxu0 %v2552_v16  ;;  %1023 = vmatprep.subr.bf16.mxu1 %v2593_v29  ;;  %v3314_v16 = vld [vmem:[#allocation21_spill] sm:$0xff] }
 0x17d   :  { %v917_v61 = vunpack.c.l.bf16 %v3314_v16  ;;  %v921_v51 = vunpack.c.h.bf16 %v3314_v16 }
 0x17f   :  { %981 = vmatpush1.bf16.msra.mxu0 %v2563_v20  ;;  %1024 = vmatpush1.bf16.msra.mxu1 %v2603_v32 }
 0x180   :  { %982 = vmatprep.subr.bf16.mxu0 %v2567_v21  ;;  %1025 = vmatprep.subr.bf16.mxu1 %v2610_v34 }
 0x183   :  { %983 = vmatpush1.bf16.msra.mxu0 %v2578_v24  ;;  %1026 = vmatpush1.bf16.msra.mxu1 %v2617_v36 }
 0x184   :  { %984 = vmatprep.subr.bf16.mxu0 %v2587_v27  ;;  %1027 = vmatprep.subr.bf16.mxu1 %v2624_v38 }
 0x187   :  { %985 = vmatpush1.bf16.msra.mxu0 %v2590_v28  ;;  %1028 = vmatpush1.bf16.msra.mxu1 %v2632_v39 }
 0x188   :  { %986 = vmatprep.subr.bf16.mxu0 %v2597_v30  ;;  %1029 = vmatprep.subr.bf16.mxu1 %v2636_v40 }
 0x18b   :  { %987 = vmatpush1.bf16.msra.mxu0 %v2601_v31  ;;  %1030 = vmatpush1.bf16.msra.mxu1 %v2643_v42 }
 0x18c   :  { %988 = vmatprep.subr.bf16.mxu0 %v2615_v35  ;;  %1031 = vmatprep.subr.bf16.mxu1 %v2646_v43 }
 0x18f   :  { %989 = vmatpush1.bf16.msra.mxu0 %v2619_v37  ;;  %1032 = vmatpush1.bf16.msra.mxu1 %v2653_v44 }
 0x190   :  { %1120 = vmatprep.subr.bf16.mxu0 %v2522_v8  ;;  %1163 = vmatprep.subr.bf16.mxu1 %v2524_v9  ;;  %v920_v8 = vunpack.c.h.bf16 %v2769_v60 }
 0x245   :  { %v862_v13 = vpop.f32.mrb[28].mxu0  ;;  %v905_v14 = vpop.f32.mrb[44].mxu1 }
 0x246   :  { %v922_v58 = vadd.f32 %v914_v10, %v862_v13  ;;  %v924_v56 = vadd.f32 %v916_v12, %v905_v14  ;;  %v864_v63 = vpop.f32.mrb[29].mxu0  ;;  %v907_v1 = vpop.f32.mrb[45].mxu1 }
 0x247   :  { %v923_v48 = vadd.f32 %v915_v15, %v864_v63  ;;  %v925_v9 = vadd.f32 %v917_v61, %v907_v1  ;;  %v866_v5 = vpop.f32.mrb[30].mxu0  ;;  %v909_v17 = vpop.f32.mrb[46].mxu1 }
 0x248   :  { %v930_v11 = vmul.f32 0.5, %v922_v58  ;;  %v926_v45 = vadd.f32 %v918_v41, %v866_v5  ;;  %v928_v55 = vadd.f32 %v920_v8, %v909_v17  ;;  %v868_v7 = vpop.f32.mrb[31].mxu0  ;;  %v911_v0 = vpop.f32.mrb[47].mxu1 }
 0x249   :  { %v938_v53 = vmul.f32 0.5, %v923_v48  ;;  %v927_v25 = vadd.f32 %v919_v33, %v868_v7  ;;  %v929_v46 = vadd.f32 %v921_v51, %v911_v0  ;;  %v948_v12 = vmul.f32 0.5, %v925_v9 }
 0x24a   :  { %2190 = vtanh.f32 %v930_v11  ;;  %v931_v2 = vmul.f32 0.5, %v926_v45 }
 0x24b   :  { %2192 = vtanh.f32 %v938_v53  ;;  %v939_v60 = vmul.f32 0.5, %v927_v25  ;;  %v949_v14 = vmul.f32 0.5, %v929_v46 }
 0x24c   :  { %2194 = vtanh.f32 %v931_v2 }
 0x24d   :  { %2196 = vtanh.f32 %v924_v56 }
 0x24e   :  { %2198 = vtanh.f32 %v939_v60 }
 0x24f   :  { %2200 = vtanh.f32 %v928_v55 }
 0x250   :  { %2202 = vtanh.f32 %v948_v12  ;;  %v2919_v12 = vld [vmem:[#allocation8 + $0x44] ss:$16 sps:$4 sm:$0xff]  }
 0x251   :  { %2204 = vtanh.f32 %v949_v14 }
 0x254   :  { %v2191_v3 = vpop.eup %2190 }
 0x255   :  { %v2193_v4 = vpop.eup %2192  ;;  %v934_v10 = vmul.f32 0.5, %v2191_v3 }
 0x256   :  { %v942_v13 = vmul.f32 0.5, %v2193_v4  ;;  %v2195_v15 = vpop.eup %2194  ;;  %v2909_v4 = vld [vmem:[#allocation8 + $0x24] ss:$16 sps:$4 sm:$0xff]  }
 0x257   :  { %v936_v16 = vadd.f32 0.5, %v934_v10  ;;  %v2197_v61 = vpop.eup %2196  ;;  %v935_v63 = vmul.f32 0.5, %v2195_v15  ;;  %v2915_v10 = vld [vmem:[#allocation8 + $0x20] ss:$16 sps:$4 sm:$0xff]  }
 0x258   :  { %v944_v58 = vadd.f32 0.5, %v942_v13  ;;  %v2199_v1 = vpop.eup %2198 }
 0x259   :  { %v958_v41 = vmul.f32 %v2197_v61, %v936_v16  ;;  %v937_v48 = vadd.f32 0.5, %v935_v63  ;;  %v943_v56 = vmul.f32 0.5, %v2199_v1  ;;  %v2201_v5 = vpop.eup %2200 }
 0x25a   :  { %v956_v8 = vmul.f32 %v944_v58, %v2849_v52  ;;  %v2203_v45 = vpop.eup %2202 }
 0x25b   :  { %v945_v33 = vadd.f32 0.5, %v943_v56  ;;  %v959_v9 = vmul.f32 %v2201_v5, %v937_v48  ;;  %v2205_v55 = vpop.eup %2204  ;;  %v952_v7 = vmul.f32 0.5, %v2203_v45 }
 0x25c   :  { %v2898_v17 = vadd.f32 %v958_v41, %v956_v8  ;;  %v953_v52 = vmul.f32 0.5, %v2205_v55 }
 0x25d   :  { %v957_v51 = vmul.f32 %v945_v33, %v2852_v54  ;;  %v954_v53 = vadd.f32 0.5, %v952_v7  ;;  %v2905_v54 = vld [vmem:[#allocation8] ss:$16 sps:$4 sm:$0xff]  }
 0x25e   :  { %2206 = vtanh.f32 %v2898_v17  ;;  %v955_v25 = vadd.f32 0.5, %v953_v52 }
 0x25f   :  { %v2902_v11 = vadd.f32 %v959_v9, %v957_v51 }
 0x261   :  { %2208 = vtanh.f32 %v2902_v11 }
 0x268   :  { %v2207_v0 = vpop.eup %2206 }
 0x269   :  { %v964_v2 = vmul.f32 %v2207_v0, %v954_v53 }
 0x26b   :  { %v2209_v46 = vpop.eup %2208 }
 0x26c   :  { %v965_v60 = vmul.f32 %v2209_v46, %v955_v25 }
 0x26e   :  { %v973_v3 = vpack.c.bf16 %v965_v60, %v964_v2 }
 0x270   :  { %1007 = vmatmul.mubr.bf16.vlgmr.msra.gmra.mrb[32].mxu0 %v973_v3  ;;  %1050 = vmatmul.mubr.bf16.vlgmr.msra.gmra.mrb[48].mxu1 %v973_v3 }
 0x271   :  { %1121 = vmatpush1.bf16.msra.mxu0 %v2905_v54  ;;  %1164 = vmatpush1.bf16.msra.mxu1 %v2557_v18  ;;  %v2923_v18 = vld [vmem:[#allocation8 + $0x40] ss:$16 sps:$4 sm:$0xff]  }
 0x272   :  { %1122 = vmatprep.subr.bf16.mxu0 %v2909_v4  ;;  %1165 = vmatprep.subr.bf16.mxu1 %v2559_v19  ;;  %v2927_v19 = vld [vmem:[#allocation8 + $0x64] ss:$16 sps:$4 sm:$0xff]  }
 0x273   :  { %1152 = vmatprep.mubr.bf16.mxu0 %v3313_v57  ;;  %1195 = vmatprep.mubr.bf16.mxu1 %v3313_v57 }
 0x275   :  { %1123 = vmatpush1.bf16.msra.mxu0 %v2915_v10  ;;  %1166 = vmatpush1.bf16.msra.mxu1 %v2571_v22  ;;  %v3315_v22 = vld [vmem:[#allocation18_spill] sm:$0xff] }
 0x276   :  { %1124 = vmatprep.subr.bf16.mxu0 %v2919_v12  ;;  %1167 = vmatprep.subr.bf16.mxu1 %v2575_v23  ;;  %v1060_v23 = vunpack.c.l.bf16 %v3315_v22 }
 0x279   :  { %1125 = vmatpush1.bf16.msra.mxu0 %v2923_v18  ;;  %1168 = vmatpush1.bf16.msra.mxu1 %v2585_v26 }
 0x27a   :  { %1126 = vmatprep.subr.bf16.mxu0 %v2927_v19  ;;  %1169 = vmatprep.subr.bf16.mxu1 %v2593_v29 }
 0x27d   :  { %1127 = vmatpush1.bf16.msra.mxu0 %v2563_v20  ;;  %1170 = vmatpush1.bf16.msra.mxu1 %v2603_v32  ;;  %v2949_v20 = vld [vmem:[#allocation8 + $0x4] ss:$16 sps:$4 sm:$0xff]  }
 0x27e   :  { %1128 = vmatprep.subr.bf16.mxu0 %v2567_v21  ;;  %1171 = vmatprep.subr.bf16.mxu1 %v2610_v34  ;;  %v2952_v21 = vld [vmem:[#allocation8 + $0xc] ss:$16 sps:$4 sm:$0xff]  }
 0x281   :  { %1129 = vmatpush1.bf16.msra.mxu0 %v2578_v24  ;;  %1172 = vmatpush1.bf16.msra.mxu1 %v2617_v36  ;;  %v1062_v24 = vunpack.c.l.bf16 %v2785_v59 }
 0x282   :  { %1130 = vmatprep.subr.bf16.mxu0 %v2587_v27  ;;  %1173 = vmatprep.subr.bf16.mxu1 %v2624_v38  ;;  %v1066_v38 = vunpack.c.h.bf16 %v2785_v59 }
 0x285   :  { %1131 = vmatpush1.bf16.msra.mxu0 %v2590_v28  ;;  %1174 = vmatpush1.bf16.msra.mxu1 %v2632_v39  ;;  %v3316_v28 = vld [vmem:[#allocation19_spill] sm:$0xff] }
 0x286   :  { %1132 = vmatprep.subr.bf16.mxu0 %v2597_v30  ;;  %1175 = vmatprep.subr.bf16.mxu1 %v2636_v40  ;;  %v1061_v29 = vunpack.c.l.bf16 %v3316_v28  ;;  %v3317_v30 = vld [vmem:[#allocation24_spill] sm:$0xff] }
 0x287   :  { %v1067_v13 = vunpack.c.h.bf16 %v3317_v30 }
 0x289   :  { %1133 = vmatpush1.bf16.msra.mxu0 %v2601_v31  ;;  %1176 = vmatpush1.bf16.msra.mxu1 %v2643_v42  ;;  %v1063_v31 = vunpack.c.l.bf16 %v3317_v30 }
 0x28a   :  { %1134 = vmatprep.subr.bf16.mxu0 %v2615_v35  ;;  %1177 = vmatprep.subr.bf16.mxu1 %v2646_v43 }
 0x28d   :  { %1135 = vmatpush1.bf16.msra.mxu0 %v2619_v37  ;;  %1178 = vmatpush1.bf16.msra.mxu1 %v2653_v44  ;;  %v1064_v37 = vunpack.c.h.bf16 %v3315_v22  ;;  %v1065_v44 = vunpack.c.h.bf16 %v3316_v28 }
 0x28e   :  { %1266 = vmatprep.subr.bf16.mxu0 %v2949_v20  ;;  %1309 = vmatprep.subr.bf16.mxu1 %v2952_v21 }
 0x343   :  { %v1008_v26 = vpop.f32.mrb[32].mxu0  ;;  %v1051_v27 = vpop.f32.mrb[48].mxu1 }
 0x344   :  { %v1068_v32 = vadd.f32 %v1060_v23, %v1008_v26  ;;  %v1070_v34 = vadd.f32 %v1062_v24, %v1051_v27  ;;  %v1010_v35 = vpop.f32.mrb[33].mxu0  ;;  %v1053_v36 = vpop.f32.mrb[49].mxu1 }
 0x345   :  { %v1069_v39 = vadd.f32 %v1061_v29, %v1010_v35  ;;  %v1071_v40 = vadd.f32 %v1063_v31, %v1053_v36  ;;  %v1012_v42 = vpop.f32.mrb[34].mxu0  ;;  %v1055_v43 = vpop.f32.mrb[50].mxu1 }
 0x346   :  { %v1076_v14 = vmul.f32 0.5, %v1068_v32  ;;  %v1072_v15 = vadd.f32 %v1064_v37, %v1012_v42  ;;  %v1074_v16 = vadd.f32 %v1066_v38, %v1055_v43  ;;  %v1014_v61 = vpop.f32.mrb[35].mxu0  ;;  %v1057_v58 = vpop.f32.mrb[51].mxu1  ;;  %v2986_v42 = vld [vmem:[#allocation8 + $0x4c] ss:$16 sps:$4 sm:$0xff]  }
 0x347   :  { %v1084_v63 = vmul.f32 0.5, %v1069_v39  ;;  %v1073_v1 = vadd.f32 %v1065_v44, %v1014_v61  ;;  %v1075_v41 = vadd.f32 %v1067_v13, %v1057_v58  ;;  %v1094_v33 = vmul.f32 0.5, %v1071_v40  ;;  %v2976_v39 = vld [vmem:[#allocation8 + $0x2c] ss:$16 sps:$4 sm:$0xff]   ;;  %v2982_v40 = vld [vmem:[#allocation8 + $0x28] ss:$16 sps:$4 sm:$0xff]  }
 0x348   :  { %2210 = vtanh.f32 %v1076_v14  ;;  %v1077_v8 = vmul.f32 0.5, %v1072_v15  ;;  %v2990_v43 = vld [vmem:[#allocation8 + $0x48] ss:$16 sps:$4 sm:$0xff]   ;;  %v2994_v44 = vld [vmem:[#allocation8 + $0x6c] ss:$16 sps:$4 sm:$0xff]  }
 0x349   :  { %2212 = vtanh.f32 %v1084_v63  ;;  %v1085_v59 = vmul.f32 0.5, %v1073_v1  ;;  %v1095_v51 = vmul.f32 0.5, %v1075_v41  ;;  %v2997_v13 = vld [vmem:[#allocation8 + $0x60] ss:$16 sps:$4 sm:$0xff]   ;;  %v3000_v14 = vld [vmem:[#allocation8 + $0x68] ss:$16 sps:$4 sm:$0xff]  }
 0x34a   :  { %2214 = vtanh.f32 %v1077_v8  ;;  %v3003_v15 = vld [vmem:[#allocation8 + $0x84] ss:$16 sps:$4 sm:$0xff]   ;;  %v3009_v61 = vld [vmem:[#allocation8 + $0x80] ss:$16 sps:$4 sm:$0xff]   ;;  %v3012_v58 = vld [vmem:[#allocation8 + $0x88] ss:$16 sps:$4 sm:$0xff]  }
 0x34b   :  { %2216 = vtanh.f32 %v1070_v34  ;;  %v3015_v63 = vld [vmem:[#allocation8 + $0xa4] ss:$16 sps:$4 sm:$0xff]   ;;  %v3018_v1 = vld [vmem:[#allocation8 + $0xac] ss:$16 sps:$4 sm:$0xff]   ;;  %v3021_v41 = vld [vmem:[#allocation8 + $0xa0] ss:$16 sps:$4 sm:$0xff]  }
 0x34c   :  { %2218 = vtanh.f32 %v1085_v59  ;;  %v3024_v8 = vld [vmem:[#allocation8 + $0xa8] ss:$16 sps:$4 sm:$0xff]   ;;  %v3027_v59 = vld [vmem:[#allocation8 + $0xc4] ss:$16 sps:$4 sm:$0xff]  }
 0x34d   :  { %2220 = vtanh.f32 %v1074_v16  ;;  %v3006_v16 = vld [vmem:[#allocation8 + $0x8c] ss:$16 sps:$4 sm:$0xff]  }
 0x34e   :  { %2222 = vtanh.f32 %v1094_v33  ;;  %v3039_v33 = vld [vmem:[#allocation8 + $0xe4] ss:$16 sps:$4 sm:$0xff]  }
 0x34f   :  { %2224 = vtanh.f32 %v1095_v51  ;;  %v3045_v51 = vld [vmem:[#allocation8 + $0xe0] ss:$16 sps:$4 sm:$0xff]  }
 0x352   :  { %v2211_v48 = vpop.eup %2210 }
 0x353   :  { %v2213_v56 = vpop.eup %2212  ;;  %v1080_v5 = vmul.f32 0.5, %v2211_v48  ;;  %v3030_v48 = vld [vmem:[#allocation8 + $0xcc] ss:$16 sps:$4 sm:$0xff]  }
 0x354   :  { %v1088_v9 = vmul.f32 0.5, %v2213_v56  ;;  %v2215_v45 = vpop.eup %2214  ;;  %v3033_v56 = vld [vmem:[#allocation8 + $0xc0] ss:$16 sps:$4 sm:$0xff]  }
 0x355   :  { %v1082_v55 = vadd.f32 0.5, %v1080_v5  ;;  %v2217_v7 = vpop.eup %2216  ;;  %v1081_v0 = vmul.f32 0.5, %v2215_v45  ;;  %v3036_v5 = vld [vmem:[#allocation8 + $0xc8] ss:$16 sps:$4 sm:$0xff]  }
 0x356   :  { %v1090_v52 = vadd.f32 0.5, %v1088_v9  ;;  %v2219_v53 = vpop.eup %2218  ;;  %v3042_v9 = vld [vmem:[#allocation8 + $0xec] ss:$16 sps:$4 sm:$0xff]   ;;  %v3048_v45 = vld [vmem:[#allocation8 + $0xe8] ss:$16 sps:$4 sm:$0xff]  }
 0x357   :  { %v1104_v25 = vmul.f32 %v2217_v7, %v1082_v55  ;;  %v1083_v2 = vadd.f32 0.5, %v1081_v0  ;;  %v1089_v60 = vmul.f32 0.5, %v2219_v53  ;;  %v2221_v3 = vpop.eup %2220  ;;  %v3318_v55 = vld [vmem:[#allocation20_spill] sm:$0xff] }
 0x358   :  { %v1102_v46 = vmul.f32 %v1090_v52, %v2898_v17  ;;  %v2223_v28 = vpop.eup %2222  ;;  %v1206_v7 = vunpack.c.l.bf16 %v3318_v55  ;;  %v1208_v52 = vunpack.c.l.bf16 %v2801_v49 }
 0x359   :  { %v1091_v23 = vadd.f32 0.5, %v1089_v60  ;;  %v1105_v24 = vmul.f32 %v2221_v3, %v1083_v2  ;;  %v2225_v29 = vpop.eup %2224  ;;  %v1098_v30 = vmul.f32 0.5, %v2223_v28  ;;  %v1209_v2 = vunpack.c.l.bf16 %v2805_v6 }
 0x35a   :  { %v2964_v22 = vadd.f32 %v1104_v25, %v1102_v46  ;;  %v1099_v17 = vmul.f32 0.5, %v2225_v29  ;;  %v3319_v25 = vld [vmem:[#allocation22_spill] sm:$0xff]  ;;  %v1212_v28 = vunpack.c.h.bf16 %v2801_v49 }
 0x35b   :  { %v1103_v26 = vmul.f32 %v1091_v23, %v2902_v11  ;;  %v1100_v32 = vadd.f32 0.5, %v1098_v30  ;;  %v2972_v11 = vld [vmem:[#allocation8 + $0x8] ss:$16 sps:$4 sm:$0xff]   ;;  %v1207_v46 = vunpack.c.l.bf16 %v3319_v25 }
 0x35c   :  { %2226 = vtanh.f32 %v2964_v22  ;;  %v1101_v34 = vadd.f32 0.5, %v1099_v17 }
 0x35d   :  { %v2968_v27 = vadd.f32 %v1105_v24, %v1103_v26  ;;  %v1210_v26 = vunpack.c.h.bf16 %v3318_v55 }
 0x35f   :  { %2228 = vtanh.f32 %v2968_v27 }
 0x366   :  { %v2227_v31 = vpop.eup %2226 }
 0x367   :  { %v1110_v36 = vmul.f32 %v2227_v31, %v1100_v32  ;;  %v1211_v32 = vunpack.c.h.bf16 %v3319_v25 }
 0x369   :  { %v2229_v35 = vpop.eup %2228 }
 0x36a   :  { %v1111_v37 = vmul.f32 %v2229_v35, %v1101_v34  ;;  %v1213_v34 = vunpack.c.h.bf16 %v2805_v6 }
 0x36c   :  { %v1119_v38 = vpack.c.bf16 %v1111_v37, %v1110_v36 }
 0x36e   :  { %1153 = vmatmul.mubr.bf16.vlgmr.msra.gmra.mrb[36].mxu0 %v1119_v38  ;;  %1196 = vmatmul.mubr.bf16.vlgmr.msra.gmra.mrb[52].mxu1 %v1119_v38 }
 0x36f   :  { %1267 = vmatpush1.bf16.msra.mxu0 %v2905_v54  ;;  %1310 = vmatpush1.bf16.msra.mxu1 %v2972_v11 }
 0x370   :  { %1268 = vmatprep.subr.bf16.mxu0 %v2909_v4  ;;  %1311 = vmatprep.subr.bf16.mxu1 %v2976_v39 }
 0x371   :  { %1298 = vmatprep.mubr.bf16.mxu0 %v3313_v57  ;;  %1341 = vmatprep.mubr.bf16.mxu1 %v3313_v57 }
 0x373   :  { %1269 = vmatpush1.bf16.msra.mxu0 %v2915_v10  ;;  %1312 = vmatpush1.bf16.msra.mxu1 %v2982_v40 }
 0x374   :  { %1270 = vmatprep.subr.bf16.mxu0 %v2919_v12  ;;  %1313 = vmatprep.subr.bf16.mxu1 %v2986_v42 }
 0x377   :  { %1271 = vmatpush1.bf16.msra.mxu0 %v2923_v18  ;;  %1314 = vmatpush1.bf16.msra.mxu1 %v2990_v43 }
 0x378   :  { %1272 = vmatprep.subr.bf16.mxu0 %v2927_v19  ;;  %1315 = vmatprep.subr.bf16.mxu1 %v2994_v44 }
 0x37b   :  { %1273 = vmatpush1.bf16.msra.mxu0 %v2997_v13  ;;  %1316 = vmatpush1.bf16.msra.mxu1 %v3000_v14 }
 0x37c   :  { %1274 = vmatprep.subr.bf16.mxu0 %v3003_v15  ;;  %1317 = vmatprep.subr.bf16.mxu1 %v3006_v16 }
 0x37f   :  { %1275 = vmatpush1.bf16.msra.mxu0 %v3009_v61  ;;  %1318 = vmatpush1.bf16.msra.mxu1 %v3012_v58 }
 0x380   :  { %1276 = vmatprep.subr.bf16.mxu0 %v3015_v63  ;;  %1319 = vmatprep.subr.bf16.mxu1 %v3018_v1 }
 0x383   :  { %1277 = vmatpush1.bf16.msra.mxu0 %v3021_v41  ;;  %1320 = vmatpush1.bf16.msra.mxu1 %v3024_v8 }
 0x384   :  { %1278 = vmatprep.subr.bf16.mxu0 %v3027_v59  ;;  %1321 = vmatprep.subr.bf16.mxu1 %v3030_v48 }
 0x387   :  { %1279 = vmatpush1.bf16.msra.mxu0 %v3033_v56  ;;  %1322 = vmatpush1.bf16.msra.mxu1 %v3036_v5 }
 0x388   :  { %1280 = vmatprep.subr.bf16.mxu0 %v3039_v33  ;;  %1323 = vmatprep.subr.bf16.mxu1 %v3042_v9 }
 0x38b   :  { %1281 = vmatpush1.bf16.msra.mxu0 %v3045_v51  ;;  %1324 = vmatpush1.bf16.msra.mxu1 %v3048_v45 }
 0x38c   :  { %1412 = vmatprep.subr.bf16.mxu0 %v2949_v20  ;;  %1455 = vmatprep.subr.bf16.mxu1 %v2952_v21 }
 0x441   :  { %v1154_v0 = vpop.f32.mrb[36].mxu0  ;;  %v1197_v53 = vpop.f32.mrb[52].mxu1 }
 0x442   :  { %v1214_v60 = vadd.f32 %v1206_v7, %v1154_v0  ;;  %v1216_v3 = vadd.f32 %v1208_v52, %v1197_v53  ;;  %v1156_v23 = vpop.f32.mrb[37].mxu0  ;;  %v1199_v24 = vpop.f32.mrb[53].mxu1 }
 0x443   :  { %v1215_v29 = vadd.f32 %v1207_v46, %v1156_v23  ;;  %v1217_v30 = vadd.f32 %v1209_v2, %v1199_v24  ;;  %v1158_v17 = vpop.f32.mrb[38].mxu0  ;;  %v1201_v31 = vpop.f32.mrb[54].mxu1 }
 0x444   :  { %v1222_v35 = vmul.f32 0.5, %v1214_v60  ;;  %v1218_v36 = vadd.f32 %v1210_v26, %v1158_v17  ;;  %v1220_v37 = vadd.f32 %v1212_v28, %v1201_v31  ;;  %v1160_v38 = vpop.f32.mrb[39].mxu0  ;;  %v1203_v7 = vpop.f32.mrb[55].mxu1 }
 0x445   :  { %v1230_v52 = vmul.f32 0.5, %v1215_v29  ;;  %v1219_v0 = vadd.f32 %v1211_v32, %v1160_v38  ;;  %v1221_v53 = vadd.f32 %v1213_v34, %v1203_v7  ;;  %v1240_v6 = vmul.f32 0.5, %v1217_v30 }
 0x446   :  { %2230 = vtanh.f32 %v1222_v35  ;;  %v1223_v55 = vmul.f32 0.5, %v1218_v36 }
 0x447   :  { %2232 = vtanh.f32 %v1230_v52  ;;  %v1231_v49 = vmul.f32 0.5, %v1219_v0  ;;  %v1241_v23 = vmul.f32 0.5, %v1221_v53 }
 0x448   :  { %2234 = vtanh.f32 %v1223_v55 }
 0x449   :  { %2236 = vtanh.f32 %v1216_v3 }
 0x44a   :  { %2238 = vtanh.f32 %v1231_v49 }
 0x44b   :  { %2240 = vtanh.f32 %v1220_v37 }
 0x44c   :  { %2242 = vtanh.f32 %v1240_v6 }
 0x44d   :  { %2244 = vtanh.f32 %v1241_v23 }
 0x450   :  { %v2231_v46 = vpop.eup %2230 }
 0x451   :  { %v2233_v25 = vpop.eup %2232  ;;  %v1226_v2 = vmul.f32 0.5, %v2231_v46 }
 0x452   :  { %v1234_v60 = vmul.f32 0.5, %v2233_v25  ;;  %v2235_v24 = vpop.eup %2234 }
 0x453   :  { %v1228_v26 = vadd.f32 0.5, %v1226_v2  ;;  %v2237_v28 = vpop.eup %2236  ;;  %v1227_v17 = vmul.f32 0.5, %v2235_v24 }
 0x454   :  { %v1236_v29 = vadd.f32 0.5, %v1234_v60  ;;  %v2239_v31 = vpop.eup %2238 }
 0x455   :  { %v1250_v32 = vmul.f32 %v2237_v28, %v1228_v26  ;;  %v1229_v35 = vadd.f32 0.5, %v1227_v17  ;;  %v1235_v3 = vmul.f32 0.5, %v2239_v31  ;;  %v2241_v36 = vpop.eup %2240  ;;  %v1354_v26 = vunpack.c.l.bf16 %v2817_v62  ;;  %v3321_v17 = vld [vmem:[#allocation25_spill] sm:$0xff] }
 0x456   :  { %v1248_v34 = vmul.f32 %v1236_v29, %v2964_v22  ;;  %v2243_v0 = vpop.eup %2242  ;;  %v1353_v31 = vunpack.c.l.bf16 %v3321_v17 }
 0x457   :  { %v1237_v38 = vadd.f32 0.5, %v1235_v3  ;;  %v1251_v30 = vmul.f32 %v2241_v36, %v1229_v35  ;;  %v2245_v53 = vpop.eup %2244  ;;  %v1244_v55 = vmul.f32 0.5, %v2243_v0 }
 0x458   :  { %v3062_v37 = vadd.f32 %v1250_v32, %v1248_v34  ;;  %v1245_v22 = vmul.f32 0.5, %v2245_v53  ;;  %v3322_v32 = vld [vmem:[#allocation28_spill] sm:$0xff] }
 0x459   :  { %v1249_v7 = vmul.f32 %v1237_v38, %v2968_v27  ;;  %v1246_v46 = vadd.f32 0.5, %v1244_v55  ;;  %v3320_v27 = vld [vmem:[#allocation23_spill] sm:$0xff]  ;;  %v1355_v34 = vunpack.c.l.bf16 %v3322_v32 }
 0x45a   :  { %2246 = vtanh.f32 %v3062_v37  ;;  %v1247_v25 = vadd.f32 0.5, %v1245_v22  ;;  %v1352_v24 = vunpack.c.l.bf16 %v3320_v27 }
 0x45b   :  { %v3066_v52 = vadd.f32 %v1251_v30, %v1249_v7  ;;  %v1356_v30 = vunpack.c.h.bf16 %v3320_v27  ;;  %v1358_v7 = vunpack.c.h.bf16 %v2817_v62 }
 0x45d   :  { %2248 = vtanh.f32 %v3066_v52 }
 0x464   :  { %v2247_v49 = vpop.eup %2246 }
 0x465   :  { %v1256_v6 = vmul.f32 %v2247_v49, %v1246_v46  ;;  %v1357_v49 = vunpack.c.h.bf16 %v3321_v17  ;;  %v1359_v46 = vunpack.c.h.bf16 %v3322_v32 }
 0x467   :  { %v2249_v2 = vpop.eup %2248 }
 0x468   :  { %v1257_v60 = vmul.f32 %v2249_v2, %v1247_v25 }
 0x46a   :  { %v1265_v23 = vpack.c.bf16 %v1257_v60, %v1256_v6 }
 0x46c   :  { %1299 = vmatmul.mubr.bf16.vlgmr.msra.gmra.mrb[40].mxu0 %v1265_v23  ;;  %1342 = vmatmul.mubr.bf16.vlgmr.msra.gmra.mrb[56].mxu1 %v1265_v23 }
 0x46d   :  { %1413 = vmatpush1.bf16.msra.mxu0 %v2905_v54  ;;  %1456 = vmatpush1.bf16.msra.mxu1 %v2972_v11 }
 0x46e   :  { %1414 = vmatprep.subr.bf16.mxu0 %v2909_v4  ;;  %1457 = vmatprep.subr.bf16.mxu1 %v2976_v39 }
 0x46f   :  { %1444 = vmatprep.mubr.bf16.mxu0 %v3313_v57  ;;  %1487 = vmatprep.mubr.bf16.mxu1 %v3313_v57 }
 0x471   :  { %1415 = vmatpush1.bf16.msra.mxu0 %v2915_v10  ;;  %1458 = vmatpush1.bf16.msra.mxu1 %v2982_v40 }
 0x472   :  { %1416 = vmatprep.subr.bf16.mxu0 %v2919_v12  ;;  %1459 = vmatprep.subr.bf16.mxu1 %v2986_v42 }
 0x475   :  { %1417 = vmatpush1.bf16.msra.mxu0 %v2923_v18  ;;  %1460 = vmatpush1.bf16.msra.mxu1 %v2990_v43 }
 0x476   :  { %1418 = vmatprep.subr.bf16.mxu0 %v2927_v19  ;;  %1461 = vmatprep.subr.bf16.mxu1 %v2994_v44 }
 0x479   :  { %1419 = vmatpush1.bf16.msra.mxu0 %v2997_v13  ;;  %1462 = vmatpush1.bf16.msra.mxu1 %v3000_v14 }
 0x47a   :  { %1420 = vmatprep.subr.bf16.mxu0 %v3003_v15  ;;  %1463 = vmatprep.subr.bf16.mxu1 %v3006_v16 }
 0x47d   :  { %1421 = vmatpush1.bf16.msra.mxu0 %v3009_v61  ;;  %1464 = vmatpush1.bf16.msra.mxu1 %v3012_v58 }
 0x47e   :  { %1422 = vmatprep.subr.bf16.mxu0 %v3015_v63  ;;  %1465 = vmatprep.subr.bf16.mxu1 %v3018_v1 }
 0x481   :  { %1423 = vmatpush1.bf16.msra.mxu0 %v3021_v41  ;;  %1466 = vmatpush1.bf16.msra.mxu1 %v3024_v8 }
 0x482   :  { %1424 = vmatprep.subr.bf16.mxu0 %v3027_v59  ;;  %1467 = vmatprep.subr.bf16.mxu1 %v3030_v48 }
 0x485   :  { %1425 = vmatpush1.bf16.msra.mxu0 %v3033_v56  ;;  %1468 = vmatpush1.bf16.msra.mxu1 %v3036_v5 }
 0x486   :  { %1426 = vmatprep.subr.bf16.mxu0 %v3039_v33  ;;  %1469 = vmatprep.subr.bf16.mxu1 %v3042_v9 }
 0x489   :  { %1427 = vmatpush1.bf16.msra.mxu0 %v3045_v51  ;;  %1470 = vmatpush1.bf16.msra.mxu1 %v3048_v45 }
 0x48a   :  { %1558 = vmatprep.subr.bf16.mxu0 %v2949_v20  ;;  %1601 = vmatprep.subr.bf16.mxu1 %v2952_v21 }
 0x53f   :  { %v1300_v28 = vpop.f32.mrb[40].mxu0  ;;  %v1343_v29 = vpop.f32.mrb[56].mxu1 }
 0x540   :  { %v1360_v35 = vadd.f32 %v1352_v24, %v1300_v28  ;;  %v1362_v3 = vadd.f32 %v1354_v26, %v1343_v29  ;;  %v1302_v36 = vpop.f32.mrb[41].mxu0  ;;  %v1345_v38 = vpop.f32.mrb[57].mxu1 }
 0x541   :  { %v1361_v0 = vadd.f32 %v1353_v31, %v1302_v36  ;;  %v1363_v53 = vadd.f32 %v1355_v34, %v1345_v38  ;;  %v1304_v55 = vpop.f32.mrb[42].mxu0  ;;  %v1347_v22 = vpop.f32.mrb[58].mxu1 }
 0x542   :  { %v1368_v25 = vmul.f32 0.5, %v1360_v35  ;;  %v1364_v2 = vadd.f32 %v1356_v30, %v1304_v55  ;;  %v1366_v6 = vadd.f32 %v1358_v7, %v1347_v22  ;;  %v1306_v60 = vpop.f32.mrb[43].mxu0  ;;  %v1349_v23 = vpop.f32.mrb[59].mxu1 }
 0x543   :  { %v1376_v24 = vmul.f32 0.5, %v1361_v0  ;;  %v1365_v26 = vadd.f32 %v1357_v49, %v1306_v60  ;;  %v1367_v28 = vadd.f32 %v1359_v46, %v1349_v23  ;;  %v1386_v32 = vmul.f32 0.5, %v1363_v53 }
 0x544   :  { %2250 = vtanh.f32 %v1368_v25  ;;  %v1369_v27 = vmul.f32 0.5, %v1364_v2 }
 0x545   :  { %2252 = vtanh.f32 %v1376_v24  ;;  %v1377_v62 = vmul.f32 0.5, %v1365_v26  ;;  %v1387_v35 = vmul.f32 0.5, %v1367_v28 }
 0x546   :  { %2254 = vtanh.f32 %v1369_v27 }
 0x547   :  { %2256 = vtanh.f32 %v1362_v3 }
 0x548   :  { %2258 = vtanh.f32 %v1377_v62 }
 0x549   :  { %2260 = vtanh.f32 %v1366_v6 }
 0x54a   :  { %2262 = vtanh.f32 %v1386_v32 }
 0x54b   :  { %2264 = vtanh.f32 %v1387_v35 }
 0x54e   :  { %v2251_v29 = vpop.eup %2250 }
 0x54f   :  { %v2253_v17 = vpop.eup %2252  ;;  %v1372_v31 = vmul.f32 0.5, %v2251_v29 }
 0x550   :  { %v1380_v34 = vmul.f32 0.5, %v2253_v17  ;;  %v2255_v36 = vpop.eup %2254 }
 0x551   :  { %v1374_v38 = vadd.f32 0.5, %v1372_v31  ;;  %v2257_v30 = vpop.eup %2256  ;;  %v1373_v0 = vmul.f32 0.5, %v2255_v36  ;;  %v1500_v36 = vunpack.c.l.bf16 %v2825_v50 }
 0x552   :  { %v1382_v7 = vadd.f32 0.5, %v1380_v34  ;;  %v2259_v55 = vpop.eup %2258 }
 0x553   :  { %v1396_v22 = vmul.f32 %v2257_v30, %v1374_v38  ;;  %v1375_v46 = vadd.f32 0.5, %v1373_v0  ;;  %v1381_v3 = vmul.f32 0.5, %v2259_v55  ;;  %v2261_v25 = vpop.eup %2260  ;;  %v3325_v55 = vld [vmem:[#allocation29_spill] sm:$0xff] }
 0x554   :  { %v1394_v49 = vmul.f32 %v1382_v7, %v3062_v37  ;;  %v2263_v24 = vpop.eup %2262  ;;  %v3324_v7 = vld [vmem:[#allocation27_spill] sm:$0xff] }
 0x555   :  { %v1383_v6 = vadd.f32 0.5, %v1381_v3  ;;  %v1397_v53 = vmul.f32 %v2261_v25, %v1375_v46  ;;  %v2265_v26 = vpop.eup %2264  ;;  %v1390_v28 = vmul.f32 0.5, %v2263_v24  ;;  %v1499_v0 = vunpack.c.l.bf16 %v3324_v7 }
 0x556   :  { %v3112_v2 = vadd.f32 %v1396_v22, %v1394_v49  ;;  %v1391_v37 = vmul.f32 0.5, %v2265_v26  ;;  %v1501_v22 = vunpack.c.l.bf16 %v3325_v55  ;;  %v1503_v26 = vunpack.c.h.bf16 %v3324_v7 }
 0x557   :  { %v1395_v60 = vmul.f32 %v1383_v6, %v3066_v52  ;;  %v1392_v62 = vadd.f32 0.5, %v1390_v28  ;;  %v3323_v52 = vld [vmem:[#allocation26_spill] sm:$0xff]  ;;  %v1505_v28 = vunpack.c.h.bf16 %v3325_v55 }
 0x558   :  { %2266 = vtanh.f32 %v3112_v2  ;;  %v1393_v29 = vadd.f32 0.5, %v1391_v37  ;;  %v1498_v35 = vunpack.c.l.bf16 %v3323_v52  ;;  %v1502_v6 = vunpack.c.h.bf16 %v3323_v52 }
 0x559   :  { %v3116_v23 = vadd.f32 %v1397_v53, %v1395_v60 }
 0x55b   :  { %2268 = vtanh.f32 %v3116_v23 }
 0x562   :  { %v2267_v27 = vpop.eup %2266 }
 0x563   :  { %v1402_v31 = vmul.f32 %v2267_v27, %v1392_v62 }
 0x565   :  { %v2269_v17 = vpop.eup %2268 }
 0x566   :  { %v1403_v32 = vmul.f32 %v2269_v17, %v1393_v29 }
 0x568   :  { %v1411_v34 = vpack.c.bf16 %v1403_v32, %v1402_v31 }
 0x56a   :  { %1445 = vmatmul.mubr.bf16.vlgmr.msra.gmra.mrb[44].mxu0 %v1411_v34  ;;  %1488 = vmatmul.mubr.bf16.vlgmr.msra.gmra.mrb[60].mxu1 %v1411_v34 }
 0x56b   :  { %1559 = vmatpush1.bf16.msra.mxu0 %v2905_v54  ;;  %1602 = vmatpush1.bf16.msra.mxu1 %v2972_v11 }
 0x56c   :  { %1560 = vmatprep.subr.bf16.mxu0 %v2909_v4  ;;  %1603 = vmatprep.subr.bf16.mxu1 %v2976_v39 }
 0x56d   :  { %1590 = vmatprep.mubr.bf16.mxu0 %v3313_v57  ;;  %1633 = vmatprep.mubr.bf16.mxu1 %v3313_v57 }
 0x56f   :  { %1561 = vmatpush1.bf16.msra.mxu0 %v2915_v10  ;;  %1604 = vmatpush1.bf16.msra.mxu1 %v2982_v40 }
 0x570   :  { %1562 = vmatprep.subr.bf16.mxu0 %v2919_v12  ;;  %1605 = vmatprep.subr.bf16.mxu1 %v2986_v42 }
 0x573   :  { %1563 = vmatpush1.bf16.msra.mxu0 %v2923_v18  ;;  %1606 = vmatpush1.bf16.msra.mxu1 %v2990_v43 }
 0x574   :  { %1564 = vmatprep.subr.bf16.mxu0 %v2927_v19  ;;  %1607 = vmatprep.subr.bf16.mxu1 %v2994_v44 }
 0x577   :  { %1565 = vmatpush1.bf16.msra.mxu0 %v2997_v13  ;;  %1608 = vmatpush1.bf16.msra.mxu1 %v3000_v14 }
 0x578   :  { %1566 = vmatprep.subr.bf16.mxu0 %v3003_v15  ;;  %1609 = vmatprep.subr.bf16.mxu1 %v3006_v16 }
 0x57b   :  { %1567 = vmatpush1.bf16.msra.mxu0 %v3009_v61  ;;  %1610 = vmatpush1.bf16.msra.mxu1 %v3012_v58 }
 0x57c   :  { %1568 = vmatprep.subr.bf16.mxu0 %v3015_v63  ;;  %1611 = vmatprep.subr.bf16.mxu1 %v3018_v1 }
 0x57f   :  { %1569 = vmatpush1.bf16.msra.mxu0 %v3021_v41  ;;  %1612 = vmatpush1.bf16.msra.mxu1 %v3024_v8 }
 0x580   :  { %1570 = vmatprep.subr.bf16.mxu0 %v3027_v59  ;;  %1613 = vmatprep.subr.bf16.mxu1 %v3030_v48 }
 0x583   :  { %1571 = vmatpush1.bf16.msra.mxu0 %v3033_v56  ;;  %1614 = vmatpush1.bf16.msra.mxu1 %v3036_v5 }
 0x584   :  { %1572 = vmatprep.subr.bf16.mxu0 %v3039_v33  ;;  %1615 = vmatprep.subr.bf16.mxu1 %v3042_v9 }
 0x587   :  { %1573 = vmatpush1.bf16.msra.mxu0 %v3045_v51  ;;  %1616 = vmatpush1.bf16.msra.mxu1 %v3048_v45 }
 0x588   :  { %1704 = vmatprep.subr.bf16.mxu0 %v2949_v20  ;;  %1747 = vmatprep.subr.bf16.mxu1 %v2952_v21  ;;  %v1504_v20 = vunpack.c.h.bf16 %v2825_v50 }
 0x63d   :  { %v1446_v38 = vpop.f32.mrb[44].mxu0  ;;  %v1489_v30 = vpop.f32.mrb[60].mxu1 }
 0x63e   :  { %v1506_v49 = vadd.f32 %v1498_v35, %v1446_v38  ;;  %v1508_v46 = vadd.f32 %v1500_v36, %v1489_v30  ;;  %v1448_v3 = vpop.f32.mrb[45].mxu0  ;;  %v1491_v25 = vpop.f32.mrb[61].mxu1 }
 0x63f   :  { %v1507_v53 = vadd.f32 %v1499_v0, %v1448_v3  ;;  %v1509_v21 = vadd.f32 %v1501_v22, %v1491_v25  ;;  %v1450_v60 = vpop.f32.mrb[46].mxu0  ;;  %v1493_v24 = vpop.f32.mrb[62].mxu1 }
 0x640   :  { %v1514_v37 = vmul.f32 0.5, %v1506_v49  ;;  %v1510_v27 = vadd.f32 %v1502_v6, %v1450_v60  ;;  %v1512_v62 = vadd.f32 %v1504_v20, %v1493_v24  ;;  %v1452_v29 = vpop.f32.mrb[47].mxu0  ;;  %v1495_v17 = vpop.f32.mrb[63].mxu1 }
 0x641   :  { %v1522_v31 = vmul.f32 0.5, %v1507_v53  ;;  %v1511_v32 = vadd.f32 %v1503_v26, %v1452_v29  ;;  %v1513_v34 = vadd.f32 %v1505_v28, %v1495_v17  ;;  %v1532_v30 = vmul.f32 0.5, %v1509_v21 }
 0x642   :  { %2270 = vtanh.f32 %v1514_v37  ;;  %v1515_v52 = vmul.f32 0.5, %v1510_v27 }
 0x643   :  { %2272 = vtanh.f32 %v1522_v31  ;;  %v1523_v50 = vmul.f32 0.5, %v1511_v32  ;;  %v1533_v0 = vmul.f32 0.5, %v1513_v34 }
 0x644   :  { %2274 = vtanh.f32 %v1515_v52 }
 0x645   :  { %2276 = vtanh.f32 %v1508_v46 }
 0x646   :  { %2278 = vtanh.f32 %v1523_v50 }
 0x647   :  { %2280 = vtanh.f32 %v1512_v62 }
 0x648   :  { %2282 = vtanh.f32 %v1532_v30 }
 0x649   :  { %2284 = vtanh.f32 %v1533_v0 }
 0x64c   :  { %v2271_v35 = vpop.eup %2270 }
 0x64d   :  { %v2273_v36 = vpop.eup %2272  ;;  %v1518_v38 = vmul.f32 0.5, %v2271_v35 }
 0x64e   :  { %v1526_v7 = vmul.f32 0.5, %v2273_v36  ;;  %v2275_v55 = vpop.eup %2274 }
 0x64f   :  { %v1520_v22 = vadd.f32 0.5, %v1518_v38  ;;  %v2277_v49 = vpop.eup %2276  ;;  %v1519_v25 = vmul.f32 0.5, %v2275_v55 }
 0x650   :  { %v1528_v3 = vadd.f32 0.5, %v1526_v7  ;;  %v2279_v6 = vpop.eup %2278 }
 0x651   :  { %v1542_v20 = vmul.f32 %v2277_v49, %v1520_v22  ;;  %v1521_v60 = vadd.f32 0.5, %v1519_v25  ;;  %v1527_v46 = vmul.f32 0.5, %v2279_v6  ;;  %v2281_v24 = vpop.eup %2280 }
 0x652   :  { %v1540_v53 = vmul.f32 %v1528_v3, %v3112_v2  ;;  %v2283_v62 = vpop.eup %2282 }
 0x653   :  { %v1529_v28 = vadd.f32 0.5, %v1527_v46  ;;  %v1543_v21 = vmul.f32 %v2281_v24, %v1521_v60  ;;  %v2285_v29 = vpop.eup %2284  ;;  %v1536_v17 = vmul.f32 0.5, %v2283_v62 }
 0x654   :  { %v3162_v26 = vadd.f32 %v1542_v20, %v1540_v53  ;;  %v1537_v2 = vmul.f32 0.5, %v2285_v29 }
 0x655   :  { %v1541_v37 = vmul.f32 %v1529_v28, %v3116_v23  ;;  %v1538_v32 = vadd.f32 0.5, %v1536_v17 }
 0x656   :  { %2286 = vtanh.f32 %v3162_v26  ;;  %v1539_v34 = vadd.f32 0.5, %v1537_v2 }
 0x657   :  { %v3166_v27 = vadd.f32 %v1543_v21, %v1541_v37 }
 0x659   :  { %2288 = vtanh.f32 %v3166_v27 }
 0x660   :  { %v2287_v31 = vpop.eup %2286 }
 0x661   :  { %v1548_v50 = vmul.f32 %v2287_v31, %v1538_v32 }
 0x663   :  { %v2289_v52 = vpop.eup %2288 }
 0x664   :  { %v1549_v35 = vmul.f32 %v2289_v52, %v1539_v34 }
 0x666   :  { %v1557_v36 = vpack.c.bf16 %v1549_v35, %v1548_v50 }
 0x668   :  { %1591 = vmatmul.mubr.bf16.vlgmr.msra.gmra.mrb[48].mxu0 %v1557_v36  ;;  %1634 = vmatmul.mubr.bf16.vlgmr.msra.gmra.mrb[64].mxu1 %v1557_v36 }
 0x669   :  { %1705 = vmatpush1.bf16.msra.mxu0 %v2905_v54  ;;  %1748 = vmatpush1.bf16.msra.mxu1 %v2972_v11  ;;  %v3328_v11 = vld [vmem:[#allocation30_spill] sm:$0xff] }
 0x66a   :  { %1706 = vmatprep.subr.bf16.mxu0 %v2909_v4  ;;  %1749 = vmatprep.subr.bf16.mxu1 %v2976_v39  ;;  %v1646_v4 = vunpack.c.l.bf16 %v2833_v47  ;;  %v1647_v39 = vunpack.c.l.bf16 %v3328_v11 }
 0x66b   :  { %1736 = vmatprep.mubr.bf16.mxu0 %v3313_v57  ;;  %1779 = vmatprep.mubr.bf16.mxu1 %v3313_v57  ;;  %v3326_v57 = vld [vmem:[#allocation14_spill] sm:$0xff] }
 0x66c   :  { %v1644_v54 = vunpack.c.l.bf16 %v3326_v57 }
 0x66d   :  { %1707 = vmatpush1.bf16.msra.mxu0 %v2915_v10  ;;  %1750 = vmatpush1.bf16.msra.mxu1 %v2982_v40 }
 0x66e   :  { %1708 = vmatprep.subr.bf16.mxu0 %v2919_v12  ;;  %1751 = vmatprep.subr.bf16.mxu1 %v2986_v42 }
 0x671   :  { %1709 = vmatpush1.bf16.msra.mxu0 %v2923_v18  ;;  %1752 = vmatpush1.bf16.msra.mxu1 %v2990_v43  ;;  %v3327_v18 = vld [vmem:[#allocation15_spill] sm:$0xff] }
 0x672   :  { %1710 = vmatprep.subr.bf16.mxu0 %v2927_v19  ;;  %1753 = vmatprep.subr.bf16.mxu1 %v2994_v44  ;;  %v1645_v19 = vunpack.c.l.bf16 %v3327_v18 }
 0x675   :  { %1711 = vmatpush1.bf16.msra.mxu0 %v2997_v13  ;;  %1754 = vmatpush1.bf16.msra.mxu1 %v3000_v14  ;;  %v1648_v13 = vunpack.c.h.bf16 %v3326_v57  ;;  %v1650_v14 = vunpack.c.h.bf16 %v2833_v47 }
 0x676   :  { %1712 = vmatprep.subr.bf16.mxu0 %v3003_v15  ;;  %1755 = vmatprep.subr.bf16.mxu1 %v3006_v16 }
 0x679   :  { %1713 = vmatpush1.bf16.msra.mxu0 %v3009_v61  ;;  %1756 = vmatpush1.bf16.msra.mxu1 %v3012_v58 }
 0x67a   :  { %1714 = vmatprep.subr.bf16.mxu0 %v3015_v63  ;;  %1757 = vmatprep.subr.bf16.mxu1 %v3018_v1  ;;  %v1649_v63 = vunpack.c.h.bf16 %v3327_v18  ;;  %v1651_v1 = vunpack.c.h.bf16 %v3328_v11  ;;  %v2166_v18 = vld [vmem:[%s3270_s4 + $0x20] sm:$0xff]   ;;  %v2168_v11 = vld [vmem:[%s3270_s4 + $0x30] sm:$0xff]  }
 0x67d   :  { %1715 = vmatpush1.bf16.msra.mxu0 %v3021_v41  ;;  %1758 = vmatpush1.bf16.msra.mxu1 %v3024_v8 }
 0x67e   :  { %1716 = vmatprep.subr.bf16.mxu0 %v3027_v59  ;;  %1759 = vmatprep.subr.bf16.mxu1 %v3030_v48 }
 0x681   :  { %1717 = vmatpush1.bf16.msra.mxu0 %v3033_v56  ;;  %1760 = vmatpush1.bf16.msra.mxu1 %v3036_v5 }
 0x682   :  { %1718 = vmatprep.subr.bf16.mxu0 %v3039_v33  ;;  %1761 = vmatprep.subr.bf16.mxu1 %v3042_v9 }
 0x685   :  { %1719 = vmatpush1.bf16.msra.mxu0 %v3045_v51  ;;  %1762 = vmatpush1.bf16.msra.mxu1 %v3048_v45 }
 0x73b   :  { %v1592_v10 = vpop.f32.mrb[48].mxu0  ;;  %v1635_v12 = vpop.f32.mrb[64].mxu1 }
 0x73c   :  { %v1652_v40 = vadd.f32 %v1644_v54, %v1592_v10  ;;  %v1654_v42 = vadd.f32 %v1646_v4, %v1635_v12  ;;  %v1594_v43 = vpop.f32.mrb[49].mxu0  ;;  %v1637_v44 = vpop.f32.mrb[65].mxu1  ;;  %v2440_v54 = vmov 0.0   ;;  %v2163_v4 = vld [vmem:[%s3270_s4 + $0x8] sm:$0xff]   ;;  %v2164_v10 = vld [vmem:[%s3270_s4 + $0x10] sm:$0xff]   ;;  %v2165_v12 = vld [vmem:[%s3270_s4 + $0x18] sm:$0xff]  }
 0x73d   :  { %v1653_v15 = vadd.f32 %v1645_v19, %v1594_v43  ;;  %v1655_v16 = vadd.f32 %v1647_v39, %v1637_v44  ;;  %v1596_v61 = vpop.f32.mrb[50].mxu0  ;;  %v1639_v58 = vpop.f32.mrb[66].mxu1  ;;  %2067 = vmatprep.subr.bf16.mxu0 %v2440_v54  ;;  %v2167_v19 = vld [vmem:[%s3270_s4 + $0x28] sm:$0xff]   ;;  %v2169_v39 = vld [vmem:[%s3270_s4 + $0x38] sm:$0xff]  }
 0x73e   :  { %v1660_v41 = vmul.f32 0.5, %v1652_v40  ;;  %v1656_v8 = vadd.f32 %v1648_v13, %v1596_v61  ;;  %v1658_v59 = vadd.f32 %v1650_v14, %v1639_v58  ;;  %v1598_v48 = vpop.f32.mrb[51].mxu0  ;;  %v1641_v56 = vpop.f32.mrb[67].mxu1  ;;  %v3329_v40 = vld [vmem:[#allocation16_spill] sm:$0xff]  ;;  %v3330_v43 = vld [vmem:[#allocation31_spill] sm:$0xff] }
 0x73f   :  { %v1668_v5 = vmul.f32 0.5, %v1653_v15  ;;  %v1657_v33 = vadd.f32 %v1649_v63, %v1598_v48  ;;  %v1659_v9 = vadd.f32 %v1651_v1, %v1641_v56  ;;  %v1678_v30 = vmul.f32 0.5, %v1655_v16  ;;  %v3331_v15 = vld [vmem:[#allocation17_spill] sm:$0xff]  ;;  %v3332_v61 = vld [vmem:[#allocation32_spill] sm:$0xff] }
 0x740   :  { %2290 = vtanh.f32 %v1660_v41  ;;  %v1661_v51 = vmul.f32 0.5, %v1656_v8  ;;  %v1792_v44 = vunpack.c.l.bf16 %v3330_v43  ;;  %v1791_v16 = vunpack.c.l.bf16 %v3331_v15 }
 0x741   :  { %2292 = vtanh.f32 %v1668_v5  ;;  %v1669_v47 = vmul.f32 0.5, %v1657_v33  ;;  %v1679_v0 = vmul.f32 0.5, %v1659_v9  ;;  %v1793_v58 = vunpack.c.l.bf16 %v3332_v61 }
 0x742   :  { %2294 = vtanh.f32 %v1661_v51  ;;  %v1796_v48 = vunpack.c.h.bf16 %v3330_v43  ;;  %v1795_v51 = vunpack.c.h.bf16 %v3331_v15  ;;  %v2049_v43 = vld [vmem:[%s3271_s5] ss:$0 sm:$0xff] }
 0x743   :  { %2296 = vtanh.f32 %v1654_v42  ;;  %v1790_v42 = vunpack.c.l.bf16 %v3329_v40 }
 0x744   :  { %2298 = vtanh.f32 %v1669_v47  ;;  %v1797_v47 = vunpack.c.h.bf16 %v3332_v61 }
 0x745   :  { %2300 = vtanh.f32 %v1658_v59  ;;  %v1794_v59 = vunpack.c.h.bf16 %v3329_v40 }
 0x746   :  { %2302 = vtanh.f32 %v1678_v30 }
 0x747   :  { %2304 = vtanh.f32 %v1679_v0 }
 0x74a   :  { %v2291_v45 = vpop.eup %2290 }
 0x74b   :  { %v2293_v23 = vpop.eup %2292  ;;  %v1664_v38 = vmul.f32 0.5, %v2291_v45 }
 0x74c   :  { %v1672_v7 = vmul.f32 0.5, %v2293_v23  ;;  %v2295_v55 = vpop.eup %2294 }
 0x74d   :  { %v1666_v22 = vadd.f32 0.5, %v1664_v38  ;;  %v2297_v49 = vpop.eup %2296  ;;  %v1665_v25 = vmul.f32 0.5, %v2295_v55 }
 0x74e   :  { %v1674_v3 = vadd.f32 0.5, %v1672_v7  ;;  %v2299_v6 = vpop.eup %2298 }
 0x74f   :  { %v1688_v20 = vmul.f32 %v2297_v49, %v1666_v22  ;;  %v1667_v60 = vadd.f32 0.5, %v1665_v25  ;;  %v1673_v46 = vmul.f32 0.5, %v2299_v6  ;;  %v2301_v24 = vpop.eup %2300 }
 0x750   :  { %v1686_v53 = vmul.f32 %v1674_v3, %v3162_v26  ;;  %v2303_v17 = vpop.eup %2302 }
 0x751   :  { %v1675_v21 = vadd.f32 0.5, %v1673_v46  ;;  %v1689_v37 = vmul.f32 %v2301_v24, %v1667_v60  ;;  %v2305_v2 = vpop.eup %2304  ;;  %v1682_v31 = vmul.f32 0.5, %v2303_v17 }
 0x752   :  { %v3210_v28 = vadd.f32 %v1688_v20, %v1686_v53  ;;  %v1683_v26 = vmul.f32 0.5, %v2305_v2 }
 0x753   :  { %v1687_v62 = vmul.f32 %v1675_v21, %v3166_v27  ;;  %v1684_v34 = vadd.f32 0.5, %v1682_v31  ;;  %v2162_v27 = vld [vmem:[%s3270_s4] sm:$0xff]  }
 0x754   :  { %2306 = vtanh.f32 %v3210_v28  ;;  %v1685_v52 = vadd.f32 0.5, %v1683_v26 }
 0x755   :  { %v3214_v29 = vadd.f32 %v1689_v37, %v1687_v62 }
 0x757   :  { %2308 = vtanh.f32 %v3214_v29 }
 0x75e   :  { %v2307_v32 = vpop.eup %2306 }
 0x75f   :  { %v1694_v35 = vmul.f32 %v2307_v32, %v1684_v34 }
 0x761   :  { %v2309_v50 = vpop.eup %2308 }
 0x762   :  { %v1695_v36 = vmul.f32 %v2309_v50, %v1685_v52 }
 0x764   :  { %v1703_v57 = vpack.c.bf16 %v1695_v36, %v1694_v35 }
 0x766   :  { %1737 = vmatmul.mubr.bf16.vlgmr.msra.gmra.mrb[52].mxu0 %v1703_v57  ;;  %1780 = vmatmul.mubr.bf16.vlgmr.msra.gmra.mrb[68].mxu1 %v1703_v57 }
 0x767   :  { %2068 = vmatpush3.bf16.msra.mxu0 %v2162_v27  ;;  %2083 = vmatprep.mubr.msk.bf16.mxu0 %vm2441_vm1, %v2440_v54 }
 0x768   :  { %2069 = vmatprep.subr.bf16.mxu0 %v2440_v54 }
 0x76b   :  { %2070 = vmatpush3.bf16.msra.mxu0 %v2163_v4 }
 0x76c   :  { %2071 = vmatprep.subr.bf16.mxu0 %v2440_v54 }
 0x76f   :  { %2072 = vmatpush3.bf16.msra.mxu0 %v2164_v10 }
 0x770   :  { %2073 = vmatprep.subr.bf16.mxu0 %v2440_v54 }
 0x773   :  { %2074 = vmatpush3.bf16.msra.mxu0 %v2165_v12 }
 0x774   :  { %2075 = vmatprep.subr.bf16.mxu0 %v2440_v54 }
 0x777   :  { %2076 = vmatpush3.bf16.msra.mxu0 %v2166_v18 }
 0x778   :  { %2077 = vmatprep.subr.bf16.mxu0 %v2440_v54 }
 0x77b   :  { %2078 = vmatpush3.bf16.msra.mxu0 %v2167_v19 }
 0x77c   :  { %2079 = vmatprep.subr.bf16.mxu0 %v2440_v54 }
 0x77f   :  { %2080 = vmatpush3.bf16.msra.mxu0 %v2168_v11 }
 0x780   :  { %2081 = vmatprep.subr.bf16.mxu0 %v2440_v54 }
 0x783   :  { %2082 = vmatpush3.bf16.msra.mxu0 %v2169_v39 }
 0x839   :  { %v1738_v13 = vpop.f32.mrb[52].mxu0  ;;  %v1781_v14 = vpop.f32.mrb[68].mxu1 }
 0x83a   :  { %v1798_v63 = vadd.f32 %v1790_v42, %v1738_v13  ;;  %v1800_v1 = vadd.f32 %v1792_v44, %v1781_v14  ;;  %v1740_v41 = vpop.f32.mrb[53].mxu0  ;;  %v1783_v8 = vpop.f32.mrb[69].mxu1 }
 0x83b   :  { %v1799_v56 = vadd.f32 %v1791_v16, %v1740_v41  ;;  %v1801_v5 = vadd.f32 %v1793_v58, %v1783_v8  ;;  %v1742_v33 = vpop.f32.mrb[54].mxu0  ;;  %v1785_v9 = vpop.f32.mrb[70].mxu1 }
 0x83c   :  { %v1806_v45 = vmul.f32 0.5, %v1798_v63  ;;  %v1802_v23 = vadd.f32 %v1794_v59, %v1742_v33  ;;  %v1804_v38 = vadd.f32 %v1796_v48, %v1785_v9  ;;  %v1744_v30 = vpop.f32.mrb[55].mxu0  ;;  %v1787_v7 = vpop.f32.mrb[71].mxu1 }
 0x83d   :  { %v1814_v0 = vmul.f32 0.5, %v1799_v56  ;;  %v1803_v55 = vadd.f32 %v1795_v51, %v1744_v30  ;;  %v1805_v22 = vadd.f32 %v1797_v47, %v1787_v7  ;;  %v1824_v25 = vmul.f32 0.5, %v1801_v5 }
 0x83e   :  { %2310 = vtanh.f32 %v1806_v45  ;;  %v1807_v49 = vmul.f32 0.5, %v1802_v23 }
 0x83f   :  { %2312 = vtanh.f32 %v1814_v0  ;;  %v1815_v3 = vmul.f32 0.5, %v1803_v55  ;;  %v1825_v46 = vmul.f32 0.5, %v1805_v22 }
 0x840   :  { %2314 = vtanh.f32 %v1807_v49 }
 0x841   :  { %2316 = vtanh.f32 %v1800_v1 }
 0x842   :  { %2318 = vtanh.f32 %v1815_v3 }
 0x843   :  { %2320 = vtanh.f32 %v1804_v38 }
 0x844   :  { %2322 = vtanh.f32 %v1824_v25 }
 0x845   :  { %2324 = vtanh.f32 %v1825_v46 }
 0x848   :  { %v2311_v6 = vpop.eup %2310 }
 0x849   :  { %v2313_v20 = vpop.eup %2312  ;;  %v1810_v53 = vmul.f32 0.5, %v2311_v6 }
 0x84a   :  { %v1818_v60 = vmul.f32 0.5, %v2313_v20  ;;  %v2315_v24 = vpop.eup %2314 }
 0x84b   :  { %v1812_v21 = vadd.f32 0.5, %v1810_v53  ;;  %v2317_v37 = vpop.eup %2316  ;;  %v1811_v17 = vmul.f32 0.5, %v2315_v24 }
 0x84c   :  { %v1820_v62 = vadd.f32 0.5, %v1818_v60  ;;  %v2319_v2 = vpop.eup %2318 }
 0x84d   :  { %v1834_v31 = vmul.f32 %v2317_v37, %v1812_v21  ;;  %v1813_v32 = vadd.f32 0.5, %v1811_v17  ;;  %v1819_v34 = vmul.f32 0.5, %v2319_v2  ;;  %v2321_v52 = vpop.eup %2320 }
 0x84e   :  { %v1832_v26 = vmul.f32 %v1820_v62, %v3210_v28  ;;  %v2323_v27 = vpop.eup %2322 }
 0x84f   :  { %v1821_v35 = vadd.f32 0.5, %v1819_v34  ;;  %v1835_v36 = vmul.f32 %v2321_v52, %v1813_v32  ;;  %v1828_v4 = vmul.f32 0.5, %v2323_v27  ;;  %v2325_v10 = vpop.eup %2324 }
 0x850   :  { %v1836_v50 = vadd.f32 %v1834_v31, %v1832_v26  ;;  %v1829_v18 = vmul.f32 0.5, %v2325_v10 }
 0x851   :  { %v1833_v57 = vmul.f32 %v1821_v35, %v3214_v29  ;;  %v1830_v12 = vadd.f32 0.5, %v1828_v4 }
 0x852   :  { %2326 = vtanh.f32 %v1836_v50  ;;  %v1831_v28 = vadd.f32 0.5, %v1829_v18 }
 0x853   :  { %v1837_v54 = vadd.f32 %v1835_v36, %v1833_v57 }
 0x855   :  { %2328 = vtanh.f32 %v1837_v54 }
 0x85c   :  { %v2327_v19 = vpop.eup %2326 }
 0x85d   :  { %v1840_v11 = vmul.f32 %v2327_v19, %v1830_v12 }
 0x85f   :  { %v2329_v39 = vpop.eup %2328 }
 0x860   :  { %v1841_v40 = vmul.f32 %v2329_v39, %v1831_v28 }
 0x862   :  { %v1849_v42 = vpack.c.bf16 %v1841_v40, %v1840_v11 }
 0x864   :  { %2084 = vmatmul.mubr.bf16.vlgmr.msra.gmra.mrb[56].mxu0 %v1849_v42 }
 0x937   :  { %v1955_v44 = vpop.f32.mrb[56].mxu0 }
 0x938   :  { %v1956_v29 = vadd.f32 %v2049_v43, %v1955_v44  ;;  %v2085_v13 = vpop.f32.mrb[57].mxu0 }
 0x939   :  { %v1958_v14 = vpop.f32.mrb[58].mxu0 }
 0x93a   :  { %1962 = vst [vmem:[#allocation10] sm:$0xff] %v1956_v29  ;;  %v1959_v15 = vadd.f32 %v2049_v43, %v1958_v14  ;;  %v2086_v16 = vpop.f32.mrb[59].mxu0 }
 0x93c   :  { %1963 = vst [vmem:[#allocation10 + $0x8] sm:$0xff] %v1959_v15 }
 0x93d   :  { %2417 = shalt.err (!%p2414_p6)
}
 0x93e   :  { %s2418_s8 = scalar_lea.hbm %s3272_s6, 256 }
 0x93f   :  { %p2419_p7 = scmp.ne.s32.totalorder %s3272_s6, %s2418_s8  ;;  %p2422_p8 = scmp.lt.u32.totalorder %s2418_s8, %s3272_s6 }
 0x941   :  { %p2424_p9 = pnand %p2422_p8, %p2419_p7 }
 0x943   :  { %2427 = shalt.err (!%p2424_p9)
}
 0x944   :  { %s2443_s0 = smov 128   ;;  %s2444_s13 = smov 8  }
 0x945   :  { %1975 = dma.vmem_to_hbm [thread:$0]  %s1970_s29, 256, %s3272_s6, [#allocation7], %s2443_s0, %s2443_s0, %s2444_s13  }
 0x946   :  { %2432 = dma.done.wait [#allocation7], 256  }
 0x947   :  { %2433 = vsyncadd [#allocation7], 4294967040 }
 0x948   :  { %1979 = vsyncpa [#allocation6], 1 }
 0x949   :  { %1980 = vsyncpa [#allocation9], 1 }
 0x94a   :  { %1981 = vsyncpa [#allocation7], 1 }

// kernel: tpu_custom_call.1
= control target key start
LH: loop header
LB: loop body
LE: loop exit
PB: predicated region body
PF: predicated region fallthrough
CT: control target
= control target key end

     0   :  { %11 = vsyncpa [#allocation6], 0  ;;  %s3266_s0 = inlined_call_operand.vmem [shape: bf16[1,1,128,16], index: 0, kind: input, shape index: {}]   ;;  %s3267_s1 = inlined_call_operand.hbm [shape: bf16[16,512], index: 1, kind: input, shape index: {}]   ;;  %s3268_s2 = inlined_call_operand.hbm [shape: bf16[128,512], index: 2, kind: input, shape index: {}]   ;;  %s3269_s3 = inlined_call_operand.vmem [shape: f32[1,512], index: 3, kind: input, shape index: {}]   ;;  %s3270_s4 = inlined_call_operand.vmem [shape: bf16[128,128], index: 4, kind: input, shape index: {}]   ;;  %s3271_s5 = inlined_call_operand.vmem [shape: f32[1,128], index: 5, kind: input, shape index: {}]   ;;  %s3272_s6 = inlined_call_operand.hbm [shape: f32[16,128], index: 6, kind: output, shape index: {}]  }
   0x1   :  { %12 = vsyncpa [#allocation9], 0 }
   0x2   :  { %13 = vsyncpa [#allocation7], 0  ;;  %s2434_s21 = smov [#allocation5]   ;;  %s2362_s25 = scalar_lea.hbm %s3267_s1, 512 }
   0x3   :  { %s21_s22 = sshll.u32 %s2434_s21, 4  ;;  %p2363_p0 = scmp.ne.s32.totalorder %s3267_s1, %s2362_s25  ;;  %s22_s22 = int_to_ptr.vmem [resolvable:$true] %s21_s22 }
   0x4   :  { %p2366_p1 = scmp.lt.u32.totalorder %s2362_s25, %s3267_s1 }
   0x6   :  { %p2368_p2 = pnand %p2366_p1, %p2363_p0 }
   0x8   :  { %2371 = shalt.err (!%p2368_p2)
}
   0x9   :  { %s2372_s30 = scalar_lea.vmem %s22_s22, 512  ;;  %p2377_p4 = scmp.lt.s32.totalorder %s22_s22, %s22_s22 }
   0xa   :  { %p2373_p3 = scmp.ne.s32.totalorder %s22_s22, %s2372_s30  ;;  %p2378_p5 = scmp.lt.s32.totalorder %s2372_s30, %s2372_s30 }
   0xc   :  { %p2379_p6 = por %p2378_p5, %p2377_p4 }
   0xe   :  { %p2380_p7 = pnand %p2379_p6, %p2373_p3 }
  0x10   :  { %2383 = shalt.err (!%p2380_p7)
}
  0x11   :  { %s2435_s7 = smov 256   ;;  %s2436_s8 = smov 16  }
  0x12   :  { %27 = dma.hbm_to_vmem [thread:$0]  %s3267_s1, 512, %s22_s22, [#allocation6], %s2435_s7, %s2435_s7, %s2436_s8  }
  0x13   :  { %s2437_s11 = smov [#allocation8]   ;;  %s2384_s15 = scalar_lea.hbm %s3268_s2, 4096 }
  0x14   :  { %s33_s12 = sshll.u32 %s2437_s11, 4  ;;  %p2385_p8 = scmp.ne.s32.totalorder %s3268_s2, %s2384_s15  ;;  %s34_s12 = int_to_ptr.vmem [resolvable:$true] %s33_s12 }
  0x15   :  { %p2388_p9 = scmp.lt.u32.totalorder %s2384_s15, %s3268_s2 }
  0x17   :  { %p2390_p10 = pnand %p2388_p9, %p2385_p8 }
  0x19   :  { %2393 = shalt.err (!%p2390_p10)
}
  0x1a   :  { %s2394_s20 = scalar_lea.vmem %s34_s12, 4096  ;;  %p2399_p12 = scmp.lt.s32.totalorder %s34_s12, %s34_s12 }
  0x1b   :  { %p2395_p11 = scmp.ne.s32.totalorder %s34_s12, %s2394_s20  ;;  %p2400_p13 = scmp.lt.s32.totalorder %s2394_s20, %s2394_s20 }
  0x1d   :  { %p2401_p0 = por %p2400_p13, %p2399_p12 }
  0x1f   :  { %p2402_p1 = pnand %p2401_p0, %p2395_p11 }
  0x21   :  { %2405 = shalt.err (!%p2402_p1)
}
  0x22   :  { %39 = dma.hbm_to_vmem [thread:$0]  %s3268_s2, 4096, %s34_s12, [#allocation9], %s2435_s7, %s2435_s7, %s2436_s8  }
  0x23   :  { %2428 = dma.done.wait [#allocation6], 512  }
  0x24   :  { %2429 = vsyncadd [#allocation6], 4294966784 }
  0x25   :  { %2430 = dma.done.wait [#allocation9], 4096  }
  0x26   :  { %2431 = vsyncadd [#allocation9], 4294963200  ;;  %v3273_v0 = vmov 0   ;;  %v2100_v1 = vld [vmem:[#allocation5 + $0x4] ss:$16 sps:$4 sm:$0xff]   ;;  %vm163_vm0 = vcmask 130048   ;;  %v83_v46 = vlaneseq }
  0x27   :  { %220 = vmatprep.mubr.bf16.mxu0 %v3273_v0  ;;  %280 = vmatprep.mubr.bf16.mxu1 %v3273_v0  ;;  %v2102_v2 = vld [vmem:[#allocation5] ss:$16 sps:$4 sm:$0xff]   ;;  %v2105_v5 = vld [vmem:[#allocation5 + $0x8] ss:$16 sps:$4 sm:$0xff]   ;;  %v2107_v6 = vld [vmem:[#allocation5 + $0xc] ss:$16 sps:$4 sm:$0xff]  }
  0x28   :  { %188 = vmatprep.subr.bf16.mxu0 %v2100_v1  ;;  %2087 = vmatprep.subr.bf16.mxu1 %v2100_v1  ;;  %v2103_v3 = vld [vmem:[%s3266_s0] sm:$0xff]   ;;  %v2512_v4 = vld [vmem:[%s3266_s0 + $0x30] sm:$0xff]   ;;  %v2108_v7 = vld [vmem:[%s3266_s0 + $0x8] sm:$0xff]   ;;  %v2439_v45 = vmov 0.0|0.0   ;;  %v84_v47 = vshrl.u32 %v83_v46, 7  ;;  %vm2441_vm1 = vmmov 0  }
  0x29   :  { %189 = vmatpush1.bf16.msra.mxu0 %v2102_v2  ;;  %2088 = vmatpush1.bf16.msra.mxu1 %v2102_v2  ;;  %v2522_v8 = vld [vmem:[#allocation8 + $0x4] ss:$16 sps:$4 sm:$0xff]   ;;  %v2524_v9 = vld [vmem:[#allocation8 + $0xc] ss:$16 sps:$4 sm:$0xff]   ;;  %v2526_v10 = vld [vmem:[#allocation8] ss:$16 sps:$4 sm:$0xff]  }
  0x2a   :  { %301 = vmatprep.subr.bf16.mxu1 %v2107_v6  ;;  %v2531_v11 = vld [vmem:[%s3266_s0 + $0x38] sm:$0xff]   ;;  %682 = vmatprep.subr.bf16.mxu0 %v2522_v8  ;;  %v2536_v12 = vld [vmem:[#allocation8 + $0x24] ss:$16 sps:$4 sm:$0xff]   ;;  %v2538_v13 = vld [vmem:[#allocation8 + $0x20] ss:$16 sps:$4 sm:$0xff]   ;;  %v85_v48 = vsub.s32 0, %v84_v47 }
  0x2b   :  { %v2541_v14 = vld [vmem:[#allocation8 + $0x44] ss:$16 sps:$4 sm:$0xff]   ;;  %v2549_v15 = vld [vmem:[#allocation8 + $0x40] ss:$16 sps:$4 sm:$0xff]   ;;  %v2557_v18 = vld [vmem:[#allocation8 + $0x8] ss:$16 sps:$4 sm:$0xff]  }
  0x2c   :  { %2001 = vmatmul.mubr.msk.bf16.vlgmr.msra.gmra.mrb[0].mxu0 %vm163_vm0, %v2103_v3  ;;  %2007 = vmatmul.mubr.msk.bf16.vlgmr.msra.gmra.mrb[0].mxu1 %vm163_vm0, %v2512_v4  ;;  %v2552_v16 = vld [vmem:[#allocation8 + $0x64] ss:$16 sps:$4 sm:$0xff]   ;;  %v2559_v19 = vld [vmem:[#allocation8 + $0x2c] ss:$16 sps:$4 sm:$0xff]   ;;  %v2563_v20 = vld [vmem:[#allocation8 + $0x60] ss:$16 sps:$4 sm:$0xff]  }
  0x2d   :  { %230 = vmatprep.mubr.bf16.mxu0 %v3273_v0  ;;  %302 = vmatpush1.bf16.msra.mxu1 %v2105_v5  ;;  %v2110_v17 = vld [vmem:[%s3266_s0 + $0x10] sm:$0xff]   ;;  %v2571_v22 = vld [vmem:[#allocation8 + $0x28] ss:$16 sps:$4 sm:$0xff]   ;;  %v2575_v23 = vld [vmem:[#allocation8 + $0x4c] ss:$16 sps:$4 sm:$0xff]   ;;  %v89_v50 = vsub.s32 1, %v84_v47 }
  0x2e   :  { %290 = vmatprep.mubr.bf16.mxu1 %v3273_v0  ;;  %725 = vmatprep.subr.bf16.mxu1 %v2524_v9  ;;  %v2567_v21 = vld [vmem:[#allocation8 + $0x84] ss:$16 sps:$4 sm:$0xff]   ;;  %v2578_v24 = vld [vmem:[#allocation8 + $0x80] ss:$16 sps:$4 sm:$0xff]   ;;  %v2120_v25 = vld [vmem:[%s3266_s0 + $0x18] sm:$0xff]   ;;  %s2442_s28 = smov [#allocation10]  }
  0x2f   :  { %683 = vmatpush1.bf16.msra.mxu0 %v2526_v10  ;;  %v2585_v26 = vld [vmem:[#allocation8 + $0x48] ss:$16 sps:$4 sm:$0xff]   ;;  %v2587_v27 = vld [vmem:[#allocation8 + $0xa4] ss:$16 sps:$4 sm:$0xff]   ;;  %v2590_v28 = vld [vmem:[#allocation8 + $0xa0] ss:$16 sps:$4 sm:$0xff]  }
  0x30   :  { %684 = vmatprep.subr.bf16.mxu0 %v2536_v12  ;;  %v2593_v29 = vld [vmem:[#allocation8 + $0x6c] ss:$16 sps:$4 sm:$0xff]   ;;  %v2597_v30 = vld [vmem:[#allocation8 + $0xc4] ss:$16 sps:$4 sm:$0xff]   ;;  %v2601_v31 = vld [vmem:[#allocation8 + $0xc0] ss:$16 sps:$4 sm:$0xff]  }
  0x31   :  { %v2603_v32 = vld [vmem:[#allocation8 + $0x68] ss:$16 sps:$4 sm:$0xff]   ;;  %v2130_v33 = vld [vmem:[%s3266_s0 + $0x20] sm:$0xff]   ;;  %v2610_v34 = vld [vmem:[#allocation8 + $0x8c] ss:$16 sps:$4 sm:$0xff]   ;;  %s1969_s29 = sshll.u32 %s2442_s28, 4  ;;  %s1970_s29 = int_to_ptr.vmem [resolvable:$true] %s1969_s29 }
  0x32   :  { %v2615_v35 = vld [vmem:[#allocation8 + $0xe4] ss:$16 sps:$4 sm:$0xff]   ;;  %v2617_v36 = vld [vmem:[#allocation8 + $0x88] ss:$16 sps:$4 sm:$0xff]   ;;  %v2619_v37 = vld [vmem:[#allocation8 + $0xe0] ss:$16 sps:$4 sm:$0xff]   ;;  %p2411_p3 = scmp.lt.s32.totalorder %s1970_s29, %s1970_s29 }
  0x33   :  { %685 = vmatpush1.bf16.msra.mxu0 %v2538_v13  ;;  %v2624_v38 = vld [vmem:[#allocation8 + $0xac] ss:$16 sps:$4 sm:$0xff]   ;;  %v2632_v39 = vld [vmem:[#allocation8 + $0xa8] ss:$16 sps:$4 sm:$0xff]   ;;  %v81_v49 = vld [vmem:[%s3269_s3] sm:$0xf] }
  0x34   :  { %2002 = vmatmul.mubr.msk.bf16.gmra.mrb[4].mxu0 %vm163_vm0, %v2108_v7  ;;  %2008 = vmatmul.mubr.msk.bf16.gmra.mrb[4].mxu1 %vm163_vm0, %v2531_v11  ;;  %v2636_v40 = vld [vmem:[#allocation8 + $0xcc] ss:$16 sps:$4 sm:$0xff]   ;;  %v2643_v42 = vld [vmem:[#allocation8 + $0xc8] ss:$16 sps:$4 sm:$0xff]   ;;  %v2705_v51 = vrot.slane %v81_v49, %v85_v48  ;;  %v2707_v52 = vrot.slane %v81_v49, %v89_v50  ;;  %s2406_s30 = scalar_lea.vmem %s1970_s29, 256 }
  0x35   :  { %240 = vmatprep.mubr.bf16.mxu0 %v3273_v0  ;;  %333 = vmatprep.mubr.bf16.mxu1 %v3273_v0  ;;  %v2140_v41 = vld [vmem:[%s3266_s0 + $0x28] sm:$0xff]   ;;  %p2407_p2 = scmp.ne.s32.totalorder %s1970_s29, %s2406_s30  ;;  %p2412_p4 = scmp.lt.s32.totalorder %s2406_s30, %s2406_s30 }
  0x36   :  { %686 = vmatprep.subr.bf16.mxu0 %v2541_v14  ;;  %v2646_v43 = vld [vmem:[#allocation8 + $0xec] ss:$16 sps:$4 sm:$0xff]   ;;  %v2653_v44 = vld [vmem:[#allocation8 + $0xe8] ss:$16 sps:$4 sm:$0xff]  }
  0x37   :  { %687 = vmatpush1.bf16.msra.mxu0 %v2549_v15  ;;  %p2413_p5 = por %p2412_p4, %p2411_p3 }
  0x38   :  { %688 = vmatprep.subr.bf16.mxu0 %v2552_v16 }
  0x39   :  { %p2414_p6 = pnand %p2413_p5, %p2407_p2 }
  0x3b   :  { %689 = vmatpush1.bf16.msra.mxu0 %v2563_v20 }
  0x3c   :  { %2003 = vmatmul.mubr.msk.bf16.gmra.mrb[8].mxu0 %vm163_vm0, %v2110_v17  ;;  %2009 = vmatmul.mubr.msk.bf16.vlgmr.msra.gmra.mrb[8].mxu1 %vm163_vm0, %v2103_v3 }
  0x3d   :  { %726 = vmatpush1.bf16.msra.mxu1 %v2557_v18  ;;  %250 = vmatprep.mubr.bf16.mxu0 %v3273_v0 }
  0x3e   :  { %343 = vmatprep.mubr.bf16.mxu1 %v3273_v0  ;;  %727 = vmatprep.subr.bf16.mxu1 %v2559_v19 }
  0x3f   :  { %690 = vmatprep.subr.bf16.mxu0 %v2567_v21 }
  0x40   :  { %691 = vmatpush1.bf16.msra.mxu0 %v2578_v24 }
  0x41   :  { %728 = vmatpush1.bf16.msra.mxu1 %v2571_v22  ;;  %692 = vmatprep.subr.bf16.mxu0 %v2587_v27 }
  0x42   :  { %729 = vmatprep.subr.bf16.mxu1 %v2575_v23 }
  0x44   :  { %2004 = vmatmul.mubr.msk.bf16.gmra.mrb[12].mxu0 %vm163_vm0, %v2120_v25  ;;  %2010 = vmatmul.mubr.msk.bf16.gmra.mrb[12].mxu1 %vm163_vm0, %v2108_v7 }
  0x45   :  { %260 = vmatprep.mubr.bf16.mxu0 %v3273_v0  ;;  %353 = vmatprep.mubr.bf16.mxu1 %v3273_v0 }
  0x46   :  { %730 = vmatpush1.bf16.msra.mxu1 %v2585_v26  ;;  %693 = vmatpush1.bf16.msra.mxu0 %v2590_v28 }
  0x47   :  { %731 = vmatprep.subr.bf16.mxu1 %v2593_v29  ;;  %694 = vmatprep.subr.bf16.mxu0 %v2597_v30 }
  0x4a   :  { %732 = vmatpush1.bf16.msra.mxu1 %v2603_v32  ;;  %695 = vmatpush1.bf16.msra.mxu0 %v2601_v31 }
  0x4b   :  { %733 = vmatprep.subr.bf16.mxu1 %v2610_v34  ;;  %696 = vmatprep.subr.bf16.mxu0 %v2615_v35 }
  0x4c   :  { %2005 = vmatmul.mubr.msk.bf16.gmra.mrb[16].mxu0 %vm163_vm0, %v2130_v33  ;;  %2011 = vmatmul.mubr.msk.bf16.gmra.mrb[16].mxu1 %vm163_vm0, %v2110_v17 }
  0x4d   :  { %270 = vmatprep.mubr.bf16.mxu0 %v3273_v0  ;;  %363 = vmatprep.mubr.bf16.mxu1 %v3273_v0 }
  0x4e   :  { %734 = vmatpush1.bf16.msra.mxu1 %v2617_v36  ;;  %697 = vmatpush1.bf16.msra.mxu0 %v2619_v37 }
  0x4f   :  { %735 = vmatprep.subr.bf16.mxu1 %v2624_v38  ;;  %828 = vmatprep.subr.bf16.mxu0 %v2522_v8 }
  0x52   :  { %736 = vmatpush1.bf16.msra.mxu1 %v2632_v39 }
  0x53   :  { %737 = vmatprep.subr.bf16.mxu1 %v2636_v40 }
  0x54   :  { %2006 = vmatmul.mubr.msk.bf16.gmra.mrb[20].mxu0 %vm163_vm0, %v2140_v41  ;;  %2012 = vmatmul.mubr.msk.bf16.gmra.mrb[20].mxu1 %vm163_vm0, %v2120_v25 }
  0x55   :  { %373 = vmatprep.mubr.bf16.mxu1 %v3273_v0  ;;  %714 = vmatprep.mubr.bf16.mxu0 %v3273_v0 }
  0x56   :  { %738 = vmatpush1.bf16.msra.mxu1 %v2643_v42 }
  0x57   :  { %739 = vmatprep.subr.bf16.mxu1 %v2646_v43 }
  0x5a   :  { %740 = vmatpush1.bf16.msra.mxu1 %v2653_v44 }
  0x5b   :  { %871 = vmatprep.subr.bf16.mxu1 %v2524_v9 }
  0x5c   :  { %2013 = vmatmul.mubr.msk.bf16.gmra.mrb[24].mxu1 %vm163_vm0, %v2130_v33  ;;  %715 = vmatmul.mubr.bf16.vlgmr.msra.gmra.mrb[24].mxu0 %v2439_v45 }
  0x5d   :  { %383 = vmatprep.mubr.bf16.mxu1 %v3273_v0  ;;  %829 = vmatpush1.bf16.msra.mxu0 %v2526_v10 }
  0x5e   :  { %830 = vmatprep.subr.bf16.mxu0 %v2536_v12  ;;  %860 = vmatprep.mubr.bf16.mxu0 %v3273_v0 }
  0x61   :  { %831 = vmatpush1.bf16.msra.mxu0 %v2538_v13 }
  0x62   :  { %832 = vmatprep.subr.bf16.mxu0 %v2541_v14 }
  0x64   :  { %2014 = vmatmul.mubr.msk.bf16.gmra.mrb[28].mxu1 %vm163_vm0, %v2140_v41 }
  0x65   :  { %393 = vmatprep.mubr.bf16.mxu1 %v3273_v0  ;;  %833 = vmatpush1.bf16.msra.mxu0 %v2549_v15 }
  0x66   :  { %834 = vmatprep.subr.bf16.mxu0 %v2552_v16 }
  0x69   :  { %835 = vmatpush1.bf16.msra.mxu0 %v2563_v20 }
  0x6a   :  { %836 = vmatprep.subr.bf16.mxu0 %v2567_v21 }
  0x6c   :  { %2015 = vmatmul.mubr.msk.bf16.gmra.mrb[32].mxu1 %vm163_vm0, %v2512_v4 }
  0x6d   :  { %403 = vmatprep.mubr.bf16.mxu1 %v3273_v0  ;;  %837 = vmatpush1.bf16.msra.mxu0 %v2578_v24 }
  0x6e   :  { %838 = vmatprep.subr.bf16.mxu0 %v2587_v27 }
  0x71   :  { %839 = vmatpush1.bf16.msra.mxu0 %v2590_v28 }
  0x72   :  { %840 = vmatprep.subr.bf16.mxu0 %v2597_v30 }
  0x74   :  { %2016 = vmatmul.mubr.msk.bf16.gmra.mrb[36].mxu1 %vm163_vm0, %v2531_v11 }
  0x75   :  { %757 = vmatprep.mubr.bf16.mxu1 %v3273_v0  ;;  %841 = vmatpush1.bf16.msra.mxu0 %v2601_v31 }
  0x76   :  { %842 = vmatprep.subr.bf16.mxu0 %v2615_v35 }
  0x79   :  { %843 = vmatpush1.bf16.msra.mxu0 %v2619_v37 }
  0x7a   :  { %974 = vmatprep.subr.bf16.mxu0 %v2522_v8 }
  0x7c   :  { %758 = vmatmul.mubr.bf16.vlgmr.msra.gmra.mrb[40].mxu1 %v2439_v45 }
  0x7d   :  { %872 = vmatpush1.bf16.msra.mxu1 %v2557_v18  ;;  %903 = vmatprep.mubr.bf16.mxu1 %v3273_v0 }
  0x7e   :  { %873 = vmatprep.subr.bf16.mxu1 %v2559_v19 }
  0x81   :  { %874 = vmatpush1.bf16.msra.mxu1 %v2571_v22 }
  0x82   :  { %875 = vmatprep.subr.bf16.mxu1 %v2575_v23 }
  0x85   :  { %876 = vmatpush1.bf16.msra.mxu1 %v2585_v26 }
  0x86   :  { %877 = vmatprep.subr.bf16.mxu1 %v2593_v29 }
  0x89   :  { %878 = vmatpush1.bf16.msra.mxu1 %v2603_v32 }
  0x8a   :  { %879 = vmatprep.subr.bf16.mxu1 %v2610_v34 }
  0x8d   :  { %880 = vmatpush1.bf16.msra.mxu1 %v2617_v36 }
  0x8e   :  { %881 = vmatprep.subr.bf16.mxu1 %v2624_v38 }
  0x91   :  { %882 = vmatpush1.bf16.msra.mxu1 %v2632_v39 }
  0x92   :  { %883 = vmatprep.subr.bf16.mxu1 %v2636_v40 }
  0x95   :  { %884 = vmatpush1.bf16.msra.mxu1 %v2643_v42 }
  0x96   :  { %885 = vmatprep.subr.bf16.mxu1 %v2646_v43 }
  0x99   :  { %886 = vmatpush1.bf16.msra.mxu1 %v2653_v44 }
  0x9a   :  { %1017 = vmatprep.subr.bf16.mxu1 %v2524_v9 }
  0xff   :  { %v282_v53 = vpop.f32.mrb[0].mxu1  ;;  %v222_v54 = vpop.f32.mrb[0].mxu0 }
 0x100   :  { %v283_v55 = vadd.f32 %v282_v53, %v2705_v51  ;;  %v284_v56 = vpop.f32.mrb[1].mxu1  ;;  %v223_v57 = vadd.f32 %v222_v54, %v2705_v51  ;;  %v224_v58 = vpop.f32.mrb[1].mxu0 }
 0x101   :  { %v285_v59 = vadd.f32 %v284_v56, %v2707_v52  ;;  %v286_v60 = vpop.f32.mrb[2].mxu1  ;;  %v225_v61 = vadd.f32 %v224_v58, %v2707_v52  ;;  %v226_v62 = vpop.f32.mrb[2].mxu0  ;;  %v93_v58 = vsub.s32 2, %v84_v47 }
 0x102   :  { %v287_v63 = vadd.f32 %v286_v60, %v2705_v51  ;;  %v288_v1 = vpop.f32.mrb[3].mxu1  ;;  %v227_v2 = vadd.f32 %v226_v62, %v2705_v51  ;;  %v228_v3 = vpop.f32.mrb[3].mxu0  ;;  %v97_v62 = vsub.s32 3, %v84_v47 }
 0x103   :  { %v289_v4 = vadd.f32 %v288_v1, %v2707_v52  ;;  %v229_v5 = vadd.f32 %v228_v3, %v2707_v52 }
 0x104   :  { %v2717_v6 = vpack.c.bf16 %v287_v63, %v283_v55  ;;  %v2719_v7 = vpack.c.bf16 %v227_v2, %v223_v57 }
 0x105   :  { %v2721_v11 = vpack.c.bf16 %v289_v4, %v285_v59  ;;  %v2723_v17 = vpack.c.bf16 %v229_v5, %v225_v61  ;;  %v2741_v5 = vrot.slane %v81_v49, %v93_v58 }
 0x106   :  { %3294 = vst [vmem:[#allocation14_spill] sm:$0xff] %v2717_v6 }
 0x107   :  { %3295 = vst [vmem:[#allocation15_spill] sm:$0xff] %v2721_v11  ;;  %v292_v25 = vpop.f32.mrb[4].mxu1  ;;  %v232_v33 = vpop.f32.mrb[4].mxu0 }
 0x108   :  { %v293_v41 = vadd.f32 %v292_v25, %v2705_v51  ;;  %v294_v45 = vpop.f32.mrb[5].mxu1  ;;  %v233_v46 = vadd.f32 %v232_v33, %v2705_v51  ;;  %v234_v48 = vpop.f32.mrb[5].mxu0  ;;  %v2743_v33 = vrot.slane %v81_v49, %v97_v62 }
 0x109   :  { %v295_v50 = vadd.f32 %v294_v45, %v2707_v52  ;;  %v296_v53 = vpop.f32.mrb[6].mxu1  ;;  %v235_v54 = vadd.f32 %v234_v48, %v2707_v52  ;;  %v236_v55 = vpop.f32.mrb[6].mxu0 }
 0x10a   :  { %v297_v56 = vadd.f32 %v296_v53, %v2705_v51  ;;  %v298_v57 = vpop.f32.mrb[7].mxu1  ;;  %v237_v59 = vadd.f32 %v236_v55, %v2705_v51  ;;  %v238_v60 = vpop.f32.mrb[7].mxu0 }
 0x10b   :  { %v299_v61 = vadd.f32 %v298_v57, %v2707_v52  ;;  %v239_v63 = vadd.f32 %v238_v60, %v2707_v52 }
 0x10c   :  { %v2733_v1 = vpack.c.bf16 %v297_v56, %v293_v41  ;;  %v2735_v2 = vpack.c.bf16 %v237_v59, %v233_v46 }
 0x10d   :  { %v2737_v3 = vpack.c.bf16 %v299_v61, %v295_v50  ;;  %v2739_v4 = vpack.c.bf16 %v239_v63, %v235_v54 }
 0x10e   :  { %3296 = vst [vmem:[#allocation16_spill] sm:$0xff] %v2733_v1 }
 0x10f   :  { %3297 = vst [vmem:[#allocation17_spill] sm:$0xff] %v2737_v3  ;;  %v335_v25 = vpop.f32.mrb[8].mxu1  ;;  %v242_v45 = vpop.f32.mrb[8].mxu0 }
 0x110   :  { %v337_v48 = vpop.f32.mrb[9].mxu1  ;;  %v243_v53 = vadd.f32 %v242_v45, %v2705_v51  ;;  %v244_v47 = vpop.f32.mrb[9].mxu0  ;;  %v336_v46 = vadd.f32 %v335_v25, %v2741_v5 }
 0x111   :  { %v339_v55 = vpop.f32.mrb[10].mxu1  ;;  %v245_v41 = vadd.f32 %v244_v47, %v2707_v52  ;;  %v246_v56 = vpop.f32.mrb[10].mxu0  ;;  %v338_v49 = vadd.f32 %v337_v48, %v2743_v33 }
 0x112   :  { %v340_v50 = vadd.f32 %v339_v55, %v2741_v5  ;;  %v341_v54 = vpop.f32.mrb[11].mxu1  ;;  %v247_v57 = vadd.f32 %v246_v56, %v2705_v51  ;;  %v248_v58 = vpop.f32.mrb[11].mxu0 }
 0x113   :  { %v342_v59 = vadd.f32 %v341_v54, %v2743_v33  ;;  %v249_v60 = vadd.f32 %v248_v58, %v2707_v52 }
 0x114   :  { %v2753_v61 = vpack.c.bf16 %v340_v50, %v336_v46  ;;  %v2755_v62 = vpack.c.bf16 %v247_v57, %v243_v53 }
 0x115   :  { %v2757_v63 = vpack.c.bf16 %v342_v59, %v338_v49  ;;  %v2759_v45 = vpack.c.bf16 %v249_v60, %v245_v41 }
 0x116   :  { %3298 = vst [vmem:[#allocation18_spill] sm:$0xff] %v2755_v62 }
 0x117   :  { %3299 = vst [vmem:[#allocation19_spill] sm:$0xff] %v2759_v45  ;;  %v345_v25 = vpop.f32.mrb[12].mxu1  ;;  %v252_v47 = vpop.f32.mrb[12].mxu0 }
 0x118   :  { %v346_v55 = vadd.f32 %v345_v25, %v2741_v5  ;;  %v347_v56 = vpop.f32.mrb[13].mxu1  ;;  %v253_v0 = vadd.f32 %v252_v47, %v2705_v51  ;;  %v254_v48 = vpop.f32.mrb[13].mxu0 }
 0x119   :  { %v348_v54 = vadd.f32 %v347_v56, %v2743_v33  ;;  %v349_v3 = vpop.f32.mrb[14].mxu1  ;;  %v255_v46 = vadd.f32 %v254_v48, %v2707_v52  ;;  %v256_v50 = vpop.f32.mrb[14].mxu0 }
 0x11a   :  { %v350_v53 = vadd.f32 %v349_v3, %v2741_v5  ;;  %v351_v57 = vpop.f32.mrb[15].mxu1  ;;  %v257_v41 = vadd.f32 %v256_v50, %v2705_v51  ;;  %v258_v58 = vpop.f32.mrb[15].mxu0 }
 0x11b   :  { %v352_v49 = vadd.f32 %v351_v57, %v2743_v33  ;;  %v259_v59 = vadd.f32 %v258_v58, %v2707_v52 }
 0x11c   :  { %v2769_v60 = vpack.c.bf16 %v350_v53, %v346_v55  ;;  %v2771_v25 = vpack.c.bf16 %v257_v41, %v253_v0 }
 0x11d   :  { %v2773_v47 = vpack.c.bf16 %v352_v49, %v348_v54  ;;  %v2775_v56 = vpack.c.bf16 %v259_v59, %v255_v46 }
 0x11e   :  { %3300 = vst [vmem:[#allocation20_spill] sm:$0xff] %v2771_v25 }
 0x11f   :  { %3301 = vst [vmem:[#allocation21_spill] sm:$0xff] %v2773_v47  ;;  %3302 = vst [vmem:[#allocation22_spill] sm:$0xff] %v2775_v56  ;;  %v355_v48 = vpop.f32.mrb[16].mxu1  ;;  %v262_v1 = vpop.f32.mrb[16].mxu0 }
 0x120   :  { %v356_v3 = vadd.f32 %v355_v48, %v2741_v5  ;;  %v357_v11 = vpop.f32.mrb[17].mxu1  ;;  %v263_v50 = vadd.f32 %v262_v1, %v2705_v51  ;;  %v264_v6 = vpop.f32.mrb[17].mxu0 }
 0x121   :  { %v358_v57 = vadd.f32 %v357_v11, %v2743_v33  ;;  %v359_v45 = vpop.f32.mrb[18].mxu1  ;;  %v265_v55 = vadd.f32 %v264_v6, %v2707_v52  ;;  %v266_v53 = vpop.f32.mrb[18].mxu0 }
 0x122   :  { %v360_v0 = vadd.f32 %v359_v45, %v2741_v5  ;;  %v361_v54 = vpop.f32.mrb[19].mxu1  ;;  %v267_v46 = vadd.f32 %v266_v53, %v2705_v51  ;;  %v268_v41 = vpop.f32.mrb[19].mxu0 }
 0x123   :  { %v362_v58 = vadd.f32 %v361_v54, %v2743_v33  ;;  %v269_v49 = vadd.f32 %v268_v41, %v2707_v52 }
 0x124   :  { %v2785_v59 = vpack.c.bf16 %v360_v0, %v356_v3  ;;  %v2787_v1 = vpack.c.bf16 %v267_v46, %v263_v50 }
 0x125   :  { %v2789_v48 = vpack.c.bf16 %v362_v58, %v358_v57  ;;  %v2791_v11 = vpack.c.bf16 %v269_v49, %v265_v55 }
 0x126   :  { %3303 = vst [vmem:[#allocation23_spill] sm:$0xff] %v2787_v1  ;;  %v769_v1 = vunpack.c.l.bf16 %v2723_v17 }
 0x127   :  { %3304 = vst [vmem:[#allocation24_spill] sm:$0xff] %v2789_v48  ;;  %3305 = vst [vmem:[#allocation25_spill] sm:$0xff] %v2791_v11  ;;  %v365_v6 = vpop.f32.mrb[20].mxu1  ;;  %v272_v56 = vpop.f32.mrb[20].mxu0 }
 0x128   :  { %v366_v45 = vadd.f32 %v365_v6, %v2741_v5  ;;  %v367_v25 = vpop.f32.mrb[21].mxu1  ;;  %v273_v53 = vadd.f32 %v272_v56, %v2705_v51  ;;  %v274_v62 = vpop.f32.mrb[21].mxu0 }
 0x129   :  { %v368_v54 = vadd.f32 %v367_v25, %v2743_v33  ;;  %v369_v47 = vpop.f32.mrb[22].mxu1  ;;  %v275_v3 = vadd.f32 %v274_v62, %v2707_v52  ;;  %v276_v0 = vpop.f32.mrb[22].mxu0  ;;  %v768_v62 = vunpack.c.l.bf16 %v2719_v7 }
 0x12a   :  { %v370_v50 = vadd.f32 %v369_v47, %v2741_v5  ;;  %v371_v57 = vpop.f32.mrb[23].mxu1  ;;  %v277_v55 = vadd.f32 %v276_v0, %v2705_v51  ;;  %v278_v46 = vpop.f32.mrb[23].mxu0 }
 0x12b   :  { %v372_v41 = vadd.f32 %v371_v57, %v2743_v33  ;;  %v279_v58 = vadd.f32 %v278_v46, %v2707_v52  ;;  %v772_v52 = vunpack.c.h.bf16 %v2719_v7 }
 0x12c   :  { %v2801_v49 = vpack.c.bf16 %v370_v50, %v366_v45  ;;  %v2803_v56 = vpack.c.bf16 %v277_v55, %v273_v53 }
 0x12d   :  { %v2805_v6 = vpack.c.bf16 %v372_v41, %v368_v54  ;;  %v2807_v25 = vpack.c.bf16 %v279_v58, %v275_v3  ;;  %v773_v3 = vunpack.c.h.bf16 %v2723_v17 }
 0x12e   :  { %3306 = vst [vmem:[#allocation26_spill] sm:$0xff] %v2803_v56 }
 0x12f   :  { %3307 = vst [vmem:[#allocation27_spill] sm:$0xff] %v2807_v25  ;;  %v375_v11 = vpop.f32.mrb[24].mxu1  ;;  %v716_v47 = vpop.f32.mrb[24].mxu0 }
 0x130   :  { %v376_v51 = vadd.f32 %v375_v11, %v2741_v5  ;;  %v776_v0 = vadd.f32 %v768_v62, %v716_v47  ;;  %v377_v57 = vpop.f32.mrb[25].mxu1  ;;  %v718_v48 = vpop.f32.mrb[25].mxu0 }
 0x131   :  { %v378_v45 = vadd.f32 %v377_v57, %v2743_v33  ;;  %v777_v53 = vadd.f32 %v769_v1, %v718_v48  ;;  %v379_v54 = vpop.f32.mrb[26].mxu1  ;;  %v720_v50 = vpop.f32.mrb[26].mxu0 }
 0x132   :  { %v380_v55 = vadd.f32 %v379_v54, %v2741_v5  ;;  %v780_v46 = vadd.f32 %v772_v52, %v720_v50  ;;  %v381_v41 = vpop.f32.mrb[27].mxu1  ;;  %v722_v58 = vpop.f32.mrb[27].mxu0 }
 0x133   :  { %v382_v25 = vadd.f32 %v381_v41, %v2743_v33  ;;  %v781_v11 = vadd.f32 %v773_v3, %v722_v58 }
 0x134   :  { %v2817_v62 = vpack.c.bf16 %v380_v55, %v376_v51 }
 0x135   :  { %v2819_v47 = vpack.c.bf16 %v382_v25, %v378_v45 }
 0x137   :  { %3308 = vst [vmem:[#allocation28_spill] sm:$0xff] %v2819_v47  ;;  %v385_v7 = vpop.f32.mrb[28].mxu1 }
 0x138   :  { %v386_v57 = vadd.f32 %v385_v7, %v2741_v5  ;;  %v387_v1 = vpop.f32.mrb[29].mxu1 }
 0x139   :  { %v388_v48 = vadd.f32 %v387_v1, %v2743_v33  ;;  %v389_v56 = vpop.f32.mrb[30].mxu1 }
 0x13a   :  { %v390_v17 = vadd.f32 %v389_v56, %v2741_v5  ;;  %v391_v54 = vpop.f32.mrb[31].mxu1  ;;  %v792_v56 = vmul.f32 0.5, %v777_v53 }
 0x13b   :  { %v392_v52 = vadd.f32 %v391_v54, %v2743_v33  ;;  %v784_v54 = vmul.f32 0.5, %v776_v0 }
 0x13c   :  { %v2825_v50 = vpack.c.bf16 %v390_v17, %v386_v57  ;;  %2170 = vtanh.f32 %v792_v56 }
 0x13d   :  { %v2827_v41 = vpack.c.bf16 %v392_v52, %v388_v48  ;;  %v793_v48 = vmul.f32 0.5, %v781_v11  ;;  %v785_v52 = vmul.f32 0.5, %v780_v46  ;;  %2172 = vtanh.f32 %v784_v54 }
 0x13e   :  { %v770_v46 = vunpack.c.l.bf16 %v2753_v61 }
 0x13f   :  { %3309 = vst [vmem:[#allocation29_spill] sm:$0xff] %v2827_v41  ;;  %v395_v51 = vpop.f32.mrb[32].mxu1  ;;  %2174 = vtanh.f32 %v793_v48 }
 0x140   :  { %v396_v25 = vadd.f32 %v395_v51, %v2741_v5  ;;  %v397_v45 = vpop.f32.mrb[33].mxu1  ;;  %2176 = vtanh.f32 %v785_v52 }
 0x141   :  { %v398_v3 = vadd.f32 %v397_v45, %v2743_v33  ;;  %v399_v55 = vpop.f32.mrb[34].mxu1 }
 0x142   :  { %v400_v58 = vadd.f32 %v399_v55, %v2741_v5  ;;  %v401_v7 = vpop.f32.mrb[35].mxu1 }
 0x143   :  { %v402_v1 = vadd.f32 %v401_v7, %v2743_v33 }
 0x144   :  { %v2833_v47 = vpack.c.bf16 %v400_v58, %v396_v25  ;;  %v771_v58 = vunpack.c.l.bf16 %v2757_v63 }
 0x145   :  { %v2835_v57 = vpack.c.bf16 %v402_v1, %v398_v3 }
 0x147   :  { %3310 = vst [vmem:[#allocation30_spill] sm:$0xff] %v2835_v57  ;;  %v405_v17 = vpop.f32.mrb[36].mxu1 }
 0x148   :  { %v406_v51 = vadd.f32 %v405_v17, %v2741_v5  ;;  %v407_v41 = vpop.f32.mrb[37].mxu1  ;;  %v2171_v17 = vpop.eup %2170 }
 0x149   :  { %v408_v45 = vadd.f32 %v407_v41, %v2743_v33  ;;  %v409_v55 = vpop.f32.mrb[38].mxu1  ;;  %v774_v41 = vunpack.c.h.bf16 %v2753_v61 }
 0x14a   :  { %v410_v7 = vadd.f32 %v409_v55, %v2741_v5  ;;  %v411_v53 = vpop.f32.mrb[39].mxu1  ;;  %v775_v5 = vunpack.c.h.bf16 %v2757_v63 }
 0x14b   :  { %v412_v25 = vadd.f32 %v411_v53, %v2743_v33 }
 0x14c   :  { %v2841_v0 = vpack.c.bf16 %v410_v7, %v406_v51  ;;  %v2173_v51 = vpop.eup %2172  ;;  %v796_v7 = vmul.f32 0.5, %v2171_v17 }
 0x14d   :  { %v2843_v11 = vpack.c.bf16 %v412_v25, %v408_v45  ;;  %v2175_v55 = vpop.eup %2174 }
 0x14e   :  { %3311 = vst [vmem:[#allocation31_spill] sm:$0xff] %v2841_v0  ;;  %v2177_v53 = vpop.eup %2176  ;;  %v798_v0 = vadd.f32 0.5, %v796_v7 }
 0x14f   :  { %3312 = vst [vmem:[#allocation32_spill] sm:$0xff] %v2843_v11  ;;  %v759_v3 = vpop.f32.mrb[40].mxu1  ;;  %v788_v11 = vmul.f32 0.5, %v2173_v51  ;;  %v789_v61 = vmul.f32 0.5, %v2177_v53 }
 0x150   :  { %v778_v1 = vadd.f32 %v770_v46, %v759_v3  ;;  %v761_v56 = vpop.f32.mrb[41].mxu1  ;;  %v797_v46 = vmul.f32 0.5, %v2175_v55 }
 0x151   :  { %v779_v54 = vadd.f32 %v771_v58, %v761_v56  ;;  %v763_v48 = vpop.f32.mrb[42].mxu1  ;;  %v790_v58 = vadd.f32 0.5, %v788_v11 }
 0x152   :  { %2178 = vtanh.f32 %v778_v1  ;;  %v782_v33 = vadd.f32 %v774_v41, %v763_v48  ;;  %v765_v52 = vpop.f32.mrb[43].mxu1  ;;  %v799_v56 = vadd.f32 0.5, %v797_v46  ;;  %v810_v1 = vmul.f32 0.0, %v798_v0 }
 0x153   :  { %v783_v45 = vadd.f32 %v775_v5, %v765_v52  ;;  %v802_v25 = vmul.f32 0.5, %v779_v54  ;;  %v791_v41 = vadd.f32 0.5, %v789_v61 }
 0x154   :  { %2180 = vtanh.f32 %v782_v33  ;;  %v811_v5 = vmul.f32 0.0, %v799_v56 }
 0x155   :  { %v803_v3 = vmul.f32 0.5, %v783_v45  ;;  %2182 = vtanh.f32 %v802_v25 }
 0x157   :  { %2184 = vtanh.f32 %v803_v3 }
 0x15c   :  { %v2179_v63 = vpop.eup %2178 }
 0x15d   :  { %v812_v48 = vmul.f32 %v2179_v63, %v790_v58 }
 0x15e   :  { %v2181_v57 = vpop.eup %2180 }
 0x15f   :  { %v2849_v52 = vadd.f32 %v812_v48, %v810_v1  ;;  %v813_v17 = vmul.f32 %v2181_v57, %v791_v41  ;;  %v2183_v33 = vpop.eup %2182  ;;  %v3313_v57 = vmov 0   ;;  %v918_v41 = vunpack.c.h.bf16 %v2735_v2 }
 0x160   :  { %v806_v11 = vmul.f32 0.5, %v2183_v33  ;;  %v919_v33 = vunpack.c.h.bf16 %v2739_v4 }
 0x161   :  { %2186 = vtanh.f32 %v2849_v52  ;;  %v2852_v54 = vadd.f32 %v813_v17, %v811_v5  ;;  %v2185_v51 = vpop.eup %2184 }
 0x162   :  { %v807_v45 = vmul.f32 0.5, %v2185_v51  ;;  %v808_v7 = vadd.f32 0.5, %v806_v11 }
 0x163   :  { %2188 = vtanh.f32 %v2852_v54 }
 0x164   :  { %v809_v0 = vadd.f32 0.5, %v807_v45 }
 0x16b   :  { %v2187_v55 = vpop.eup %2186 }
 0x16c   :  { %v818_v25 = vmul.f32 %v2187_v55, %v808_v7 }
 0x16d   :  { %v2189_v53 = vpop.eup %2188 }
 0x16e   :  { %v819_v46 = vmul.f32 %v2189_v53, %v809_v0 }
 0x170   :  { %v827_v3 = vpack.c.bf16 %v819_v46, %v818_v25 }
 0x172   :  { %861 = vmatmul.mubr.bf16.vlgmr.msra.gmra.mrb[28].mxu0 %v827_v3  ;;  %904 = vmatmul.mubr.bf16.vlgmr.msra.gmra.mrb[44].mxu1 %v827_v3 }
 0x173   :  { %975 = vmatpush1.bf16.msra.mxu0 %v2526_v10  ;;  %1018 = vmatpush1.bf16.msra.mxu1 %v2557_v18  ;;  %v914_v10 = vunpack.c.l.bf16 %v2735_v2 }
 0x174   :  { %976 = vmatprep.subr.bf16.mxu0 %v2536_v12  ;;  %1019 = vmatprep.subr.bf16.mxu1 %v2559_v19  ;;  %v916_v12 = vunpack.c.l.bf16 %v2769_v60 }
 0x175   :  { %1006 = vmatprep.mubr.bf16.mxu0 %v3313_v57  ;;  %1049 = vmatprep.mubr.bf16.mxu1 %v3313_v57 }
 0x177   :  { %977 = vmatpush1.bf16.msra.mxu0 %v2538_v13  ;;  %1020 = vmatpush1.bf16.msra.mxu1 %v2571_v22 }
 0x178   :  { %978 = vmatprep.subr.bf16.mxu0 %v2541_v14  ;;  %1021 = vmatprep.subr.bf16.mxu1 %v2575_v23 }
 0x17b   :  { %979 = vmatpush1.bf16.msra.mxu0 %v2549_v15  ;;  %1022 = vmatpush1.bf16.msra.mxu1 %v2585_v26  ;;  %v915_v15 = vunpack.c.l.bf16 %v2739_v4 }
 0x17c   :  { %980 = vmatprep.subr.bf16.mxu0 %v2552_v16  ;;  %1023 = vmatprep.subr.bf16.mxu1 %v2593_v29  ;;  %v3314_v16 = vld [vmem:[#allocation21_spill] sm:$0xff] }
 0x17d   :  { %v917_v61 = vunpack.c.l.bf16 %v3314_v16  ;;  %v921_v51 = vunpack.c.h.bf16 %v3314_v16 }
 0x17f   :  { %981 = vmatpush1.bf16.msra.mxu0 %v2563_v20  ;;  %1024 = vmatpush1.bf16.msra.mxu1 %v2603_v32 }
 0x180   :  { %982 = vmatprep.subr.bf16.mxu0 %v2567_v21  ;;  %1025 = vmatprep.subr.bf16.mxu1 %v2610_v34 }
 0x183   :  { %983 = vmatpush1.bf16.msra.mxu0 %v2578_v24  ;;  %1026 = vmatpush1.bf16.msra.mxu1 %v2617_v36 }
 0x184   :  { %984 = vmatprep.subr.bf16.mxu0 %v2587_v27  ;;  %1027 = vmatprep.subr.bf16.mxu1 %v2624_v38 }
 0x187   :  { %985 = vmatpush1.bf16.msra.mxu0 %v2590_v28  ;;  %1028 = vmatpush1.bf16.msra.mxu1 %v2632_v39 }
 0x188   :  { %986 = vmatprep.subr.bf16.mxu0 %v2597_v30  ;;  %1029 = vmatprep.subr.bf16.mxu1 %v2636_v40 }
 0x18b   :  { %987 = vmatpush1.bf16.msra.mxu0 %v2601_v31  ;;  %1030 = vmatpush1.bf16.msra.mxu1 %v2643_v42 }
 0x18c   :  { %988 = vmatprep.subr.bf16.mxu0 %v2615_v35  ;;  %1031 = vmatprep.subr.bf16.mxu1 %v2646_v43 }
 0x18f   :  { %989 = vmatpush1.bf16.msra.mxu0 %v2619_v37  ;;  %1032 = vmatpush1.bf16.msra.mxu1 %v2653_v44 }
 0x190   :  { %1120 = vmatprep.subr.bf16.mxu0 %v2522_v8  ;;  %1163 = vmatprep.subr.bf16.mxu1 %v2524_v9  ;;  %v920_v8 = vunpack.c.h.bf16 %v2769_v60 }
 0x245   :  { %v862_v13 = vpop.f32.mrb[28].mxu0  ;;  %v905_v14 = vpop.f32.mrb[44].mxu1 }
 0x246   :  { %v922_v58 = vadd.f32 %v914_v10, %v862_v13  ;;  %v924_v56 = vadd.f32 %v916_v12, %v905_v14  ;;  %v864_v63 = vpop.f32.mrb[29].mxu0  ;;  %v907_v1 = vpop.f32.mrb[45].mxu1 }
 0x247   :  { %v923_v48 = vadd.f32 %v915_v15, %v864_v63  ;;  %v925_v9 = vadd.f32 %v917_v61, %v907_v1  ;;  %v866_v5 = vpop.f32.mrb[30].mxu0  ;;  %v909_v17 = vpop.f32.mrb[46].mxu1 }
 0x248   :  { %v930_v11 = vmul.f32 0.5, %v922_v58  ;;  %v926_v45 = vadd.f32 %v918_v41, %v866_v5  ;;  %v928_v55 = vadd.f32 %v920_v8, %v909_v17  ;;  %v868_v7 = vpop.f32.mrb[31].mxu0  ;;  %v911_v0 = vpop.f32.mrb[47].mxu1 }
 0x249   :  { %v938_v53 = vmul.f32 0.5, %v923_v48  ;;  %v927_v25 = vadd.f32 %v919_v33, %v868_v7  ;;  %v929_v46 = vadd.f32 %v921_v51, %v911_v0  ;;  %v948_v12 = vmul.f32 0.5, %v925_v9 }
 0x24a   :  { %2190 = vtanh.f32 %v930_v11  ;;  %v931_v2 = vmul.f32 0.5, %v926_v45 }
 0x24b   :  { %2192 = vtanh.f32 %v938_v53  ;;  %v939_v60 = vmul.f32 0.5, %v927_v25  ;;  %v949_v14 = vmul.f32 0.5, %v929_v46 }
 0x24c   :  { %2194 = vtanh.f32 %v931_v2 }
 0x24d   :  { %2196 = vtanh.f32 %v924_v56 }
 0x24e   :  { %2198 = vtanh.f32 %v939_v60 }
 0x24f   :  { %2200 = vtanh.f32 %v928_v55 }
 0x250   :  { %2202 = vtanh.f32 %v948_v12  ;;  %v2919_v12 = vld [vmem:[#allocation8 + $0x44] ss:$16 sps:$4 sm:$0xff]  }
 0x251   :  { %2204 = vtanh.f32 %v949_v14 }
 0x254   :  { %v2191_v3 = vpop.eup %2190 }
 0x255   :  { %v2193_v4 = vpop.eup %2192  ;;  %v934_v10 = vmul.f32 0.5, %v2191_v3 }
 0x256   :  { %v942_v13 = vmul.f32 0.5, %v2193_v4  ;;  %v2195_v15 = vpop.eup %2194  ;;  %v2909_v4 = vld [vmem:[#allocation8 + $0x24] ss:$16 sps:$4 sm:$0xff]  }
 0x257   :  { %v936_v16 = vadd.f32 0.5, %v934_v10  ;;  %v2197_v61 = vpop.eup %2196  ;;  %v935_v63 = vmul.f32 0.5, %v2195_v15  ;;  %v2915_v10 = vld [vmem:[#allocation8 + $0x20] ss:$16 sps:$4 sm:$0xff]  }
 0x258   :  { %v944_v58 = vadd.f32 0.5, %v942_v13  ;;  %v2199_v1 = vpop.eup %2198 }
 0x259   :  { %v958_v41 = vmul.f32 %v2197_v61, %v936_v16  ;;  %v937_v48 = vadd.f32 0.5, %v935_v63  ;;  %v943_v56 = vmul.f32 0.5, %v2199_v1  ;;  %v2201_v5 = vpop.eup %2200 }
 0x25a   :  { %v956_v8 = vmul.f32 %v944_v58, %v2849_v52  ;;  %v2203_v45 = vpop.eup %2202 }
 0x25b   :  { %v945_v33 = vadd.f32 0.5, %v943_v56  ;;  %v959_v9 = vmul.f32 %v2201_v5, %v937_v48  ;;  %v2205_v55 = vpop.eup %2204  ;;  %v952_v7 = vmul.f32 0.5, %v2203_v45 }
 0x25c   :  { %v2898_v17 = vadd.f32 %v958_v41, %v956_v8  ;;  %v953_v52 = vmul.f32 0.5, %v2205_v55 }
 0x25d   :  { %v957_v51 = vmul.f32 %v945_v33, %v2852_v54  ;;  %v954_v53 = vadd.f32 0.5, %v952_v7  ;;  %v2905_v54 = vld [vmem:[#allocation8] ss:$16 sps:$4 sm:$0xff]  }
 0x25e   :  { %2206 = vtanh.f32 %v2898_v17  ;;  %v955_v25 = vadd.f32 0.5, %v953_v52 }
 0x25f   :  { %v2902_v11 = vadd.f32 %v959_v9, %v957_v51 }
 0x261   :  { %2208 = vtanh.f32 %v2902_v11 }
 0x268   :  { %v2207_v0 = vpop.eup %2206 }
 0x269   :  { %v964_v2 = vmul.f32 %v2207_v0, %v954_v53 }
 0x26b   :  { %v2209_v46 = vpop.eup %2208 }
 0x26c   :  { %v965_v60 = vmul.f32 %v2209_v46, %v955_v25 }
 0x26e   :  { %v973_v3 = vpack.c.bf16 %v965_v60, %v964_v2 }
 0x270   :  { %1007 = vmatmul.mubr.bf16.vlgmr.msra.gmra.mrb[32].mxu0 %v973_v3  ;;  %1050 = vmatmul.mubr.bf16.vlgmr.msra.gmra.mrb[48].mxu1 %v973_v3 }
 0x271   :  { %1121 = vmatpush1.bf16.msra.mxu0 %v2905_v54  ;;  %1164 = vmatpush1.bf16.msra.mxu1 %v2557_v18  ;;  %v2923_v18 = vld [vmem:[#allocation8 + $0x40] ss:$16 sps:$4 sm:$0xff]  }
 0x272   :  { %1122 = vmatprep.subr.bf16.mxu0 %v2909_v4  ;;  %1165 = vmatprep.subr.bf16.mxu1 %v2559_v19  ;;  %v2927_v19 = vld [vmem:[#allocation8 + $0x64] ss:$16 sps:$4 sm:$0xff]  }
 0x273   :  { %1152 = vmatprep.mubr.bf16.mxu0 %v3313_v57  ;;  %1195 = vmatprep.mubr.bf16.mxu1 %v3313_v57 }
 0x275   :  { %1123 = vmatpush1.bf16.msra.mxu0 %v2915_v10  ;;  %1166 = vmatpush1.bf16.msra.mxu1 %v2571_v22  ;;  %v3315_v22 = vld [vmem:[#allocation18_spill] sm:$0xff] }
 0x276   :  { %1124 = vmatprep.subr.bf16.mxu0 %v2919_v12  ;;  %1167 = vmatprep.subr.bf16.mxu1 %v2575_v23  ;;  %v1060_v23 = vunpack.c.l.bf16 %v3315_v22 }
 0x279   :  { %1125 = vmatpush1.bf16.msra.mxu0 %v2923_v18  ;;  %1168 = vmatpush1.bf16.msra.mxu1 %v2585_v26 }
 0x27a   :  { %1126 = vmatprep.subr.bf16.mxu0 %v2927_v19  ;;  %1169 = vmatprep.subr.bf16.mxu1 %v2593_v29 }
 0x27d   :  { %1127 = vmatpush1.bf16.msra.mxu0 %v2563_v20  ;;  %1170 = vmatpush1.bf16.msra.mxu1 %v2603_v32  ;;  %v2949_v20 = vld [vmem:[#allocation8 + $0x4] ss:$16 sps:$4 sm:$0xff]  }
 0x27e   :  { %1128 = vmatprep.subr.bf16.mxu0 %v2567_v21  ;;  %1171 = vmatprep.subr.bf16.mxu1 %v2610_v34  ;;  %v2952_v21 = vld [vmem:[#allocation8 + $0xc] ss:$16 sps:$4 sm:$0xff]  }
 0x281   :  { %1129 = vmatpush1.bf16.msra.mxu0 %v2578_v24  ;;  %1172 = vmatpush1.bf16.msra.mxu1 %v2617_v36  ;;  %v1062_v24 = vunpack.c.l.bf16 %v2785_v59 }
 0x282   :  { %1130 = vmatprep.subr.bf16.mxu0 %v2587_v27  ;;  %1173 = vmatprep.subr.bf16.mxu1 %v2624_v38  ;;  %v1066_v38 = vunpack.c.h.bf16 %v2785_v59 }
 0x285   :  { %1131 = vmatpush1.bf16.msra.mxu0 %v2590_v28  ;;  %1174 = vmatpush1.bf16.msra.mxu1 %v2632_v39  ;;  %v3316_v28 = vld [vmem:[#allocation19_spill] sm:$0xff] }
 0x286   :  { %1132 = vmatprep.subr.bf16.mxu0 %v2597_v30  ;;  %1175 = vmatprep.subr.bf16.mxu1 %v2636_v40  ;;  %v1061_v29 = vunpack.c.l.bf16 %v3316_v28  ;;  %v3317_v30 = vld [vmem:[#allocation24_spill] sm:$0xff] }
 0x287   :  { %v1067_v13 = vunpack.c.h.bf16 %v3317_v30 }
 0x289   :  { %1133 = vmatpush1.bf16.msra.mxu0 %v2601_v31  ;;  %1176 = vmatpush1.bf16.msra.mxu1 %v2643_v42  ;;  %v1063_v31 = vunpack.c.l.bf16 %v3317_v30 }
 0x28a   :  { %1134 = vmatprep.subr.bf16.mxu0 %v2615_v35  ;;  %1177 = vmatprep.subr.bf16.mxu1 %v2646_v43 }
 0x28d   :  { %1135 = vmatpush1.bf16.msra.mxu0 %v2619_v37  ;;  %1178 = vmatpush1.bf16.msra.mxu1 %v2653_v44  ;;  %v1064_v37 = vunpack.c.h.bf16 %v3315_v22  ;;  %v1065_v44 = vunpack.c.h.bf16 %v3316_v28 }
 0x28e   :  { %1266 = vmatprep.subr.bf16.mxu0 %v2949_v20  ;;  %1309 = vmatprep.subr.bf16.mxu1 %v2952_v21 }
 0x343   :  { %v1008_v26 = vpop.f32.mrb[32].mxu0  ;;  %v1051_v27 = vpop.f32.mrb[48].mxu1 }
 0x344   :  { %v1068_v32 = vadd.f32 %v1060_v23, %v1008_v26  ;;  %v1070_v34 = vadd.f32 %v1062_v24, %v1051_v27  ;;  %v1010_v35 = vpop.f32.mrb[33].mxu0  ;;  %v1053_v36 = vpop.f32.mrb[49].mxu1 }
 0x345   :  { %v1069_v39 = vadd.f32 %v1061_v29, %v1010_v35  ;;  %v1071_v40 = vadd.f32 %v1063_v31, %v1053_v36  ;;  %v1012_v42 = vpop.f32.mrb[34].mxu0  ;;  %v1055_v43 = vpop.f32.mrb[50].mxu1 }
 0x346   :  { %v1076_v14 = vmul.f32 0.5, %v1068_v32  ;;  %v1072_v15 = vadd.f32 %v1064_v37, %v1012_v42  ;;  %v1074_v16 = vadd.f32 %v1066_v38, %v1055_v43  ;;  %v1014_v61 = vpop.f32.mrb[35].mxu0  ;;  %v1057_v58 = vpop.f32.mrb[51].mxu1  ;;  %v2986_v42 = vld [vmem:[#allocation8 + $0x4c] ss:$16 sps:$4 sm:$0xff]  }
 0x347   :  { %v1084_v63 = vmul.f32 0.5, %v1069_v39  ;;  %v1073_v1 = vadd.f32 %v1065_v44, %v1014_v61  ;;  %v1075_v41 = vadd.f32 %v1067_v13, %v1057_v58  ;;  %v1094_v33 = vmul.f32 0.5, %v1071_v40  ;;  %v2976_v39 = vld [vmem:[#allocation8 + $0x2c] ss:$16 sps:$4 sm:$0xff]   ;;  %v2982_v40 = vld [vmem:[#allocation8 + $0x28] ss:$16 sps:$4 sm:$0xff]  }
 0x348   :  { %2210 = vtanh.f32 %v1076_v14  ;;  %v1077_v8 = vmul.f32 0.5, %v1072_v15  ;;  %v2990_v43 = vld [vmem:[#allocation8 + $0x48] ss:$16 sps:$4 sm:$0xff]   ;;  %v2994_v44 = vld [vmem:[#allocation8 + $0x6c] ss:$16 sps:$4 sm:$0xff]  }
 0x349   :  { %2212 = vtanh.f32 %v1084_v63  ;;  %v1085_v59 = vmul.f32 0.5, %v1073_v1  ;;  %v1095_v51 = vmul.f32 0.5, %v1075_v41  ;;  %v2997_v13 = vld [vmem:[#allocation8 + $0x60] ss:$16 sps:$4 sm:$0xff]   ;;  %v3000_v14 = vld [vmem:[#allocation8 + $0x68] ss:$16 sps:$4 sm:$0xff]  }
 0x34a   :  { %2214 = vtanh.f32 %v1077_v8  ;;  %v3003_v15 = vld [vmem:[#allocation8 + $0x84] ss:$16 sps:$4 sm:$0xff]   ;;  %v3009_v61 = vld [vmem:[#allocation8 + $0x80] ss:$16 sps:$4 sm:$0xff]   ;;  %v3012_v58 = vld [vmem:[#allocation8 + $0x88] ss:$16 sps:$4 sm:$0xff]  }
 0x34b   :  { %2216 = vtanh.f32 %v1070_v34  ;;  %v3015_v63 = vld [vmem:[#allocation8 + $0xa4] ss:$16 sps:$4 sm:$0xff]   ;;  %v3018_v1 = vld [vmem:[#allocation8 + $0xac] ss:$16 sps:$4 sm:$0xff]   ;;  %v3021_v41 = vld [vmem:[#allocation8 + $0xa0] ss:$16 sps:$4 sm:$0xff]  }
 0x34c   :  { %2218 = vtanh.f32 %v1085_v59  ;;  %v3024_v8 = vld [vmem:[#allocation8 + $0xa8] ss:$16 sps:$4 sm:$0xff]   ;;  %v3027_v59 = vld [vmem:[#allocation8 + $0xc4] ss:$16 sps:$4 sm:$0xff]  }
 0x34d   :  { %2220 = vtanh.f32 %v1074_v16  ;;  %v3006_v16 = vld [vmem:[#allocation8 + $0x8c] ss:$16 sps:$4 sm:$0xff]  }
 0x34e   :  { %2222 = vtanh.f32 %v1094_v33  ;;  %v3039_v33 = vld [vmem:[#allocation8 + $0xe4] ss:$16 sps:$4 sm:$0xff]  }
 0x34f   :  { %2224 = vtanh.f32 %v1095_v51  ;;  %v3045_v51 = vld [vmem:[#allocation8 + $0xe0] ss:$16 sps:$4 sm:$0xff]  }
 0x352   :  { %v2211_v48 = vpop.eup %2210 }
 0x353   :  { %v2213_v56 = vpop.eup %2212  ;;  %v1080_v5 = vmul.f32 0.5, %v2211_v48  ;;  %v3030_v48 = vld [vmem:[#allocation8 + $0xcc] ss:$16 sps:$4 sm:$0xff]  }
 0x354   :  { %v1088_v9 = vmul.f32 0.5, %v2213_v56  ;;  %v2215_v45 = vpop.eup %2214  ;;  %v3033_v56 = vld [vmem:[#allocation8 + $0xc0] ss:$16 sps:$4 sm:$0xff]  }
 0x355   :  { %v1082_v55 = vadd.f32 0.5, %v1080_v5  ;;  %v2217_v7 = vpop.eup %2216  ;;  %v1081_v0 = vmul.f32 0.5, %v2215_v45  ;;  %v3036_v5 = vld [vmem:[#allocation8 + $0xc8] ss:$16 sps:$4 sm:$0xff]  }
 0x356   :  { %v1090_v52 = vadd.f32 0.5, %v1088_v9  ;;  %v2219_v53 = vpop.eup %2218  ;;  %v3042_v9 = vld [vmem:[#allocation8 + $0xec] ss:$16 sps:$4 sm:$0xff]   ;;  %v3048_v45 = vld [vmem:[#allocation8 + $0xe8] ss:$16 sps:$4 sm:$0xff]  }
 0x357   :  { %v1104_v25 = vmul.f32 %v2217_v7, %v1082_v55  ;;  %v1083_v2 = vadd.f32 0.5, %v1081_v0  ;;  %v1089_v60 = vmul.f32 0.5, %v2219_v53  ;;  %v2221_v3 = vpop.eup %2220  ;;  %v3318_v55 = vld [vmem:[#allocation20_spill] sm:$0xff] }
 0x358   :  { %v1102_v46 = vmul.f32 %v1090_v52, %v2898_v17  ;;  %v2223_v28 = vpop.eup %2222  ;;  %v1206_v7 = vunpack.c.l.bf16 %v3318_v55  ;;  %v1208_v52 = vunpack.c.l.bf16 %v2801_v49 }
 0x359   :  { %v1091_v23 = vadd.f32 0.5, %v1089_v60  ;;  %v1105_v24 = vmul.f32 %v2221_v3, %v1083_v2  ;;  %v2225_v29 = vpop.eup %2224  ;;  %v1098_v30 = vmul.f32 0.5, %v2223_v28  ;;  %v1209_v2 = vunpack.c.l.bf16 %v2805_v6 }
 0x35a   :  { %v2964_v22 = vadd.f32 %v1104_v25, %v1102_v46  ;;  %v1099_v17 = vmul.f32 0.5, %v2225_v29  ;;  %v3319_v25 = vld [vmem:[#allocation22_spill] sm:$0xff]  ;;  %v1212_v28 = vunpack.c.h.bf16 %v2801_v49 }
 0x35b   :  { %v1103_v26 = vmul.f32 %v1091_v23, %v2902_v11  ;;  %v1100_v32 = vadd.f32 0.5, %v1098_v30  ;;  %v2972_v11 = vld [vmem:[#allocation8 + $0x8] ss:$16 sps:$4 sm:$0xff]   ;;  %v1207_v46 = vunpack.c.l.bf16 %v3319_v25 }
 0x35c   :  { %2226 = vtanh.f32 %v2964_v22  ;;  %v1101_v34 = vadd.f32 0.5, %v1099_v17 }
 0x35d   :  { %v2968_v27 = vadd.f32 %v1105_v24, %v1103_v26  ;;  %v1210_v26 = vunpack.c.h.bf16 %v3318_v55 }
 0x35f   :  { %2228 = vtanh.f32 %v2968_v27 }
 0x366   :  { %v2227_v31 = vpop.eup %2226 }
 0x367   :  { %v1110_v36 = vmul.f32 %v2227_v31, %v1100_v32  ;;  %v1211_v32 = vunpack.c.h.bf16 %v3319_v25 }
 0x369   :  { %v2229_v35 = vpop.eup %2228 }
 0x36a   :  { %v1111_v37 = vmul.f32 %v2229_v35, %v1101_v34  ;;  %v1213_v34 = vunpack.c.h.bf16 %v2805_v6 }
 0x36c   :  { %v1119_v38 = vpack.c.bf16 %v1111_v37, %v1110_v36 }
 0x36e   :  { %1153 = vmatmul.mubr.bf16.vlgmr.msra.gmra.mrb[36].mxu0 %v1119_v38  ;;  %1196 = vmatmul.mubr.bf16.vlgmr.msra.gmra.mrb[52].mxu1 %v1119_v38 }
 0x36f   :  { %1267 = vmatpush1.bf16.msra.mxu0 %v2905_v54  ;;  %1310 = vmatpush1.bf16.msra.mxu1 %v2972_v11 }
 0x370   :  { %1268 = vmatprep.subr.bf16.mxu0 %v2909_v4  ;;  %1311 = vmatprep.subr.bf16.mxu1 %v2976_v39 }
 0x371   :  { %1298 = vmatprep.mubr.bf16.mxu0 %v3313_v57  ;;  %1341 = vmatprep.mubr.bf16.mxu1 %v3313_v57 }
 0x373   :  { %1269 = vmatpush1.bf16.msra.mxu0 %v2915_v10  ;;  %1312 = vmatpush1.bf16.msra.mxu1 %v2982_v40 }
 0x374   :  { %1270 = vmatprep.subr.bf16.mxu0 %v2919_v12  ;;  %1313 = vmatprep.subr.bf16.mxu1 %v2986_v42 }
 0x377   :  { %1271 = vmatpush1.bf16.msra.mxu0 %v2923_v18  ;;  %1314 = vmatpush1.bf16.msra.mxu1 %v2990_v43 }
 0x378   :  { %1272 = vmatprep.subr.bf16.mxu0 %v2927_v19  ;;  %1315 = vmatprep.subr.bf16.mxu1 %v2994_v44 }
 0x37b   :  { %1273 = vmatpush1.bf16.msra.mxu0 %v2997_v13  ;;  %1316 = vmatpush1.bf16.msra.mxu1 %v3000_v14 }
 0x37c   :  { %1274 = vmatprep.subr.bf16.mxu0 %v3003_v15  ;;  %1317 = vmatprep.subr.bf16.mxu1 %v3006_v16 }
 0x37f   :  { %1275 = vmatpush1.bf16.msra.mxu0 %v3009_v61  ;;  %1318 = vmatpush1.bf16.msra.mxu1 %v3012_v58 }
 0x380   :  { %1276 = vmatprep.subr.bf16.mxu0 %v3015_v63  ;;  %1319 = vmatprep.subr.bf16.mxu1 %v3018_v1 }
 0x383   :  { %1277 = vmatpush1.bf16.msra.mxu0 %v3021_v41  ;;  %1320 = vmatpush1.bf16.msra.mxu1 %v3024_v8 }
 0x384   :  { %1278 = vmatprep.subr.bf16.mxu0 %v3027_v59  ;;  %1321 = vmatprep.subr.bf16.mxu1 %v3030_v48 }
 0x387   :  { %1279 = vmatpush1.bf16.msra.mxu0 %v3033_v56  ;;  %1322 = vmatpush1.bf16.msra.mxu1 %v3036_v5 }
 0x388   :  { %1280 = vmatprep.subr.bf16.mxu0 %v3039_v33  ;;  %1323 = vmatprep.subr.bf16.mxu1 %v3042_v9 }
 0x38b   :  { %1281 = vmatpush1.bf16.msra.mxu0 %v3045_v51  ;;  %1324 = vmatpush1.bf16.msra.mxu1 %v3048_v45 }
 0x38c   :  { %1412 = vmatprep.subr.bf16.mxu0 %v2949_v20  ;;  %1455 = vmatprep.subr.bf16.mxu1 %v2952_v21 }
 0x441   :  { %v1154_v0 = vpop.f32.mrb[36].mxu0  ;;  %v1197_v53 = vpop.f32.mrb[52].mxu1 }
 0x442   :  { %v1214_v60 = vadd.f32 %v1206_v7, %v1154_v0  ;;  %v1216_v3 = vadd.f32 %v1208_v52, %v1197_v53  ;;  %v1156_v23 = vpop.f32.mrb[37].mxu0  ;;  %v1199_v24 = vpop.f32.mrb[53].mxu1 }
 0x443   :  { %v1215_v29 = vadd.f32 %v1207_v46, %v1156_v23  ;;  %v1217_v30 = vadd.f32 %v1209_v2, %v1199_v24  ;;  %v1158_v17 = vpop.f32.mrb[38].mxu0  ;;  %v1201_v31 = vpop.f32.mrb[54].mxu1 }
 0x444   :  { %v1222_v35 = vmul.f32 0.5, %v1214_v60  ;;  %v1218_v36 = vadd.f32 %v1210_v26, %v1158_v17  ;;  %v1220_v37 = vadd.f32 %v1212_v28, %v1201_v31  ;;  %v1160_v38 = vpop.f32.mrb[39].mxu0  ;;  %v1203_v7 = vpop.f32.mrb[55].mxu1 }
 0x445   :  { %v1230_v52 = vmul.f32 0.5, %v1215_v29  ;;  %v1219_v0 = vadd.f32 %v1211_v32, %v1160_v38  ;;  %v1221_v53 = vadd.f32 %v1213_v34, %v1203_v7  ;;  %v1240_v6 = vmul.f32 0.5, %v1217_v30 }
 0x446   :  { %2230 = vtanh.f32 %v1222_v35  ;;  %v1223_v55 = vmul.f32 0.5, %v1218_v36 }
 0x447   :  { %2232 = vtanh.f32 %v1230_v52  ;;  %v1231_v49 = vmul.f32 0.5, %v1219_v0  ;;  %v1241_v23 = vmul.f32 0.5, %v1221_v53 }
 0x448   :  { %2234 = vtanh.f32 %v1223_v55 }
 0x449   :  { %2236 = vtanh.f32 %v1216_v3 }
 0x44a   :  { %2238 = vtanh.f32 %v1231_v49 }
 0x44b   :  { %2240 = vtanh.f32 %v1220_v37 }
 0x44c   :  { %2242 = vtanh.f32 %v1240_v6 }
 0x44d   :  { %2244 = vtanh.f32 %v1241_v23 }
 0x450   :  { %v2231_v46 = vpop.eup %2230 }
 0x451   :  { %v2233_v25 = vpop.eup %2232  ;;  %v1226_v2 = vmul.f32 0.5, %v2231_v46 }
 0x452   :  { %v1234_v60 = vmul.f32 0.5, %v2233_v25  ;;  %v2235_v24 = vpop.eup %2234 }
 0x453   :  { %v1228_v26 = vadd.f32 0.5, %v1226_v2  ;;  %v2237_v28 = vpop.eup %2236  ;;  %v1227_v17 = vmul.f32 0.5, %v2235_v24 }
 0x454   :  { %v1236_v29 = vadd.f32 0.5, %v1234_v60  ;;  %v2239_v31 = vpop.eup %2238 }
 0x455   :  { %v1250_v32 = vmul.f32 %v2237_v28, %v1228_v26  ;;  %v1229_v35 = vadd.f32 0.5, %v1227_v17  ;;  %v1235_v3 = vmul.f32 0.5, %v2239_v31  ;;  %v2241_v36 = vpop.eup %2240  ;;  %v1354_v26 = vunpack.c.l.bf16 %v2817_v62  ;;  %v3321_v17 = vld [vmem:[#allocation25_spill] sm:$0xff] }
 0x456   :  { %v1248_v34 = vmul.f32 %v1236_v29, %v2964_v22  ;;  %v2243_v0 = vpop.eup %2242  ;;  %v1353_v31 = vunpack.c.l.bf16 %v3321_v17 }
 0x457   :  { %v1237_v38 = vadd.f32 0.5, %v1235_v3  ;;  %v1251_v30 = vmul.f32 %v2241_v36, %v1229_v35  ;;  %v2245_v53 = vpop.eup %2244  ;;  %v1244_v55 = vmul.f32 0.5, %v2243_v0 }
 0x458   :  { %v3062_v37 = vadd.f32 %v1250_v32, %v1248_v34  ;;  %v1245_v22 = vmul.f32 0.5, %v2245_v53  ;;  %v3322_v32 = vld [vmem:[#allocation28_spill] sm:$0xff] }
 0x459   :  { %v1249_v7 = vmul.f32 %v1237_v38, %v2968_v27  ;;  %v1246_v46 = vadd.f32 0.5, %v1244_v55  ;;  %v3320_v27 = vld [vmem:[#allocation23_spill] sm:$0xff]  ;;  %v1355_v34 = vunpack.c.l.bf16 %v3322_v32 }
 0x45a   :  { %2246 = vtanh.f32 %v3062_v37  ;;  %v1247_v25 = vadd.f32 0.5, %v1245_v22  ;;  %v1352_v24 = vunpack.c.l.bf16 %v3320_v27 }
 0x45b   :  { %v3066_v52 = vadd.f32 %v1251_v30, %v1249_v7  ;;  %v1356_v30 = vunpack.c.h.bf16 %v3320_v27  ;;  %v1358_v7 = vunpack.c.h.bf16 %v2817_v62 }
 0x45d   :  { %2248 = vtanh.f32 %v3066_v52 }
 0x464   :  { %v2247_v49 = vpop.eup %2246 }
 0x465   :  { %v1256_v6 = vmul.f32 %v2247_v49, %v1246_v46  ;;  %v1357_v49 = vunpack.c.h.bf16 %v3321_v17  ;;  %v1359_v46 = vunpack.c.h.bf16 %v3322_v32 }
 0x467   :  { %v2249_v2 = vpop.eup %2248 }
 0x468   :  { %v1257_v60 = vmul.f32 %v2249_v2, %v1247_v25 }
 0x46a   :  { %v1265_v23 = vpack.c.bf16 %v1257_v60, %v1256_v6 }
 0x46c   :  { %1299 = vmatmul.mubr.bf16.vlgmr.msra.gmra.mrb[40].mxu0 %v1265_v23  ;;  %1342 = vmatmul.mubr.bf16.vlgmr.msra.gmra.mrb[56].mxu1 %v1265_v23 }
 0x46d   :  { %1413 = vmatpush1.bf16.msra.mxu0 %v2905_v54  ;;  %1456 = vmatpush1.bf16.msra.mxu1 %v2972_v11 }
 0x46e   :  { %1414 = vmatprep.subr.bf16.mxu0 %v2909_v4  ;;  %1457 = vmatprep.subr.bf16.mxu1 %v2976_v39 }
 0x46f   :  { %1444 = vmatprep.mubr.bf16.mxu0 %v3313_v57  ;;  %1487 = vmatprep.mubr.bf16.mxu1 %v3313_v57 }
 0x471   :  { %1415 = vmatpush1.bf16.msra.mxu0 %v2915_v10  ;;  %1458 = vmatpush1.bf16.msra.mxu1 %v2982_v40 }
 0x472   :  { %1416 = vmatprep.subr.bf16.mxu0 %v2919_v12  ;;  %1459 = vmatprep.subr.bf16.mxu1 %v2986_v42 }
 0x475   :  { %1417 = vmatpush1.bf16.msra.mxu0 %v2923_v18  ;;  %1460 = vmatpush1.bf16.msra.mxu1 %v2990_v43 }
 0x476   :  { %1418 = vmatprep.subr.bf16.mxu0 %v2927_v19  ;;  %1461 = vmatprep.subr.bf16.mxu1 %v2994_v44 }
 0x479   :  { %1419 = vmatpush1.bf16.msra.mxu0 %v2997_v13  ;;  %1462 = vmatpush1.bf16.msra.mxu1 %v3000_v14 }
 0x47a   :  { %1420 = vmatprep.subr.bf16.mxu0 %v3003_v15  ;;  %1463 = vmatprep.subr.bf16.mxu1 %v3006_v16 }
 0x47d   :  { %1421 = vmatpush1.bf16.msra.mxu0 %v3009_v61  ;;  %1464 = vmatpush1.bf16.msra.mxu1 %v3012_v58 }
 0x47e   :  { %1422 = vmatprep.subr.bf16.mxu0 %v3015_v63  ;;  %1465 = vmatprep.subr.bf16.mxu1 %v3018_v1 }
 0x481   :  { %1423 = vmatpush1.bf16.msra.mxu0 %v3021_v41  ;;  %1466 = vmatpush1.bf16.msra.mxu1 %v3024_v8 }
 0x482   :  { %1424 = vmatprep.subr.bf16.mxu0 %v3027_v59  ;;  %1467 = vmatprep.subr.bf16.mxu1 %v3030_v48 }
 0x485   :  { %1425 = vmatpush1.bf16.msra.mxu0 %v3033_v56  ;;  %1468 = vmatpush1.bf16.msra.mxu1 %v3036_v5 }
 0x486   :  { %1426 = vmatprep.subr.bf16.mxu0 %v3039_v33  ;;  %1469 = vmatprep.subr.bf16.mxu1 %v3042_v9 }
 0x489   :  { %1427 = vmatpush1.bf16.msra.mxu0 %v3045_v51  ;;  %1470 = vmatpush1.bf16.msra.mxu1 %v3048_v45 }
 0x48a   :  { %1558 = vmatprep.subr.bf16.mxu0 %v2949_v20  ;;  %1601 = vmatprep.subr.bf16.mxu1 %v2952_v21 }
 0x53f   :  { %v1300_v28 = vpop.f32.mrb[40].mxu0  ;;  %v1343_v29 = vpop.f32.mrb[56].mxu1 }
 0x540   :  { %v1360_v35 = vadd.f32 %v1352_v24, %v1300_v28  ;;  %v1362_v3 = vadd.f32 %v1354_v26, %v1343_v29  ;;  %v1302_v36 = vpop.f32.mrb[41].mxu0  ;;  %v1345_v38 = vpop.f32.mrb[57].mxu1 }
 0x541   :  { %v1361_v0 = vadd.f32 %v1353_v31, %v1302_v36  ;;  %v1363_v53 = vadd.f32 %v1355_v34, %v1345_v38  ;;  %v1304_v55 = vpop.f32.mrb[42].mxu0  ;;  %v1347_v22 = vpop.f32.mrb[58].mxu1 }
 0x542   :  { %v1368_v25 = vmul.f32 0.5, %v1360_v35  ;;  %v1364_v2 = vadd.f32 %v1356_v30, %v1304_v55  ;;  %v1366_v6 = vadd.f32 %v1358_v7, %v1347_v22  ;;  %v1306_v60 = vpop.f32.mrb[43].mxu0  ;;  %v1349_v23 = vpop.f32.mrb[59].mxu1 }
 0x543   :  { %v1376_v24 = vmul.f32 0.5, %v1361_v0  ;;  %v1365_v26 = vadd.f32 %v1357_v49, %v1306_v60  ;;  %v1367_v28 = vadd.f32 %v1359_v46, %v1349_v23  ;;  %v1386_v32 = vmul.f32 0.5, %v1363_v53 }
 0x544   :  { %2250 = vtanh.f32 %v1368_v25  ;;  %v1369_v27 = vmul.f32 0.5, %v1364_v2 }
 0x545   :  { %2252 = vtanh.f32 %v1376_v24  ;;  %v1377_v62 = vmul.f32 0.5, %v1365_v26  ;;  %v1387_v35 = vmul.f32 0.5, %v1367_v28 }
 0x546   :  { %2254 = vtanh.f32 %v1369_v27 }
 0x547   :  { %2256 = vtanh.f32 %v1362_v3 }
 0x548   :  { %2258 = vtanh.f32 %v1377_v62 }
 0x549   :  { %2260 = vtanh.f32 %v1366_v6 }
 0x54a   :  { %2262 = vtanh.f32 %v1386_v32 }
 0x54b   :  { %2264 = vtanh.f32 %v1387_v35 }
 0x54e   :  { %v2251_v29 = vpop.eup %2250 }
 0x54f   :  { %v2253_v17 = vpop.eup %2252  ;;  %v1372_v31 = vmul.f32 0.5, %v2251_v29 }
 0x550   :  { %v1380_v34 = vmul.f32 0.5, %v2253_v17  ;;  %v2255_v36 = vpop.eup %2254 }
 0x551   :  { %v1374_v38 = vadd.f32 0.5, %v1372_v31  ;;  %v2257_v30 = vpop.eup %2256  ;;  %v1373_v0 = vmul.f32 0.5, %v2255_v36  ;;  %v1500_v36 = vunpack.c.l.bf16 %v2825_v50 }
 0x552   :  { %v1382_v7 = vadd.f32 0.5, %v1380_v34  ;;  %v2259_v55 = vpop.eup %2258 }
 0x553   :  { %v1396_v22 = vmul.f32 %v2257_v30, %v1374_v38  ;;  %v1375_v46 = vadd.f32 0.5, %v1373_v0  ;;  %v1381_v3 = vmul.f32 0.5, %v2259_v55  ;;  %v2261_v25 = vpop.eup %2260  ;;  %v3325_v55 = vld [vmem:[#allocation29_spill] sm:$0xff] }
 0x554   :  { %v1394_v49 = vmul.f32 %v1382_v7, %v3062_v37  ;;  %v2263_v24 = vpop.eup %2262  ;;  %v3324_v7 = vld [vmem:[#allocation27_spill] sm:$0xff] }
 0x555   :  { %v1383_v6 = vadd.f32 0.5, %v1381_v3  ;;  %v1397_v53 = vmul.f32 %v2261_v25, %v1375_v46  ;;  %v2265_v26 = vpop.eup %2264  ;;  %v1390_v28 = vmul.f32 0.5, %v2263_v24  ;;  %v1499_v0 = vunpack.c.l.bf16 %v3324_v7 }
 0x556   :  { %v3112_v2 = vadd.f32 %v1396_v22, %v1394_v49  ;;  %v1391_v37 = vmul.f32 0.5, %v2265_v26  ;;  %v1501_v22 = vunpack.c.l.bf16 %v3325_v55  ;;  %v1503_v26 = vunpack.c.h.bf16 %v3324_v7 }
 0x557   :  { %v1395_v60 = vmul.f32 %v1383_v6, %v3066_v52  ;;  %v1392_v62 = vadd.f32 0.5, %v1390_v28  ;;  %v3323_v52 = vld [vmem:[#allocation26_spill] sm:$0xff]  ;;  %v1505_v28 = vunpack.c.h.bf16 %v3325_v55 }
 0x558   :  { %2266 = vtanh.f32 %v3112_v2  ;;  %v1393_v29 = vadd.f32 0.5, %v1391_v37  ;;  %v1498_v35 = vunpack.c.l.bf16 %v3323_v52  ;;  %v1502_v6 = vunpack.c.h.bf16 %v3323_v52 }
 0x559   :  { %v3116_v23 = vadd.f32 %v1397_v53, %v1395_v60 }
 0x55b   :  { %2268 = vtanh.f32 %v3116_v23 }
 0x562   :  { %v2267_v27 = vpop.eup %2266 }
 0x563   :  { %v1402_v31 = vmul.f32 %v2267_v27, %v1392_v62 }
 0x565   :  { %v2269_v17 = vpop.eup %2268 }
 0x566   :  { %v1403_v32 = vmul.f32 %v2269_v17, %v1393_v29 }
 0x568   :  { %v1411_v34 = vpack.c.bf16 %v1403_v32, %v1402_v31 }
 0x56a   :  { %1445 = vmatmul.mubr.bf16.vlgmr.msra.gmra.mrb[44].mxu0 %v1411_v34  ;;  %1488 = vmatmul.mubr.bf16.vlgmr.msra.gmra.mrb[60].mxu1 %v1411_v34 }
 0x56b   :  { %1559 = vmatpush1.bf16.msra.mxu0 %v2905_v54  ;;  %1602 = vmatpush1.bf16.msra.mxu1 %v2972_v11 }
 0x56c   :  { %1560 = vmatprep.subr.bf16.mxu0 %v2909_v4  ;;  %1603 = vmatprep.subr.bf16.mxu1 %v2976_v39 }
 0x56d   :  { %1590 = vmatprep.mubr.bf16.mxu0 %v3313_v57  ;;  %1633 = vmatprep.mubr.bf16.mxu1 %v3313_v57 }
 0x56f   :  { %1561 = vmatpush1.bf16.msra.mxu0 %v2915_v10  ;;  %1604 = vmatpush1.bf16.msra.mxu1 %v2982_v40 }
 0x570   :  { %1562 = vmatprep.subr.bf16.mxu0 %v2919_v12  ;;  %1605 = vmatprep.subr.bf16.mxu1 %v2986_v42 }
 0x573   :  { %1563 = vmatpush1.bf16.msra.mxu0 %v2923_v18  ;;  %1606 = vmatpush1.bf16.msra.mxu1 %v2990_v43 }
 0x574   :  { %1564 = vmatprep.subr.bf16.mxu0 %v2927_v19  ;;  %1607 = vmatprep.subr.bf16.mxu1 %v2994_v44 }
 0x577   :  { %1565 = vmatpush1.bf16.msra.mxu0 %v2997_v13  ;;  %1608 = vmatpush1.bf16.msra.mxu1 %v3000_v14 }
 0x578   :  { %1566 = vmatprep.subr.bf16.mxu0 %v3003_v15  ;;  %1609 = vmatprep.subr.bf16.mxu1 %v3006_v16 }
 0x57b   :  { %1567 = vmatpush1.bf16.msra.mxu0 %v3009_v61  ;;  %1610 = vmatpush1.bf16.msra.mxu1 %v3012_v58 }
 0x57c   :  { %1568 = vmatprep.subr.bf16.mxu0 %v3015_v63  ;;  %1611 = vmatprep.subr.bf16.mxu1 %v3018_v1 }
 0x57f   :  { %1569 = vmatpush1.bf16.msra.mxu0 %v3021_v41  ;;  %1612 = vmatpush1.bf16.msra.mxu1 %v3024_v8 }
 0x580   :  { %1570 = vmatprep.subr.bf16.mxu0 %v3027_v59  ;;  %1613 = vmatprep.subr.bf16.mxu1 %v3030_v48 }
 0x583   :  { %1571 = vmatpush1.bf16.msra.mxu0 %v3033_v56  ;;  %1614 = vmatpush1.bf16.msra.mxu1 %v3036_v5 }
 0x584   :  { %1572 = vmatprep.subr.bf16.mxu0 %v3039_v33  ;;  %1615 = vmatprep.subr.bf16.mxu1 %v3042_v9 }
 0x587   :  { %1573 = vmatpush1.bf16.msra.mxu0 %v3045_v51  ;;  %1616 = vmatpush1.bf16.msra.mxu1 %v3048_v45 }
 0x588   :  { %1704 = vmatprep.subr.bf16.mxu0 %v2949_v20  ;;  %1747 = vmatprep.subr.bf16.mxu1 %v2952_v21  ;;  %v1504_v20 = vunpack.c.h.bf16 %v2825_v50 }
 0x63d   :  { %v1446_v38 = vpop.f32.mrb[44].mxu0  ;;  %v1489_v30 = vpop.f32.mrb[60].mxu1 }
 0x63e   :  { %v1506_v49 = vadd.f32 %v1498_v35, %v1446_v38  ;;  %v1508_v46 = vadd.f32 %v1500_v36, %v1489_v30  ;;  %v1448_v3 = vpop.f32.mrb[45].mxu0  ;;  %v1491_v25 = vpop.f32.mrb[61].mxu1 }
 0x63f   :  { %v1507_v53 = vadd.f32 %v1499_v0, %v1448_v3  ;;  %v1509_v21 = vadd.f32 %v1501_v22, %v1491_v25  ;;  %v1450_v60 = vpop.f32.mrb[46].mxu0  ;;  %v1493_v24 = vpop.f32.mrb[62].mxu1 }
 0x640   :  { %v1514_v37 = vmul.f32 0.5, %v1506_v49  ;;  %v1510_v27 = vadd.f32 %v1502_v6, %v1450_v60  ;;  %v1512_v62 = vadd.f32 %v1504_v20, %v1493_v24  ;;  %v1452_v29 = vpop.f32.mrb[47].mxu0  ;;  %v1495_v17 = vpop.f32.mrb[63].mxu1 }
 0x641   :  { %v1522_v31 = vmul.f32 0.5, %v1507_v53  ;;  %v1511_v32 = vadd.f32 %v1503_v26, %v1452_v29  ;;  %v1513_v34 = vadd.f32 %v1505_v28, %v1495_v17  ;;  %v1532_v30 = vmul.f32 0.5, %v1509_v21 }
 0x642   :  { %2270 = vtanh.f32 %v1514_v37  ;;  %v1515_v52 = vmul.f32 0.5, %v1510_v27 }
 0x643   :  { %2272 = vtanh.f32 %v1522_v31  ;;  %v1523_v50 = vmul.f32 0.5, %v1511_v32  ;;  %v1533_v0 = vmul.f32 0.5, %v1513_v34 }
 0x644   :  { %2274 = vtanh.f32 %v1515_v52 }
 0x645   :  { %2276 = vtanh.f32 %v1508_v46 }
 0x646   :  { %2278 = vtanh.f32 %v1523_v50 }
 0x647   :  { %2280 = vtanh.f32 %v1512_v62 }
 0x648   :  { %2282 = vtanh.f32 %v1532_v30 }
 0x649   :  { %2284 = vtanh.f32 %v1533_v0 }
 0x64c   :  { %v2271_v35 = vpop.eup %2270 }
 0x64d   :  { %v2273_v36 = vpop.eup %2272  ;;  %v1518_v38 = vmul.f32 0.5, %v2271_v35 }
 0x64e   :  { %v1526_v7 = vmul.f32 0.5, %v2273_v36  ;;  %v2275_v55 = vpop.eup %2274 }
 0x64f   :  { %v1520_v22 = vadd.f32 0.5, %v1518_v38  ;;  %v2277_v49 = vpop.eup %2276  ;;  %v1519_v25 = vmul.f32 0.5, %v2275_v55 }
 0x650   :  { %v1528_v3 = vadd.f32 0.5, %v1526_v7  ;;  %v2279_v6 = vpop.eup %2278 }
 0x651   :  { %v1542_v20 = vmul.f32 %v2277_v49, %v1520_v22  ;;  %v1521_v60 = vadd.f32 0.5, %v1519_v25  ;;  %v1527_v46 = vmul.f32 0.5, %v2279_v6  ;;  %v2281_v24 = vpop.eup %2280 }
 0x652   :  { %v1540_v53 = vmul.f32 %v1528_v3, %v3112_v2  ;;  %v2283_v62 = vpop.eup %2282 }
 0x653   :  { %v1529_v28 = vadd.f32 0.5, %v1527_v46  ;;  %v1543_v21 = vmul.f32 %v2281_v24, %v1521_v60  ;;  %v2285_v29 = vpop.eup %2284  ;;  %v1536_v17 = vmul.f32 0.5, %v2283_v62 }
 0x654   :  { %v3162_v26 = vadd.f32 %v1542_v20, %v1540_v53  ;;  %v1537_v2 = vmul.f32 0.5, %v2285_v29 }
 0x655   :  { %v1541_v37 = vmul.f32 %v1529_v28, %v3116_v23  ;;  %v1538_v32 = vadd.f32 0.5, %v1536_v17 }
 0x656   :  { %2286 = vtanh.f32 %v3162_v26  ;;  %v1539_v34 = vadd.f32 0.5, %v1537_v2 }
 0x657   :  { %v3166_v27 = vadd.f32 %v1543_v21, %v1541_v37 }
 0x659   :  { %2288 = vtanh.f32 %v3166_v27 }
 0x660   :  { %v2287_v31 = vpop.eup %2286 }
 0x661   :  { %v1548_v50 = vmul.f32 %v2287_v31, %v1538_v32 }
 0x663   :  { %v2289_v52 = vpop.eup %2288 }
 0x664   :  { %v1549_v35 = vmul.f32 %v2289_v52, %v1539_v34 }
 0x666   :  { %v1557_v36 = vpack.c.bf16 %v1549_v35, %v1548_v50 }
 0x668   :  { %1591 = vmatmul.mubr.bf16.vlgmr.msra.gmra.mrb[48].mxu0 %v1557_v36  ;;  %1634 = vmatmul.mubr.bf16.vlgmr.msra.gmra.mrb[64].mxu1 %v1557_v36 }
 0x669   :  { %1705 = vmatpush1.bf16.msra.mxu0 %v2905_v54  ;;  %1748 = vmatpush1.bf16.msra.mxu1 %v2972_v11  ;;  %v3328_v11 = vld [vmem:[#allocation30_spill] sm:$0xff] }
 0x66a   :  { %1706 = vmatprep.subr.bf16.mxu0 %v2909_v4  ;;  %1749 = vmatprep.subr.bf16.mxu1 %v2976_v39  ;;  %v1646_v4 = vunpack.c.l.bf16 %v2833_v47  ;;  %v1647_v39 = vunpack.c.l.bf16 %v3328_v11 }
 0x66b   :  { %1736 = vmatprep.mubr.bf16.mxu0 %v3313_v57  ;;  %1779 = vmatprep.mubr.bf16.mxu1 %v3313_v57  ;;  %v3326_v57 = vld [vmem:[#allocation14_spill] sm:$0xff] }
 0x66c   :  { %v1644_v54 = vunpack.c.l.bf16 %v3326_v57 }
 0x66d   :  { %1707 = vmatpush1.bf16.msra.mxu0 %v2915_v10  ;;  %1750 = vmatpush1.bf16.msra.mxu1 %v2982_v40 }
 0x66e   :  { %1708 = vmatprep.subr.bf16.mxu0 %v2919_v12  ;;  %1751 = vmatprep.subr.bf16.mxu1 %v2986_v42 }
 0x671   :  { %1709 = vmatpush1.bf16.msra.mxu0 %v2923_v18  ;;  %1752 = vmatpush1.bf16.msra.mxu1 %v2990_v43  ;;  %v3327_v18 = vld [vmem:[#allocation15_spill] sm:$0xff] }
 0x672   :  { %1710 = vmatprep.subr.bf16.mxu0 %v2927_v19  ;;  %1753 = vmatprep.subr.bf16.mxu1 %v2994_v44  ;;  %v1645_v19 = vunpack.c.l.bf16 %v3327_v18 }
 0x675   :  { %1711 = vmatpush1.bf16.msra.mxu0 %v2997_v13  ;;  %1754 = vmatpush1.bf16.msra.mxu1 %v3000_v14  ;;  %v1648_v13 = vunpack.c.h.bf16 %v3326_v57  ;;  %v1650_v14 = vunpack.c.h.bf16 %v2833_v47 }
 0x676   :  { %1712 = vmatprep.subr.bf16.mxu0 %v3003_v15  ;;  %1755 = vmatprep.subr.bf16.mxu1 %v3006_v16 }
 0x679   :  { %1713 = vmatpush1.bf16.msra.mxu0 %v3009_v61  ;;  %1756 = vmatpush1.bf16.msra.mxu1 %v3012_v58 }
 0x67a   :  { %1714 = vmatprep.subr.bf16.mxu0 %v3015_v63  ;;  %1757 = vmatprep.subr.bf16.mxu1 %v3018_v1  ;;  %v1649_v63 = vunpack.c.h.bf16 %v3327_v18  ;;  %v1651_v1 = vunpack.c.h.bf16 %v3328_v11  ;;  %v2166_v18 = vld [vmem:[%s3270_s4 + $0x20] sm:$0xff]   ;;  %v2168_v11 = vld [vmem:[%s3270_s4 + $0x30] sm:$0xff]  }
 0x67d   :  { %1715 = vmatpush1.bf16.msra.mxu0 %v3021_v41  ;;  %1758 = vmatpush1.bf16.msra.mxu1 %v3024_v8 }
 0x67e   :  { %1716 = vmatprep.subr.bf16.mxu0 %v3027_v59  ;;  %1759 = vmatprep.subr.bf16.mxu1 %v3030_v48 }
 0x681   :  { %1717 = vmatpush1.bf16.msra.mxu0 %v3033_v56  ;;  %1760 = vmatpush1.bf16.msra.mxu1 %v3036_v5 }
 0x682   :  { %1718 = vmatprep.subr.bf16.mxu0 %v3039_v33  ;;  %1761 = vmatprep.subr.bf16.mxu1 %v3042_v9 }
 0x685   :  { %1719 = vmatpush1.bf16.msra.mxu0 %v3045_v51  ;;  %1762 = vmatpush1.bf16.msra.mxu1 %v3048_v45 }
 0x73b   :  { %v1592_v10 = vpop.f32.mrb[48].mxu0  ;;  %v1635_v12 = vpop.f32.mrb[64].mxu1 }
 0x73c   :  { %v1652_v40 = vadd.f32 %v1644_v54, %v1592_v10  ;;  %v1654_v42 = vadd.f32 %v1646_v4, %v1635_v12  ;;  %v1594_v43 = vpop.f32.mrb[49].mxu0  ;;  %v1637_v44 = vpop.f32.mrb[65].mxu1  ;;  %v2440_v54 = vmov 0.0   ;;  %v2163_v4 = vld [vmem:[%s3270_s4 + $0x8] sm:$0xff]   ;;  %v2164_v10 = vld [vmem:[%s3270_s4 + $0x10] sm:$0xff]   ;;  %v2165_v12 = vld [vmem:[%s3270_s4 + $0x18] sm:$0xff]  }
 0x73d   :  { %v1653_v15 = vadd.f32 %v1645_v19, %v1594_v43  ;;  %v1655_v16 = vadd.f32 %v1647_v39, %v1637_v44  ;;  %v1596_v61 = vpop.f32.mrb[50].mxu0  ;;  %v1639_v58 = vpop.f32.mrb[66].mxu1  ;;  %2067 = vmatprep.subr.bf16.mxu0 %v2440_v54  ;;  %v2167_v19 = vld [vmem:[%s3270_s4 + $0x28] sm:$0xff]   ;;  %v2169_v39 = vld [vmem:[%s3270_s4 + $0x38] sm:$0xff]  }
 0x73e   :  { %v1660_v41 = vmul.f32 0.5, %v1652_v40  ;;  %v1656_v8 = vadd.f32 %v1648_v13, %v1596_v61  ;;  %v1658_v59 = vadd.f32 %v1650_v14, %v1639_v58  ;;  %v1598_v48 = vpop.f32.mrb[51].mxu0  ;;  %v1641_v56 = vpop.f32.mrb[67].mxu1  ;;  %v3329_v40 = vld [vmem:[#allocation16_spill] sm:$0xff]  ;;  %v3330_v43 = vld [vmem:[#allocation31_spill] sm:$0xff] }
 0x73f   :  { %v1668_v5 = vmul.f32 0.5, %v1653_v15  ;;  %v1657_v33 = vadd.f32 %v1649_v63, %v1598_v48  ;;  %v1659_v9 = vadd.f32 %v1651_v1, %v1641_v56  ;;  %v1678_v30 = vmul.f32 0.5, %v1655_v16  ;;  %v3331_v15 = vld [vmem:[#allocation17_spill] sm:$0xff]  ;;  %v3332_v61 = vld [vmem:[#allocation32_spill] sm:$0xff] }
 0x740   :  { %2290 = vtanh.f32 %v1660_v41  ;;  %v1661_v51 = vmul.f32 0.5, %v1656_v8  ;;  %v1792_v44 = vunpack.c.l.bf16 %v3330_v43  ;;  %v1791_v16 = vunpack.c.l.bf16 %v3331_v15 }
 0x741   :  { %2292 = vtanh.f32 %v1668_v5  ;;  %v1669_v47 = vmul.f32 0.5, %v1657_v33  ;;  %v1679_v0 = vmul.f32 0.5, %v1659_v9  ;;  %v1793_v58 = vunpack.c.l.bf16 %v3332_v61 }
 0x742   :  { %2294 = vtanh.f32 %v1661_v51  ;;  %v1796_v48 = vunpack.c.h.bf16 %v3330_v43  ;;  %v1795_v51 = vunpack.c.h.bf16 %v3331_v15  ;;  %v2049_v43 = vld [vmem:[%s3271_s5] ss:$0 sm:$0xff] }
 0x743   :  { %2296 = vtanh.f32 %v1654_v42  ;;  %v1790_v42 = vunpack.c.l.bf16 %v3329_v40 }
 0x744   :  { %2298 = vtanh.f32 %v1669_v47  ;;  %v1797_v47 = vunpack.c.h.bf16 %v3332_v61 }
 0x745   :  { %2300 = vtanh.f32 %v1658_v59  ;;  %v1794_v59 = vunpack.c.h.bf16 %v3329_v40 }
 0x746   :  { %2302 = vtanh.f32 %v1678_v30 }
 0x747   :  { %2304 = vtanh.f32 %v1679_v0 }
 0x74a   :  { %v2291_v45 = vpop.eup %2290 }
 0x74b   :  { %v2293_v23 = vpop.eup %2292  ;;  %v1664_v38 = vmul.f32 0.5, %v2291_v45 }
 0x74c   :  { %v1672_v7 = vmul.f32 0.5, %v2293_v23  ;;  %v2295_v55 = vpop.eup %2294 }
 0x74d   :  { %v1666_v22 = vadd.f32 0.5, %v1664_v38  ;;  %v2297_v49 = vpop.eup %2296  ;;  %v1665_v25 = vmul.f32 0.5, %v2295_v55 }
 0x74e   :  { %v1674_v3 = vadd.f32 0.5, %v1672_v7  ;;  %v2299_v6 = vpop.eup %2298 }
 0x74f   :  { %v1688_v20 = vmul.f32 %v2297_v49, %v1666_v22  ;;  %v1667_v60 = vadd.f32 0.5, %v1665_v25  ;;  %v1673_v46 = vmul.f32 0.5, %v2299_v6  ;;  %v2301_v24 = vpop.eup %2300 }
 0x750   :  { %v1686_v53 = vmul.f32 %v1674_v3, %v3162_v26  ;;  %v2303_v17 = vpop.eup %2302 }
 0x751   :  { %v1675_v21 = vadd.f32 0.5, %v1673_v46  ;;  %v1689_v37 = vmul.f32 %v2301_v24, %v1667_v60  ;;  %v2305_v2 = vpop.eup %2304  ;;  %v1682_v31 = vmul.f32 0.5, %v2303_v17 }
 0x752   :  { %v3210_v28 = vadd.f32 %v1688_v20, %v1686_v53  ;;  %v1683_v26 = vmul.f32 0.5, %v2305_v2 }
 0x753   :  { %v1687_v62 = vmul.f32 %v1675_v21, %v3166_v27  ;;  %v1684_v34 = vadd.f32 0.5, %v1682_v31  ;;  %v2162_v27 = vld [vmem:[%s3270_s4] sm:$0xff]  }
 0x754   :  { %2306 = vtanh.f32 %v3210_v28  ;;  %v1685_v52 = vadd.f32 0.5, %v1683_v26 }
 0x755   :  { %v3214_v29 = vadd.f32 %v1689_v37, %v1687_v62 }
 0x757   :  { %2308 = vtanh.f32 %v3214_v29 }
 0x75e   :  { %v2307_v32 = vpop.eup %2306 }
 0x75f   :  { %v1694_v35 = vmul.f32 %v2307_v32, %v1684_v34 }
 0x761   :  { %v2309_v50 = vpop.eup %2308 }
 0x762   :  { %v1695_v36 = vmul.f32 %v2309_v50, %v1685_v52 }
 0x764   :  { %v1703_v57 = vpack.c.bf16 %v1695_v36, %v1694_v35 }
 0x766   :  { %1737 = vmatmul.mubr.bf16.vlgmr.msra.gmra.mrb[52].mxu0 %v1703_v57  ;;  %1780 = vmatmul.mubr.bf16.vlgmr.msra.gmra.mrb[68].mxu1 %v1703_v57 }
 0x767   :  { %2068 = vmatpush3.bf16.msra.mxu0 %v2162_v27  ;;  %2083 = vmatprep.mubr.msk.bf16.mxu0 %vm2441_vm1, %v2440_v54 }
 0x768   :  { %2069 = vmatprep.subr.bf16.mxu0 %v2440_v54 }
 0x76b   :  { %2070 = vmatpush3.bf16.msra.mxu0 %v2163_v4 }
 0x76c   :  { %2071 = vmatprep.subr.bf16.mxu0 %v2440_v54 }
 0x76f   :  { %2072 = vmatpush3.bf16.msra.mxu0 %v2164_v10 }
 0x770   :  { %2073 = vmatprep.subr.bf16.mxu0 %v2440_v54 }
 0x773   :  { %2074 = vmatpush3.bf16.msra.mxu0 %v2165_v12 }
 0x774   :  { %2075 = vmatprep.subr.bf16.mxu0 %v2440_v54 }
 0x777   :  { %2076 = vmatpush3.bf16.msra.mxu0 %v2166_v18 }
 0x778   :  { %2077 = vmatprep.subr.bf16.mxu0 %v2440_v54 }
 0x77b   :  { %2078 = vmatpush3.bf16.msra.mxu0 %v2167_v19 }
 0x77c   :  { %2079 = vmatprep.subr.bf16.mxu0 %v2440_v54 }
 0x77f   :  { %2080 = vmatpush3.bf16.msra.mxu0 %v2168_v11 }
 0x780   :  { %2081 = vmatprep.subr.bf16.mxu0 %v2440_v54 }
 0x783   :  { %2082 = vmatpush3.bf16.msra.mxu0 %v2169_v39 }
 0x839   :  { %v1738_v13 = vpop.f32.mrb[52].mxu0  ;;  %v1781_v14 = vpop.f32.mrb[68].mxu1 }
 0x83a   :  { %v1798_v63 = vadd.f32 %v1790_v42, %v1738_v13  ;;  %v1800_v1 = vadd.f32 %v1792_v44, %v1781_v14  ;;  %v1740_v41 = vpop.f32.mrb[53].mxu0  ;;  %v1783_v8 = vpop.f32.mrb[69].mxu1 }
 0x83b   :  { %v1799_v56 = vadd.f32 %v1791_v16, %v1740_v41  ;;  %v1801_v5 = vadd.f32 %v1793_v58, %v1783_v8  ;;  %v1742_v33 = vpop.f32.mrb[54].mxu0  ;;  %v1785_v9 = vpop.f32.mrb[70].mxu1 }
 0x83c   :  { %v1806_v45 = vmul.f32 0.5, %v1798_v63  ;;  %v1802_v23 = vadd.f32 %v1794_v59, %v1742_v33  ;;  %v1804_v38 = vadd.f32 %v1796_v48, %v1785_v9  ;;  %v1744_v30 = vpop.f32.mrb[55].mxu0  ;;  %v1787_v7 = vpop.f32.mrb[71].mxu1 }
 0x83d   :  { %v1814_v0 = vmul.f32 0.5, %v1799_v56  ;;  %v1803_v55 = vadd.f32 %v1795_v51, %v1744_v30  ;;  %v1805_v22 = vadd.f32 %v1797_v47, %v1787_v7  ;;  %v1824_v25 = vmul.f32 0.5, %v1801_v5 }
 0x83e   :  { %2310 = vtanh.f32 %v1806_v45  ;;  %v1807_v49 = vmul.f32 0.5, %v1802_v23 }
 0x83f   :  { %2312 = vtanh.f32 %v1814_v0  ;;  %v1815_v3 = vmul.f32 0.5, %v1803_v55  ;;  %v1825_v46 = vmul.f32 0.5, %v1805_v22 }
 0x840   :  { %2314 = vtanh.f32 %v1807_v49 }
 0x841   :  { %2316 = vtanh.f32 %v1800_v1 }
 0x842   :  { %2318 = vtanh.f32 %v1815_v3 }
 0x843   :  { %2320 = vtanh.f32 %v1804_v38 }
 0x844   :  { %2322 = vtanh.f32 %v1824_v25 }
 0x845   :  { %2324 = vtanh.f32 %v1825_v46 }
 0x848   :  { %v2311_v6 = vpop.eup %2310 }
 0x849   :  { %v2313_v20 = vpop.eup %2312  ;;  %v1810_v53 = vmul.f32 0.5, %v2311_v6 }
 0x84a   :  { %v1818_v60 = vmul.f32 0.5, %v2313_v20  ;;  %v2315_v24 = vpop.eup %2314 }
 0x84b   :  { %v1812_v21 = vadd.f32 0.5, %v1810_v53  ;;  %v2317_v37 = vpop.eup %2316  ;;  %v1811_v17 = vmul.f32 0.5, %v2315_v24 }
 0x84c   :  { %v1820_v62 = vadd.f32 0.5, %v1818_v60  ;;  %v2319_v2 = vpop.eup %2318 }
 0x84d   :  { %v1834_v31 = vmul.f32 %v2317_v37, %v1812_v21  ;;  %v1813_v32 = vadd.f32 0.5, %v1811_v17  ;;  %v1819_v34 = vmul.f32 0.5, %v2319_v2  ;;  %v2321_v52 = vpop.eup %2320 }
 0x84e   :  { %v1832_v26 = vmul.f32 %v1820_v62, %v3210_v28  ;;  %v2323_v27 = vpop.eup %2322 }
 0x84f   :  { %v1821_v35 = vadd.f32 0.5, %v1819_v34  ;;  %v1835_v36 = vmul.f32 %v2321_v52, %v1813_v32  ;;  %v1828_v4 = vmul.f32 0.5, %v2323_v27  ;;  %v2325_v10 = vpop.eup %2324 }
 0x850   :  { %v1836_v50 = vadd.f32 %v1834_v31, %v1832_v26  ;;  %v1829_v18 = vmul.f32 0.5, %v2325_v10 }
 0x851   :  { %v1833_v57 = vmul.f32 %v1821_v35, %v3214_v29  ;;  %v1830_v12 = vadd.f32 0.5, %v1828_v4 }
 0x852   :  { %2326 = vtanh.f32 %v1836_v50  ;;  %v1831_v28 = vadd.f32 0.5, %v1829_v18 }
 0x853   :  { %v1837_v54 = vadd.f32 %v1835_v36, %v1833_v57 }
 0x855   :  { %2328 = vtanh.f32 %v1837_v54 }
 0x85c   :  { %v2327_v19 = vpop.eup %2326 }
 0x85d   :  { %v1840_v11 = vmul.f32 %v2327_v19, %v1830_v12 }
 0x85f   :  { %v2329_v39 = vpop.eup %2328 }
 0x860   :  { %v1841_v40 = vmul.f32 %v2329_v39, %v1831_v28 }
 0x862   :  { %v1849_v42 = vpack.c.bf16 %v1841_v40, %v1840_v11 }
 0x864   :  { %2084 = vmatmul.mubr.bf16.vlgmr.msra.gmra.mrb[56].mxu0 %v1849_v42 }
 0x937   :  { %v1955_v44 = vpop.f32.mrb[56].mxu0 }
 0x938   :  { %v1956_v29 = vadd.f32 %v2049_v43, %v1955_v44  ;;  %v2085_v13 = vpop.f32.mrb[57].mxu0 }
 0x939   :  { %v1958_v14 = vpop.f32.mrb[58].mxu0 }
 0x93a   :  { %1962 = vst [vmem:[#allocation10] sm:$0xff] %v1956_v29  ;;  %v1959_v15 = vadd.f32 %v2049_v43, %v1958_v14  ;;  %v2086_v16 = vpop.f32.mrb[59].mxu0 }
 0x93c   :  { %1963 = vst [vmem:[#allocation10 + $0x8] sm:$0xff] %v1959_v15 }
 0x93d   :  { %2417 = shalt.err (!%p2414_p6)
}
 0x93e   :  { %s2418_s8 = scalar_lea.hbm %s3272_s6, 256 }
 0x93f   :  { %p2419_p7 = scmp.ne.s32.totalorder %s3272_s6, %s2418_s8  ;;  %p2422_p8 = scmp.lt.u32.totalorder %s2418_s8, %s3272_s6 }
 0x941   :  { %p2424_p9 = pnand %p2422_p8, %p2419_p7 }
 0x943   :  { %2427 = shalt.err (!%p2424_p9)
}
 0x944   :  { %s2443_s0 = smov 128   ;;  %s2444_s13 = smov 8  }
 0x945   :  { %1975 = dma.vmem_to_hbm [thread:$0]  %s1970_s29, 256, %s3272_s6, [#allocation7], %s2443_s0, %s2443_s0, %s2444_s13  }
 0x946   :  { %2432 = dma.done.wait [#allocation7], 256  }
 0x947   :  { %2433 = vsyncadd [#allocation7], 4294967040 }
 0x948   :  { %1979 = vsyncpa [#allocation6], 1 }
 0x949   :  { %1980 = vsyncpa [#allocation9], 1 }
 0x94a   :  { %1981 = vsyncpa [#allocation7], 1 }

</bundles_post_ra>
